<compile_context>
chip_gen: v7x
topology: tpu7x:2x2x1
jax: 0.10.0
libtpu: 0.0.40
codegen_flags: <defaults>
</compile_context>

<pallas_src>
import functools

import numpy as np

import jax
import jax.numpy as jnp
from jax import lax
from jax.experimental import pallas as pl
from jax.experimental.pallas import tpu as pltpu


def _round_up(v, m):
    return ((v + m - 1) // m) * m


# ----------------------------------------------------------------------------
# Kernel 1: fused LayerNorm + Linear + ReLU + input-to-hidden LSTM projection
#   x:(tm, A) f32  ->  gates_x:(tm, 8*Hp) bf16   ([0:4Hp]=fwd gates, [4Hp:8Hp]=bwd)
# ----------------------------------------------------------------------------
def fusion_kernel(x_ref, gamma_ref, beta_ref, w_ref, b_ref, wih_ref, o_ref):
    x = x_ref[...]                                              # (tm, A) f32
    # one-pass LayerNorm statistics: var = E[x^2] - mean^2
    mean = jnp.mean(x, axis=-1, keepdims=True)
    msq = jnp.mean(x * x, axis=-1, keepdims=True)
    var = msq - mean * mean
    xn = (x - mean) * lax.rsqrt(var + 1e-5) * gamma_ref[...] + beta_ref[...]
    # bf16 MXU matmuls, f32 accumulation
    y = jnp.dot(xn.astype(jnp.bfloat16), w_ref[...],
                preferred_element_type=jnp.float32) + b_ref[...]
    y = jnp.maximum(y, 0.0)                                     # ReLU
    # hoisted x @ [W_ih_fwd | W_ih_bwd] -> one big lane-dense matmul, store bf16
    o_ref[...] = jnp.dot(y.astype(jnp.bfloat16), wih_ref[...],
                         preferred_element_type=jnp.float32).astype(o_ref.dtype)


def fused_gates(x, gamma, beta, w_bf16, b, wih_bf16, *, tm):
    """x: (N, A) f32 -> (N, 8*Hp) bf16.  N must be a multiple of tm (tm mult of 16)."""
    n, a = x.shape
    l = w_bf16.shape[1]
    g8 = wih_bf16.shape[1]
    return pl.pallas_call(
        fusion_kernel,
        out_shape=jax.ShapeDtypeStruct((n, g8), jnp.bfloat16),
        grid=(n // tm,),
        in_specs=[
            pl.BlockSpec((tm, a), lambda i: (i, 0)),
            pl.BlockSpec((1, a), lambda i: (0, 0)),
            pl.BlockSpec((1, a), lambda i: (0, 0)),
            pl.BlockSpec((a, l), lambda i: (0, 0)),
            pl.BlockSpec((1, l), lambda i: (0, 0)),
            pl.BlockSpec((l, g8), lambda i: (0, 0)),
        ],
        out_specs=pl.BlockSpec((tm, g8), lambda i: (i, 0)),
        compiler_params=pltpu.CompilerParams(
            dimension_semantics=("parallel",),
            vmem_limit_bytes=64 * 1024 * 1024),
    )(x, gamma[None, :], beta[None, :], w_bf16, b[None, :], wih_bf16)


# ----------------------------------------------------------------------------
# Kernel 2: bidirectional LSTM recurrence (bias=False), both directions fused
# into one grid step.  grid=(nc,); per grid step a fori_loop runs `tc` serial
# steps: fwd cell on chunk c (time ascending), bwd cell on chunk nc-1-c (time
# descending).  h/c live in the loop carry; VMEM scratch persists across chunks.
# Length masking implements pack_padded/pad_packed semantics.
# ----------------------------------------------------------------------------
def bilstm_kernel(len_ref, gxf_ref, gxb_ref, whf_ref, whb_ref,
                  of_ref, ob_ref, hf_s, cf_s, hb_s, cb_s, *, tc, nc, hidden):
    c = pl.program_id(0)
    b = len_ref.shape[0]

    @pl.when(c == 0)
    def _():
        hf_s[...] = jnp.zeros_like(hf_s)
        cf_s[...] = jnp.zeros_like(cf_s)
        hb_s[...] = jnp.zeros_like(hb_s)
        cb_s[...] = jnp.zeros_like(cb_s)

    whf = whf_ref[...]                                          # (Hp, 4Hp) f32
    whb = whb_ref[...]
    # hoisted (B, Hp) broadcast of the lengths; only the scalar compare stays
    # inside the loop
    lens = jnp.broadcast_to(len_ref[...], (b, hidden))          # (B, Hp) int32
    t0_f = c * tc                                               # fwd chunk base time
    t0_b = (nc - 1 - c) * tc                                    # bwd chunk base time

    def cell(gx_row, h, c_st, wh):
        gates = gx_row.astype(jnp.float32) + jnp.dot(
            h, wh, preferred_element_type=jnp.float32)          # (B, 4Hp)
        i = jax.nn.sigmoid(gates[:, 0 * hidden:1 * hidden])
        f = jax.nn.sigmoid(gates[:, 1 * hidden:2 * hidden])
        g = jnp.tanh(gates[:, 2 * hidden:3 * hidden])
        o = jax.nn.sigmoid(gates[:, 3 * hidden:4 * hidden])
        c_new = f * c_st + i * g
        h_new = o * jnp.tanh(c_new)
        return h_new, c_new

    def step(s, carry):
        h_f, c_f, h_b, c_b = carry
        lf = s                      # fwd walks its chunk forward
        lb = tc - 1 - s             # bwd walks its chunk in reverse time order
        hf_new, cf_new = cell(gxf_ref[lf], h_f, c_f, whf)
        hb_new, cb_new = cell(gxb_ref[lb], h_b, c_b, whb)
        # packed-sequence semantics: freeze state & zero output in pad region
        mf = (t0_f + lf) < lens                                  # (B, Hp) bool
        mb = (t0_b + lb) < lens
        h_f = jnp.where(mf, hf_new, h_f)
        c_f = jnp.where(mf, cf_new, c_f)
        h_b = jnp.where(mb, hb_new, h_b)
        c_b = jnp.where(mb, cb_new, c_b)
        of_ref[lf] = jnp.where(mf, hf_new, 0.0)
        ob_ref[lb] = jnp.where(mb, hb_new, 0.0)
        return (h_f, c_f, h_b, c_b)

    carry0 = (hf_s[...], cf_s[...], hb_s[...], cb_s[...])
    h_f, c_f, h_b, c_b = lax.fori_loop(0, tc, step, carry0, unroll=8)
    hf_s[...] = h_f
    cf_s[...] = c_f
    hb_s[...] = h_b
    cb_s[...] = c_b


def bilstm(gx, lengths_2d, whh_f, whh_b, *, tc):
    """gx: (T_pad, B, 8*Hp) bf16 precomputed x@Wih ([fwd | bwd] halves).
       lengths_2d: (B, 1) int32.  whh_*: (Hp, 4*Hp) f32.
       Returns (out_fwd, out_bwd), each (T_pad, B, Hp) f32."""
    t_pad, b, g8 = gx.shape
    hp4 = g8 // 2
    hp = hp4 // 4
    assert t_pad % tc == 0
    nc = t_pad // tc
    kernel = functools.partial(bilstm_kernel, tc=tc, nc=nc, hidden=hp)

    return pl.pallas_call(
        kernel,
        out_shape=(jax.ShapeDtypeStruct((t_pad, b, hp), jnp.float32),
                   jax.ShapeDtypeStruct((t_pad, b, hp), jnp.float32)),
        grid=(nc,),
        in_specs=[
            pl.BlockSpec((b, 1), lambda c: (0, 0)),                    # lengths
            pl.BlockSpec((tc, b, hp4), lambda c: (c, 0, 0)),           # fwd gates half
            pl.BlockSpec((tc, b, hp4), lambda c: (nc - 1 - c, 0, 1)),  # bwd gates half (rev chunks)
            pl.BlockSpec((hp, hp4), lambda c: (0, 0)),                 # W_hh fwd
            pl.BlockSpec((hp, hp4), lambda c: (0, 0)),                 # W_hh bwd
        ],
        out_specs=(
            pl.BlockSpec((tc, b, hp), lambda c: (c, 0, 0)),            # fwd h
            pl.BlockSpec((tc, b, hp), lambda c: (nc - 1 - c, 0, 0)),   # bwd h (rev chunks)
        ),
        scratch_shapes=[pltpu.VMEM((b, hp), jnp.float32)] * 4,         # h_f, c_f, h_b, c_b
        compiler_params=pltpu.CompilerParams(
            dimension_semantics=("arbitrary",),
            vmem_limit_bytes=48 * 1024 * 1024),
    )(lengths_2d, gx, gx, whh_f, whh_b)


# ----------------------------------------------------------------------------
# Weight padding helpers: pad hidden size H -> Hp (multiple of 128) with zero
# gate columns / zero Whh rows so in-kernel gate slices and stores are
# lane-aligned.  Zero padding keeps the padded h/c lanes exactly zero.
# ----------------------------------------------------------------------------
def _pad_gate_cols(w, h, hp):
    """(L, 4H) -> (L, 4Hp), zero-padding each of the 4 gate column blocks."""
    if hp == h:
        return w
    l = w.shape[0]
    w4 = w.reshape(l, 4, h)
    return jnp.pad(w4, ((0, 0), (0, 0), (0, hp - h))).reshape(l, 4 * hp)


def _pad_gate_mat(w, h, hp):
    """(H, 4H) -> (Hp, 4Hp), zero-padding rows and each gate column block."""
    if hp == h:
        return w
    w4 = w.reshape(h, 4, h)
    return jnp.pad(w4, ((0, hp - h), (0, 0), (0, hp - h))).reshape(hp, 4 * hp)


# ----------------------------------------------------------------------------
# Full module forward
# ----------------------------------------------------------------------------
def audio_to_face_forward(audio, lengths, params, *, max_len,
                          time_chunk=64, fusion_tile=512):
    """audio: (B, T, A) float32, lengths: (B,) int32. Returns (B, max_len, 2H)."""
    B, T, A = audio.shape
    H = params["whh_f"].shape[0]
    Hp = _round_up(H, 128)

    # ---- time-major layout + pad T to a multiple of the time chunk ----
    tc = min(time_chunk, _round_up(T, 8))
    T_pad = _round_up(T, tc)
    x_tm = jnp.transpose(audio, (1, 0, 2))                      # (T, B, A)
    if T_pad != T:
        x_tm = jnp.pad(x_tm, ((0, T_pad - T), (0, 0), (0, 0)))

    # ---- weight prep: pad hidden to Hp, cast stage-1 matmul weights to bf16 ----
    wih_cat = jnp.concatenate(
        [_pad_gate_cols(params["wih_f"], H, Hp),
         _pad_gate_cols(params["wih_b"], H, Hp)], axis=1).astype(jnp.bfloat16)
    whh_f = _pad_gate_mat(params["whh_f"], H, Hp)               # (Hp, 4Hp) f32
    whh_b = _pad_gate_mat(params["whh_b"], H, Hp)
    fusion_w = params["fusion_w"].astype(jnp.bfloat16)

    # ---- Stage 1: LayerNorm + Linear + ReLU + hoisted x @ [Wih_f | Wih_b] ----
    x = x_tm.reshape(T_pad * B, A)
    N = x.shape[0]
    tm = _round_up(min(fusion_tile, _round_up(N, 16)), 16)      # 16: bf16 sublane tile
    N_pad = _round_up(N, tm)
    if N_pad != N:
        x = jnp.pad(x, ((0, N_pad - N), (0, 0)))
    gx = fused_gates(x, params["ln_gamma"], params["ln_beta"], fusion_w,
                     params["fusion_b"], wih_cat, tm=tm)        # (N_pad, 8Hp) bf16
    gx = gx[:N].reshape(T_pad, B, 8 * Hp)                       # no transpose needed

    # ---- Stage 2: fused-direction LSTM recurrence (h @ Whh + gates only) ----
    lens2 = lengths.astype(jnp.int32).reshape(B, 1)
    out_f, out_b = bilstm(gx, lens2, whh_f, whh_b, tc=tc)       # each (T_pad, B, Hp)

    # ---- pad_packed_sequence(batch_first=True): (B, max_len, 2H), fwd||bwd ----
    # Single XLA pass fuses the Hp->H slice, fwd/bwd concat and (T,B)->(B,T) copy.
    # TODO(synk): at production sizes also pad A/L to multiples of 128 for clean MXU mapping.
    out = jnp.concatenate([out_f[:max_len, :, :H], out_b[:max_len, :, :H]], axis=-1)
    return jnp.transpose(out, (1, 0, 2))


# ----------------------------------------------------------------------------
# Deterministic parameter initialization (shapes follow the nn.Module __init__)
# ----------------------------------------------------------------------------
def init_params(key, audio_size, lstm_input_size, hidden_size):
    ks = jax.random.split(key, 8)
    s = 0.1
    return {
        # nn.LayerNorm(audio_size)
        "ln_gamma": 1.0 + s * jax.random.normal(ks[0], (audio_size,), jnp.float32),
        "ln_beta": s * jax.random.normal(ks[1], (audio_size,), jnp.float32),
        # nn.Linear(audio_size, lstm_input_size)  (stored transposed: (A, L))
        "fusion_w": s * jax.random.normal(ks[2], (audio_size, lstm_input_size), jnp.float32),
        "fusion_b": s * jax.random.normal(ks[3], (lstm_input_size,), jnp.float32),
        # nn.LSTM(lstm_input_size, hidden_size, 1, bias=False, bidirectional=True)
        # gate order i,f,g,o ; stored transposed for right-multiplication
        "wih_f": s * jax.random.normal(ks[4], (lstm_input_size, 4 * hidden_size), jnp.float32),
        "whh_f": s * jax.random.normal(ks[5], (hidden_size, 4 * hidden_size), jnp.float32),
        "wih_b": s * jax.random.normal(ks[6], (lstm_input_size, 4 * hidden_size), jnp.float32),
        "whh_b": s * jax.random.normal(ks[7], (hidden_size, 4 * hidden_size), jnp.float32),
    }


# ----------------------------------------------------------------------------
# Pure NumPy reference (mirrors the PyTorch module's forward semantics)
# ----------------------------------------------------------------------------
def reference_forward(audio, lengths_list, params, max_len):
    audio = np.asarray(audio, np.float32)
    B, T, _ = audio.shape
    g = np.asarray(params["ln_gamma"]); be = np.asarray(params["ln_beta"])
    W = np.asarray(params["fusion_w"]); bb = np.asarray(params["fusion_b"])
    wih_f = np.asarray(params["wih_f"]); whh_f = np.asarray(params["whh_f"])
    wih_b = np.asarray(params["wih_b"]); whh_b = np.asarray(params["whh_b"])
    H = whh_f.shape[0]

    mean = audio.mean(-1, keepdims=True)
    var = ((audio - mean) ** 2).mean(-1, keepdims=True)
    xn = (audio - mean) / np.sqrt(var + 1e-5) * g + be
    fused = np.maximum(xn @ W + bb, 0.0)

    def sig(v):
        return 1.0 / (1.0 + np.exp(-v))

    out = np.zeros((B, T, 2 * H), np.float32)
    for b in range(B):
        ln = int(lengths_list[b])
        h = np.zeros(H, np.float32); c = np.zeros(H, np.float32)
        for t in range(ln):                       # forward direction
            gg = fused[b, t] @ wih_f + h @ whh_f
            i, f, gc, o = sig(gg[:H]), sig(gg[H:2*H]), np.tanh(gg[2*H:3*H]), sig(gg[3*H:])
            c = f * c + i * gc
            h = o * np.tanh(c)
            out[b, t, :H] = h
        h = np.zeros(H, np.float32); c = np.zeros(H, np.float32)
        for t in range(ln - 1, -1, -1):           # backward direction
            gg = fused[b, t] @ wih_b + h @ whh_b
            i, f, gc, o = sig(gg[:H]), sig(gg[H:2*H]), np.tanh(gg[2*H:3*H]), sig(gg[3*H:])
            c = f * c + i * gc
            h = o * np.tanh(c)
            out[b, t, H:] = h
    return out[:, :max_len]


if __name__ == "__main__":
    # Small shapes: batch=2, seq=12, audio_size=32, lstm_input_size=32, hidden=16.
    # Small tiles (time_chunk=8, fusion_tile=16) exercise multi-chunk / multi-tile
    # grids including the reversed-chunk backward path.
    B, T, A, L, H = 2, 12, 32, 32, 16
    key = jax.random.PRNGKey(0)
    k_audio, k_params = jax.random.split(key)

    audio = jax.random.normal(k_audio, (B, T, A), jnp.float32)
    lengths_list = [12, 7]                   # host-side lengths (as .cpu().tolist())
    lengths = jnp.array(lengths_list, dtype=jnp.int32)
    params = init_params(k_params, A, L, H)
    max_len = max(lengths_list)

    fwd = jax.jit(functools.partial(audio_to_face_forward, max_len=max_len,
                                    time_chunk=8, fusion_tile=16))
    out = jax.block_until_ready(fwd(audio, lengths, params))

    assert out.shape == (B, max_len, 2 * H), out.shape
    # padded positions must be exactly zero (pad_packed_sequence semantics)
    assert float(jnp.abs(out[1, lengths_list[1]:, :]).max()) == 0.0

    ref = reference_forward(audio, lengths_list, params, max_len)
    max_err = float(np.max(np.abs(np.asarray(out) - ref)))
    # bf16 stage-1 matmuls + bf16 gate storage set the tolerance (h/c stay f32)
    assert max_err < 2e-2, f"max abs error vs reference: {max_err}"

    print("KERNEL_OK")
</pallas_src>

<mosaic_0001>
module attributes {stable_mosaic.version = 11 : i64} {
  func.func @fusion_kernel(%arg0: i32, %arg1: memref<16x32xf32, #tpu.memory_space<vmem>>, %arg2: memref<1x32xf32, #tpu.memory_space<vmem>>, %arg3: memref<1x32xf32, #tpu.memory_space<vmem>>, %arg4: memref<32x32xbf16, #tpu.memory_space<vmem>>, %arg5: memref<1x32xf32, #tpu.memory_space<vmem>>, %arg6: memref<32x1024xbf16, #tpu.memory_space<vmem>>, %arg7: memref<16x1024xbf16, #tpu.memory_space<vmem>>) attributes {dimension_semantics = [#tpu.dimension_semantics<parallel>], iteration_bounds = array<i64: 2>, scalar_prefetch = 0 : i64, scratch_operands = 0 : i64, tpu.core_type = #tpu.core_type<tc>, window_params = [{transform_indices = @transform_0, window_bounds = array<i64: 16, 32>}, {pipeline_mode = #tpu.pipeline_mode<synchronous>, transform_indices = @transform_1, window_bounds = array<i64: 1, 32>}, {pipeline_mode = #tpu.pipeline_mode<synchronous>, transform_indices = @transform_2, window_bounds = array<i64: 1, 32>}, {pipeline_mode = #tpu.pipeline_mode<synchronous>, transform_indices = @transform_3, window_bounds = array<i64: 32, 32>}, {pipeline_mode = #tpu.pipeline_mode<synchronous>, transform_indices = @transform_4, window_bounds = array<i64: 1, 32>}, {pipeline_mode = #tpu.pipeline_mode<synchronous>, transform_indices = @transform_5, window_bounds = array<i64: 32, 1024>}, {transform_indices = @transform_6, window_bounds = array<i64: 16, 1024>}]} {
    %c0 = arith.constant 0 : index
    %c0_0 = arith.constant 0 : index
    %0 = vector.load %arg1[%c0, %c0_0] : memref<16x32xf32, #tpu.memory_space<vmem>>, vector<16x32xf32>
    %cst = arith.constant dense<0.000000e+00> : vector<16xf32>
    %1 = vector.multi_reduction <add>, %0, %cst [1] : vector<16x32xf32> to vector<16xf32>
    %2 = vector.shape_cast %1 : vector<16xf32> to vector<16x1xf32>
    %cst_1 = arith.constant 3.200000e+01 : f32
    %3 = vector.broadcast %cst_1 : f32 to vector<16x1xf32>
    %4 = arith.divf %2, %3 : vector<16x1xf32>
    %5 = arith.mulf %0, %0 : vector<16x32xf32>
    %cst_2 = arith.constant dense<0.000000e+00> : vector<16xf32>
    %6 = vector.multi_reduction <add>, %5, %cst_2 [1] : vector<16x32xf32> to vector<16xf32>
    %7 = vector.shape_cast %6 : vector<16xf32> to vector<16x1xf32>
    %cst_3 = arith.constant 3.200000e+01 : f32
    %8 = vector.broadcast %cst_3 : f32 to vector<16x1xf32>
    %9 = arith.divf %7, %8 : vector<16x1xf32>
    %10 = arith.mulf %4, %4 : vector<16x1xf32>
    %11 = arith.subf %9, %10 : vector<16x1xf32>
    %12 = vector.broadcast %4 : vector<16x1xf32> to vector<16x32xf32>
    %13 = arith.subf %0, %12 : vector<16x32xf32>
    %cst_4 = arith.constant 9.99999974E-6 : f32
    %14 = vector.broadcast %cst_4 : f32 to vector<16x1xf32>
    %15 = arith.addf %11, %14 : vector<16x1xf32>
    %16 = math.rsqrt %15 : vector<16x1xf32>
    %17 = vector.broadcast %16 : vector<16x1xf32> to vector<16x32xf32>
    %18 = arith.mulf %13, %17 : vector<16x32xf32>
    %c0_5 = arith.constant 0 : index
    %c0_6 = arith.constant 0 : index
    %19 = vector.load %arg2[%c0_5, %c0_6] : memref<1x32xf32, #tpu.memory_space<vmem>>, vector<1x32xf32>
    %20 = vector.broadcast %19 : vector<1x32xf32> to vector<16x32xf32>
    %21 = arith.mulf %18, %20 : vector<16x32xf32>
    %c0_7 = arith.constant 0 : index
    %c0_8 = arith.constant 0 : index
    %22 = vector.load %arg3[%c0_7, %c0_8] : memref<1x32xf32, #tpu.memory_space<vmem>>, vector<1x32xf32>
    %23 = vector.broadcast %22 : vector<1x32xf32> to vector<16x32xf32>
    %24 = arith.addf %21, %23 : vector<16x32xf32>
    %25 = arith.truncf %24 : vector<16x32xf32> to vector<16x32xbf16>
    %c0_9 = arith.constant 0 : index
    %c0_10 = arith.constant 0 : index
    %26 = vector.load %arg4[%c0_9, %c0_10] : memref<32x32xbf16, #tpu.memory_space<vmem>>, vector<32x32xbf16>
    %cst_11 = arith.constant dense<0.000000e+00> : vector<16x32xf32>
    %27 = tpu.matmul %25, %26, %cst_11 {dimension_numbers = #tpu.dot_dimension_numbers<[1], [0], [0], [1], [0, 0, 1, 1], [], []>} : vector<16x32xbf16>, vector<32x32xbf16>, vector<16x32xf32> -> vector<16x32xf32>
    %c0_12 = arith.constant 0 : index
    %c0_13 = arith.constant 0 : index
    %28 = vector.load %arg5[%c0_12, %c0_13] : memref<1x32xf32, #tpu.memory_space<vmem>>, vector<1x32xf32>
    %29 = vector.broadcast %28 : vector<1x32xf32> to vector<16x32xf32>
    %30 = arith.addf %27, %29 : vector<16x32xf32>
    %cst_14 = arith.constant 0.000000e+00 : f32
    %31 = vector.broadcast %cst_14 : f32 to vector<16x32xf32>
    %32 = arith.maximumf %30, %31 : vector<16x32xf32>
    %33 = arith.truncf %32 : vector<16x32xf32> to vector<16x32xbf16>
    %c0_15 = arith.constant 0 : index
    %c0_16 = arith.constant 0 : index
    %34 = vector.load %arg6[%c0_15, %c0_16] : memref<32x1024xbf16, #tpu.memory_space<vmem>>, vector<32x1024xbf16>
    %cst_17 = arith.constant dense<0.000000e+00> : vector<16x1024xf32>
    %35 = tpu.matmul %33, %34, %cst_17 {dimension_numbers = #tpu.dot_dimension_numbers<[1], [0], [0], [1], [0, 0, 1, 1], [], []>} : vector<16x32xbf16>, vector<32x1024xbf16>, vector<16x1024xf32> -> vector<16x1024xf32>
    %36 = arith.truncf %35 : vector<16x1024xf32> to vector<16x1024xbf16>
    %c0_18 = arith.constant 0 : index
    %c0_19 = arith.constant 0 : index
    %37 = vector.load %arg7[%c0_18, %c0_19] : memref<16x1024xbf16, #tpu.memory_space<vmem>>, vector<16x1024xbf16>
    tpu.vector_store %arg7[%c0_18, %c0_19], %36 {strides = array<i32>} : memref<16x1024xbf16, #tpu.memory_space<vmem>>, vector<16x1024xbf16>,
    return
  }
  func.func @transform_0(%arg0: i32) -> (i32, i32) {
    %c0_i32 = arith.constant 0 : i32
    %c0_i32_0 = arith.constant 0 : i32
    return %arg0, %c0_i32 : i32, i32
  }
  func.func @transform_1(%arg0: i32) -> (i32, i32) {
    %c0_i32 = arith.constant 0 : i32
    %c0_i32_0 = arith.constant 0 : i32
    %c0_i32_1 = arith.constant 0 : i32
    return %c0_i32, %c0_i32_0 : i32, i32
  }
  func.func @transform_2(%arg0: i32) -> (i32, i32) {
    %c0_i32 = arith.constant 0 : i32
    %c0_i32_0 = arith.constant 0 : i32
    %c0_i32_1 = arith.constant 0 : i32
    return %c0_i32, %c0_i32_0 : i32, i32
  }
  func.func @transform_3(%arg0: i32) -> (i32, i32) {
    %c0_i32 = arith.constant 0 : i32
    %c0_i32_0 = arith.constant 0 : i32
    %c0_i32_1 = arith.constant 0 : i32
    return %c0_i32, %c0_i32_0 : i32, i32
  }
  func.func @transform_4(%arg0: i32) -> (i32, i32) {
    %c0_i32 = arith.constant 0 : i32
    %c0_i32_0 = arith.constant 0 : i32
    %c0_i32_1 = arith.constant 0 : i32
    return %c0_i32, %c0_i32_0 : i32, i32
  }
  func.func @transform_5(%arg0: i32) -> (i32, i32) {
    %c0_i32 = arith.constant 0 : i32
    %c0_i32_0 = arith.constant 0 : i32
    %c0_i32_1 = arith.constant 0 : i32
    return %c0_i32, %c0_i32_0 : i32, i32
  }
  func.func @transform_6(%arg0: i32) -> (i32, i32) {
    %c0_i32 = arith.constant 0 : i32
    %c0_i32_0 = arith.constant 0 : i32
    return %arg0, %c0_i32 : i32, i32
  }
}

module attributes {stable_mosaic.version = 11 : i64} {
  func.func @bilstm_kernel(%arg0: i32, %arg1: memref<2x1xi32, #tpu.memory_space<vmem>>, %arg2: memref<8x2x512xbf16, #tpu.memory_space<vmem>>, %arg3: memref<8x2x512xbf16, #tpu.memory_space<vmem>>, %arg4: memref<128x512xf32, #tpu.memory_space<vmem>>, %arg5: memref<128x512xf32, #tpu.memory_space<vmem>>, %arg6: memref<8x2x128xf32, #tpu.memory_space<vmem>>, %arg7: memref<8x2x128xf32, #tpu.memory_space<vmem>>, %arg8: memref<2x128xf32, #tpu.memory_space<vmem>>, %arg9: memref<2x128xf32, #tpu.memory_space<vmem>>, %arg10: memref<2x128xf32, #tpu.memory_space<vmem>>, %arg11: memref<2x128xf32, #tpu.memory_space<vmem>>) attributes {dimension_semantics = [#tpu.dimension_semantics<arbitrary>], iteration_bounds = array<i64: 2>, scalar_prefetch = 0 : i64, scratch_operands = 4 : i64, tpu.core_type = #tpu.core_type<tc>, window_params = [{pipeline_mode = #tpu.pipeline_mode<synchronous>, transform_indices = @transform_0, window_bounds = array<i64: 2, 1>}, {transform_indices = @transform_1, window_bounds = array<i64: 8, 2, 512>}, {transform_indices = @transform_2, window_bounds = array<i64: 8, 2, 512>}, {pipeline_mode = #tpu.pipeline_mode<synchronous>, transform_indices = @transform_3, window_bounds = array<i64: 128, 512>}, {pipeline_mode = #tpu.pipeline_mode<synchronous>, transform_indices = @transform_4, window_bounds = array<i64: 128, 512>}, {transform_indices = @transform_5, window_bounds = array<i64: 8, 2, 128>}, {transform_indices = @transform_6, window_bounds = array<i64: 8, 2, 128>}]} {
    %c0_i32 = arith.constant 0 : i32
    %0 = arith.cmpi eq, %arg0, %c0_i32 : i32
    %1 = arith.extui %0 : i1 to i32
    %c0_i32_0 = arith.constant 0 : i32
    %2 = arith.cmpi ne, %1, %c0_i32_0 : i32
    scf.if %2 {
      %cst_177 = arith.constant 0.000000e+00 : f32
      %699 = vector.broadcast %cst_177 : f32 to vector<2x128xf32>
      %c0_178 = arith.constant 0 : index
      %c0_179 = arith.constant 0 : index
      %700 = vector.load %arg8[%c0_178, %c0_179] : memref<2x128xf32, #tpu.memory_space<vmem>>, vector<2x128xf32>
      tpu.vector_store %arg8[%c0_178, %c0_179], %699 {strides = array<i32>} : memref<2x128xf32, #tpu.memory_space<vmem>>, vector<2x128xf32>,
      %cst_180 = arith.constant 0.000000e+00 : f32
      %701 = vector.broadcast %cst_180 : f32 to vector<2x128xf32>
      %c0_181 = arith.constant 0 : index
      %c0_182 = arith.constant 0 : index
      %702 = vector.load %arg9[%c0_181, %c0_182] : memref<2x128xf32, #tpu.memory_space<vmem>>, vector<2x128xf32>
      tpu.vector_store %arg9[%c0_181, %c0_182], %701 {strides = array<i32>} : memref<2x128xf32, #tpu.memory_space<vmem>>, vector<2x128xf32>,
      %cst_183 = arith.constant 0.000000e+00 : f32
      %703 = vector.broadcast %cst_183 : f32 to vector<2x128xf32>
      %c0_184 = arith.constant 0 : index
      %c0_185 = arith.constant 0 : index
      %704 = vector.load %arg10[%c0_184, %c0_185] : memref<2x128xf32, #tpu.memory_space<vmem>>, vector<2x128xf32>
      tpu.vector_store %arg10[%c0_184, %c0_185], %703 {strides = array<i32>} : memref<2x128xf32, #tpu.memory_space<vmem>>, vector<2x128xf32>,
      %cst_186 = arith.constant 0.000000e+00 : f32
      %705 = vector.broadcast %cst_186 : f32 to vector<2x128xf32>
      %c0_187 = arith.constant 0 : index
      %c0_188 = arith.constant 0 : index
      %706 = vector.load %arg11[%c0_187, %c0_188] : memref<2x128xf32, #tpu.memory_space<vmem>>, vector<2x128xf32>
      tpu.vector_store %arg11[%c0_187, %c0_188], %705 {strides = array<i32>} : memref<2x128xf32, #tpu.memory_space<vmem>>, vector<2x128xf32>,
    } else {
    }
    %c0 = arith.constant 0 : index
    %c0_1 = arith.constant 0 : index
    %3 = vector.load %arg4[%c0, %c0_1] : memref<128x512xf32, #tpu.memory_space<vmem>>, vector<128x512xf32>
    %c0_2 = arith.constant 0 : index
    %c0_3 = arith.constant 0 : index
    %4 = vector.load %arg5[%c0_2, %c0_3] : memref<128x512xf32, #tpu.memory_space<vmem>>, vector<128x512xf32>
    %c0_4 = arith.constant 0 : index
    %c0_5 = arith.constant 0 : index
    %5 = vector.load %arg1[%c0_4, %c0_5] : memref<2x1xi32, #tpu.memory_space<vmem>>, vector<2x1xi32>
    %6 = vector.shape_cast %5 : vector<2x1xi32> to vector<2x1xi32>
    %7 = vector.broadcast %6 : vector<2x1xi32> to vector<2x128xi32>
    %c8_i32 = arith.constant 8 : i32
    %8 = arith.muli %arg0, %c8_i32 : i32
    %c1_i32 = arith.constant 1 : i32
    %9 = arith.subi %c1_i32, %arg0 : i32
    %c8_i32_6 = arith.constant 8 : i32
    %10 = arith.muli %9, %c8_i32_6 : i32
    %c0_7 = arith.constant 0 : index
    %c0_8 = arith.constant 0 : index
    %11 = vector.load %arg8[%c0_7, %c0_8] : memref<2x128xf32, #tpu.memory_space<vmem>>, vector<2x128xf32>
    %c0_9 = arith.constant 0 : index
    %c0_10 = arith.constant 0 : index
    %12 = vector.load %arg9[%c0_9, %c0_10] : memref<2x128xf32, #tpu.memory_space<vmem>>, vector<2x128xf32>
    %c0_11 = arith.constant 0 : index
    %c0_12 = arith.constant 0 : index
    %13 = vector.load %arg10[%c0_11, %c0_12] : memref<2x128xf32, #tpu.memory_space<vmem>>, vector<2x128xf32>
    %c0_13 = arith.constant 0 : index
    %c0_14 = arith.constant 0 : index
    %14 = vector.load %arg11[%c0_13, %c0_14] : memref<2x128xf32, #tpu.memory_space<vmem>>, vector<2x128xf32>
    %c0_i32_15 = arith.constant 0 : i32
    %c7_i32 = arith.constant 7 : i32
    %15 = arith.subi %c7_i32, %c0_i32_15 : i32
    %16 = arith.index_cast %c0_i32_15 : i32 to index
    %c0_16 = arith.constant 0 : index
    %c0_17 = arith.constant 0 : index
    %17 = vector.load %arg2[%16, %c0_16, %c0_17] : memref<8x2x512xbf16, #tpu.memory_space<vmem>>, vector<1x2x512xbf16>
    %18 = vector.shape_cast %17 : vector<1x2x512xbf16> to vector<2x512xbf16>
    %19 = arith.extf %18 : vector<2x512xbf16> to vector<2x512xf32>
    %cst = arith.constant dense<0.000000e+00> : vector<2x512xf32>
    %20 = tpu.matmul %11, %3, %cst {dimension_numbers = #tpu.dot_dimension_numbers<[1], [0], [0], [1], [0, 0, 1, 1], [], []>} : vector<2x128xf32>, vector<128x512xf32>, vector<2x512xf32> -> vector<2x512xf32>
    %21 = arith.addf %19, %20 : vector<2x512xf32>
    %22 = vector.extract_strided_slice %21 {offsets = [0, 0], sizes = [2, 128], strides = [1, 1]} : vector<2x512xf32> to vector<2x128xf32>
    %23 = arith.negf %22 : vector<2x128xf32>
    %24 = math.exp %23 : vector<2x128xf32>
    %cst_18 = arith.constant 1.000000e+00 : f32
    %25 = vector.broadcast %cst_18 : f32 to vector<2x128xf32>
    %26 = arith.addf %25, %24 : vector<2x128xf32>
    %27 = arith.divf %25, %26 : vector<2x128xf32>
    %28 = vector.extract_strided_slice %21 {offsets = [0, 128], sizes = [2, 128], strides = [1, 1]} : vector<2x512xf32> to vector<2x128xf32>
    %29 = arith.negf %28 : vector<2x128xf32>
    %30 = math.exp %29 : vector<2x128xf32>
    %cst_19 = arith.constant 1.000000e+00 : f32
    %31 = vector.broadcast %cst_19 : f32 to vector<2x128xf32>
    %32 = arith.addf %31, %30 : vector<2x128xf32>
    %33 = arith.divf %31, %32 : vector<2x128xf32>
    %34 = vector.extract_strided_slice %21 {offsets = [0, 256], sizes = [2, 128], strides = [1, 1]} : vector<2x512xf32> to vector<2x128xf32>
    %35 = math.tanh %34 : vector<2x128xf32>
    %36 = vector.extract_strided_slice %21 {offsets = [0, 384], sizes = [2, 128], strides = [1, 1]} : vector<2x512xf32> to vector<2x128xf32>
    %37 = arith.negf %36 : vector<2x128xf32>
    %38 = math.exp %37 : vector<2x128xf32>
    %cst_20 = arith.constant 1.000000e+00 : f32
    %39 = vector.broadcast %cst_20 : f32 to vector<2x128xf32>
    %40 = arith.addf %39, %38 : vector<2x128xf32>
    %41 = arith.divf %39, %40 : vector<2x128xf32>
    %42 = arith.mulf %33, %12 : vector<2x128xf32>
    %43 = arith.mulf %27, %35 : vector<2x128xf32>
    %44 = arith.addf %42, %43 : vector<2x128xf32>
    %45 = math.tanh %44 : vector<2x128xf32>
    %46 = arith.mulf %41, %45 : vector<2x128xf32>
    %47 = arith.index_cast %15 : i32 to index
    %c0_21 = arith.constant 0 : index
    %c0_22 = arith.constant 0 : index
    %48 = vector.load %arg3[%47, %c0_21, %c0_22] : memref<8x2x512xbf16, #tpu.memory_space<vmem>>, vector<1x2x512xbf16>
    %49 = vector.shape_cast %48 : vector<1x2x512xbf16> to vector<2x512xbf16>
    %50 = arith.extf %49 : vector<2x512xbf16> to vector<2x512xf32>
    %cst_23 = arith.constant dense<0.000000e+00> : vector<2x512xf32>
    %51 = tpu.matmul %13, %4, %cst_23 {dimension_numbers = #tpu.dot_dimension_numbers<[1], [0], [0], [1], [0, 0, 1, 1], [], []>} : vector<2x128xf32>, vector<128x512xf32>, vector<2x512xf32> -> vector<2x512xf32>
    %52 = arith.addf %50, %51 : vector<2x512xf32>
    %53 = vector.extract_strided_slice %52 {offsets = [0, 0], sizes = [2, 128], strides = [1, 1]} : vector<2x512xf32> to vector<2x128xf32>
    %54 = arith.negf %53 : vector<2x128xf32>
    %55 = math.exp %54 : vector<2x128xf32>
    %cst_24 = arith.constant 1.000000e+00 : f32
    %56 = vector.broadcast %cst_24 : f32 to vector<2x128xf32>
    %57 = arith.addf %56, %55 : vector<2x128xf32>
    %58 = arith.divf %56, %57 : vector<2x128xf32>
    %59 = vector.extract_strided_slice %52 {offsets = [0, 128], sizes = [2, 128], strides = [1, 1]} : vector<2x512xf32> to vector<2x128xf32>
    %60 = arith.negf %59 : vector<2x128xf32>
    %61 = math.exp %60 : vector<2x128xf32>
    %cst_25 = arith.constant 1.000000e+00 : f32
    %62 = vector.broadcast %cst_25 : f32 to vector<2x128xf32>
    %63 = arith.addf %62, %61 : vector<2x128xf32>
    %64 = arith.divf %62, %63 : vector<2x128xf32>
    %65 = vector.extract_strided_slice %52 {offsets = [0, 256], sizes = [2, 128], strides = [1, 1]} : vector<2x512xf32> to vector<2x128xf32>
    %66 = math.tanh %65 : vector<2x128xf32>
    %67 = vector.extract_strided_slice %52 {offsets = [0, 384], sizes = [2, 128], strides = [1, 1]} : vector<2x512xf32> to vector<2x128xf32>
    %68 = arith.negf %67 : vector<2x128xf32>
    %69 = math.exp %68 : vector<2x128xf32>
    %cst_26 = arith.constant 1.000000e+00 : f32
    %70 = vector.broadcast %cst_26 : f32 to vector<2x128xf32>
    %71 = arith.addf %70, %69 : vector<2x128xf32>
    %72 = arith.divf %70, %71 : vector<2x128xf32>
    %73 = arith.mulf %64, %14 : vector<2x128xf32>
    %74 = arith.mulf %58, %66 : vector<2x128xf32>
    %75 = arith.addf %73, %74 : vector<2x128xf32>
    %76 = math.tanh %75 : vector<2x128xf32>
    %77 = arith.mulf %72, %76 : vector<2x128xf32>
    %78 = arith.addi %8, %c0_i32_15 : i32
    %79 = vector.broadcast %78 : i32 to vector<2x128xi32>
    %80 = arith.cmpi slt, %79, %7 : vector<2x128xi32>
    %81 = arith.addi %10, %15 : i32
    %82 = vector.broadcast %81 : i32 to vector<2x128xi32>
    %83 = arith.cmpi slt, %82, %7 : vector<2x128xi32>
    %84 = arith.select %80, %46, %11 : vector<2x128xi1>, vector<2x128xf32>
    %85 = arith.select %80, %44, %12 : vector<2x128xi1>, vector<2x128xf32>
    %86 = arith.select %83, %77, %13 : vector<2x128xi1>, vector<2x128xf32>
    %87 = arith.select %83, %75, %14 : vector<2x128xi1>, vector<2x128xf32>
    %cst_27 = arith.constant 0.000000e+00 : f32
    %88 = vector.broadcast %cst_27 : f32 to vector<2x128xf32>
    %89 = arith.select %80, %46, %88 : vector<2x128xi1>, vector<2x128xf32>
    %90 = arith.index_cast %c0_i32_15 : i32 to index
    %c0_28 = arith.constant 0 : index
    %c0_29 = arith.constant 0 : index
    %91 = vector.load %arg6[%90, %c0_28, %c0_29] : memref<8x2x128xf32, #tpu.memory_space<vmem>>, vector<1x2x128xf32>
    %92 = vector.shape_cast %91 : vector<1x2x128xf32> to vector<2x128xf32>
    %93 = vector.shape_cast %89 : vector<2x128xf32> to vector<1x2x128xf32>
    tpu.vector_store %arg6[%90, %c0_28, %c0_29], %93 {strides = array<i32>} : memref<8x2x128xf32, #tpu.memory_space<vmem>>, vector<1x2x128xf32>,
    %cst_30 = arith.constant 0.000000e+00 : f32
    %94 = vector.broadcast %cst_30 : f32 to vector<2x128xf32>
    %95 = arith.select %83, %77, %94 : vector<2x128xi1>, vector<2x128xf32>
    %96 = arith.index_cast %15 : i32 to index
    %c0_31 = arith.constant 0 : index
    %c0_32 = arith.constant 0 : index
    %97 = vector.load %arg7[%96, %c0_31, %c0_32] : memref<8x2x128xf32, #tpu.memory_space<vmem>>, vector<1x2x128xf32>
    %98 = vector.shape_cast %97 : vector<1x2x128xf32> to vector<2x128xf32>
    %99 = vector.shape_cast %95 : vector<2x128xf32> to vector<1x2x128xf32>
    tpu.vector_store %arg7[%96, %c0_31, %c0_32], %99 {strides = array<i32>} : memref<8x2x128xf32, #tpu.memory_space<vmem>>, vector<1x2x128xf32>,
    %c1_i32_33 = arith.constant 1 : i32
    %c7_i32_34 = arith.constant 7 : i32
    %100 = arith.subi %c7_i32_34, %c1_i32_33 : i32
    %101 = arith.index_cast %c1_i32_33 : i32 to index
    %c0_35 = arith.constant 0 : index
    %c0_36 = arith.constant 0 : index
    %102 = vector.load %arg2[%101, %c0_35, %c0_36] : memref<8x2x512xbf16, #tpu.memory_space<vmem>>, vector<1x2x512xbf16>
    %103 = vector.shape_cast %102 : vector<1x2x512xbf16> to vector<2x512xbf16>
    %104 = arith.extf %103 : vector<2x512xbf16> to vector<2x512xf32>
    %cst_37 = arith.constant dense<0.000000e+00> : vector<2x512xf32>
    %105 = tpu.matmul %84, %3, %cst_37 {dimension_numbers = #tpu.dot_dimension_numbers<[1], [0], [0], [1], [0, 0, 1, 1], [], []>} : vector<2x128xf32>, vector<128x512xf32>, vector<2x512xf32> -> vector<2x512xf32>
    %106 = arith.addf %104, %105 : vector<2x512xf32>
    %107 = vector.extract_strided_slice %106 {offsets = [0, 0], sizes = [2, 128], strides = [1, 1]} : vector<2x512xf32> to vector<2x128xf32>
    %108 = arith.negf %107 : vector<2x128xf32>
    %109 = math.exp %108 : vector<2x128xf32>
    %cst_38 = arith.constant 1.000000e+00 : f32
    %110 = vector.broadcast %cst_38 : f32 to vector<2x128xf32>
    %111 = arith.addf %110, %109 : vector<2x128xf32>
    %112 = arith.divf %110, %111 : vector<2x128xf32>
    %113 = vector.extract_strided_slice %106 {offsets = [0, 128], sizes = [2, 128], strides = [1, 1]} : vector<2x512xf32> to vector<2x128xf32>
    %114 = arith.negf %113 : vector<2x128xf32>
    %115 = math.exp %114 : vector<2x128xf32>
    %cst_39 = arith.constant 1.000000e+00 : f32
    %116 = vector.broadcast %cst_39 : f32 to vector<2x128xf32>
    %117 = arith.addf %116, %115 : vector<2x128xf32>
    %118 = arith.divf %116, %117 : vector<2x128xf32>
    %119 = vector.extract_strided_slice %106 {offsets = [0, 256], sizes = [2, 128], strides = [1, 1]} : vector<2x512xf32> to vector<2x128xf32>
    %120 = math.tanh %119 : vector<2x128xf32>
    %121 = vector.extract_strided_slice %106 {offsets = [0, 384], sizes = [2, 128], strides = [1, 1]} : vector<2x512xf32> to vector<2x128xf32>
    %122 = arith.negf %121 : vector<2x128xf32>
    %123 = math.exp %122 : vector<2x128xf32>
    %cst_40 = arith.constant 1.000000e+00 : f32
    %124 = vector.broadcast %cst_40 : f32 to vector<2x128xf32>
    %125 = arith.addf %124, %123 : vector<2x128xf32>
    %126 = arith.divf %124, %125 : vector<2x128xf32>
    %127 = arith.mulf %118, %85 : vector<2x128xf32>
    %128 = arith.mulf %112, %120 : vector<2x128xf32>
    %129 = arith.addf %127, %128 : vector<2x128xf32>
    %130 = math.tanh %129 : vector<2x128xf32>
    %131 = arith.mulf %126, %130 : vector<2x128xf32>
    %132 = arith.index_cast %100 : i32 to index
    %c0_41 = arith.constant 0 : index
    %c0_42 = arith.constant 0 : index
    %133 = vector.load %arg3[%132, %c0_41, %c0_42] : memref<8x2x512xbf16, #tpu.memory_space<vmem>>, vector<1x2x512xbf16>
    %134 = vector.shape_cast %133 : vector<1x2x512xbf16> to vector<2x512xbf16>
    %135 = arith.extf %134 : vector<2x512xbf16> to vector<2x512xf32>
    %cst_43 = arith.constant dense<0.000000e+00> : vector<2x512xf32>
    %136 = tpu.matmul %86, %4, %cst_43 {dimension_numbers = #tpu.dot_dimension_numbers<[1], [0], [0], [1], [0, 0, 1, 1], [], []>} : vector<2x128xf32>, vector<128x512xf32>, vector<2x512xf32> -> vector<2x512xf32>
    %137 = arith.addf %135, %136 : vector<2x512xf32>
    %138 = vector.extract_strided_slice %137 {offsets = [0, 0], sizes = [2, 128], strides = [1, 1]} : vector<2x512xf32> to vector<2x128xf32>
    %139 = arith.negf %138 : vector<2x128xf32>
    %140 = math.exp %139 : vector<2x128xf32>
    %cst_44 = arith.constant 1.000000e+00 : f32
    %141 = vector.broadcast %cst_44 : f32 to vector<2x128xf32>
    %142 = arith.addf %141, %140 : vector<2x128xf32>
    %143 = arith.divf %141, %142 : vector<2x128xf32>
    %144 = vector.extract_strided_slice %137 {offsets = [0, 128], sizes = [2, 128], strides = [1, 1]} : vector<2x512xf32> to vector<2x128xf32>
    %145 = arith.negf %144 : vector<2x128xf32>
    %146 = math.exp %145 : vector<2x128xf32>
    %cst_45 = arith.constant 1.000000e+00 : f32
    %147 = vector.broadcast %cst_45 : f32 to vector<2x128xf32>
    %148 = arith.addf %147, %146 : vector<2x128xf32>
    %149 = arith.divf %147, %148 : vector<2x128xf32>
    %150 = vector.extract_strided_slice %137 {offsets = [0, 256], sizes = [2, 128], strides = [1, 1]} : vector<2x512xf32> to vector<2x128xf32>
    %151 = math.tanh %150 : vector<2x128xf32>
    %152 = vector.extract_strided_slice %137 {offsets = [0, 384], sizes = [2, 128], strides = [1, 1]} : vector<2x512xf32> to vector<2x128xf32>
    %153 = arith.negf %152 : vector<2x128xf32>
    %154 = math.exp %153 : vector<2x128xf32>
    %cst_46 = arith.constant 1.000000e+00 : f32
    %155 = vector.broadcast %cst_46 : f32 to vector<2x128xf32>
    %156 = arith.addf %155, %154 : vector<2x128xf32>
    %157 = arith.divf %155, %156 : vector<2x128xf32>
    %158 = arith.mulf %149, %87 : vector<2x128xf32>
    %159 = arith.mulf %143, %151 : vector<2x128xf32>
    %160 = arith.addf %158, %159 : vector<2x128xf32>
    %161 = math.tanh %160 : vector<2x128xf32>
    %162 = arith.mulf %157, %161 : vector<2x128xf32>
    %163 = arith.addi %8, %c1_i32_33 : i32
    %164 = vector.broadcast %163 : i32 to vector<2x128xi32>
    %165 = arith.cmpi slt, %164, %7 : vector<2x128xi32>
    %166 = arith.addi %10, %100 : i32
    %167 = vector.broadcast %166 : i32 to vector<2x128xi32>
    %168 = arith.cmpi slt, %167, %7 : vector<2x128xi32>
    %169 = arith.select %165, %131, %84 : vector<2x128xi1>, vector<2x128xf32>
    %170 = arith.select %165, %129, %85 : vector<2x128xi1>, vector<2x128xf32>
    %171 = arith.select %168, %162, %86 : vector<2x128xi1>, vector<2x128xf32>
    %172 = arith.select %168, %160, %87 : vector<2x128xi1>, vector<2x128xf32>
    %cst_47 = arith.constant 0.000000e+00 : f32
    %173 = vector.broadcast %cst_47 : f32 to vector<2x128xf32>
    %174 = arith.select %165, %131, %173 : vector<2x128xi1>, vector<2x128xf32>
    %175 = arith.index_cast %c1_i32_33 : i32 to index
    %c0_48 = arith.constant 0 : index
    %c0_49 = arith.constant 0 : index
    %176 = vector.load %arg6[%175, %c0_48, %c0_49] : memref<8x2x128xf32, #tpu.memory_space<vmem>>, vector<1x2x128xf32>
    %177 = vector.shape_cast %176 : vector<1x2x128xf32> to vector<2x128xf32>
    %178 = vector.shape_cast %174 : vector<2x128xf32> to vector<1x2x128xf32>
    tpu.vector_store %arg6[%175, %c0_48, %c0_49], %178 {strides = array<i32>} : memref<8x2x128xf32, #tpu.memory_space<vmem>>, vector<1x2x128xf32>,
    %cst_50 = arith.constant 0.000000e+00 : f32
    %179 = vector.broadcast %cst_50 : f32 to vector<2x128xf32>
    %180 = arith.select %168, %162, %179 : vector<2x128xi1>, vector<2x128xf32>
    %181 = arith.index_cast %100 : i32 to index
    %c0_51 = arith.constant 0 : index
    %c0_52 = arith.constant 0 : index
    %182 = vector.load %arg7[%181, %c0_51, %c0_52] : memref<8x2x128xf32, #tpu.memory_space<vmem>>, vector<1x2x128xf32>
    %183 = vector.shape_cast %182 : vector<1x2x128xf32> to vector<2x128xf32>
    %184 = vector.shape_cast %180 : vector<2x128xf32> to vector<1x2x128xf32>
    tpu.vector_store %arg7[%181, %c0_51, %c0_52], %184 {strides = array<i32>} : memref<8x2x128xf32, #tpu.memory_space<vmem>>, vector<1x2x128xf32>,
    %c2_i32 = arith.constant 2 : i32
    %c7_i32_53 = arith.constant 7 : i32
    %185 = arith.subi %c7_i32_53, %c2_i32 : i32
    %186 = arith.index_cast %c2_i32 : i32 to index
    %c0_54 = arith.constant 0 : index
    %c0_55 = arith.constant 0 : index
    %187 = vector.load %arg2[%186, %c0_54, %c0_55] : memref<8x2x512xbf16, #tpu.memory_space<vmem>>, vector<1x2x512xbf16>
    %188 = vector.shape_cast %187 : vector<1x2x512xbf16> to vector<2x512xbf16>
    %189 = arith.extf %188 : vector<2x512xbf16> to vector<2x512xf32>
    %cst_56 = arith.constant dense<0.000000e+00> : vector<2x512xf32>
    %190 = tpu.matmul %169, %3, %cst_56 {dimension_numbers = #tpu.dot_dimension_numbers<[1], [0], [0], [1], [0, 0, 1, 1], [], []>} : vector<2x128xf32>, vector<128x512xf32>, vector<2x512xf32> -> vector<2x512xf32>
    %191 = arith.addf %189, %190 : vector<2x512xf32>
    %192 = vector.extract_strided_slice %191 {offsets = [0, 0], sizes = [2, 128], strides = [1, 1]} : vector<2x512xf32> to vector<2x128xf32>
    %193 = arith.negf %192 : vector<2x128xf32>
    %194 = math.exp %193 : vector<2x128xf32>
    %cst_57 = arith.constant 1.000000e+00 : f32
    %195 = vector.broadcast %cst_57 : f32 to vector<2x128xf32>
    %196 = arith.addf %195, %194 : vector<2x128xf32>
    %197 = arith.divf %195, %196 : vector<2x128xf32>
    %198 = vector.extract_strided_slice %191 {offsets = [0, 128], sizes = [2, 128], strides = [1, 1]} : vector<2x512xf32> to vector<2x128xf32>
    %199 = arith.negf %198 : vector<2x128xf32>
    %200 = math.exp %199 : vector<2x128xf32>
    %cst_58 = arith.constant 1.000000e+00 : f32
    %201 = vector.broadcast %cst_58 : f32 to vector<2x128xf32>
    %202 = arith.addf %201, %200 : vector<2x128xf32>
    %203 = arith.divf %201, %202 : vector<2x128xf32>
    %204 = vector.extract_strided_slice %191 {offsets = [0, 256], sizes = [2, 128], strides = [1, 1]} : vector<2x512xf32> to vector<2x128xf32>
    %205 = math.tanh %204 : vector<2x128xf32>
    %206 = vector.extract_strided_slice %191 {offsets = [0, 384], sizes = [2, 128], strides = [1, 1]} : vector<2x512xf32> to vector<2x128xf32>
    %207 = arith.negf %206 : vector<2x128xf32>
    %208 = math.exp %207 : vector<2x128xf32>
    %cst_59 = arith.constant 1.000000e+00 : f32
    %209 = vector.broadcast %cst_59 : f32 to vector<2x128xf32>
    %210 = arith.addf %209, %208 : vector<2x128xf32>
    %211 = arith.divf %209, %210 : vector<2x128xf32>
    %212 = arith.mulf %203, %170 : vector<2x128xf32>
    %213 = arith.mulf %197, %205 : vector<2x128xf32>
    %214 = arith.addf %212, %213 : vector<2x128xf32>
    %215 = math.tanh %214 : vector<2x128xf32>
    %216 = arith.mulf %211, %215 : vector<2x128xf32>
    %217 = arith.index_cast %185 : i32 to index
    %c0_60 = arith.constant 0 : index
    %c0_61 = arith.constant 0 : index
    %218 = vector.load %arg3[%217, %c0_60, %c0_61] : memref<8x2x512xbf16, #tpu.memory_space<vmem>>, vector<1x2x512xbf16>
    %219 = vector.shape_cast %218 : vector<1x2x512xbf16> to vector<2x512xbf16>
    %220 = arith.extf %219 : vector<2x512xbf16> to vector<2x512xf32>
    %cst_62 = arith.constant dense<0.000000e+00> : vector<2x512xf32>
    %221 = tpu.matmul %171, %4, %cst_62 {dimension_numbers = #tpu.dot_dimension_numbers<[1], [0], [0], [1], [0, 0, 1, 1], [], []>} : vector<2x128xf32>, vector<128x512xf32>, vector<2x512xf32> -> vector<2x512xf32>
    %222 = arith.addf %220, %221 : vector<2x512xf32>
    %223 = vector.extract_strided_slice %222 {offsets = [0, 0], sizes = [2, 128], strides = [1, 1]} : vector<2x512xf32> to vector<2x128xf32>
    %224 = arith.negf %223 : vector<2x128xf32>
    %225 = math.exp %224 : vector<2x128xf32>
    %cst_63 = arith.constant 1.000000e+00 : f32
    %226 = vector.broadcast %cst_63 : f32 to vector<2x128xf32>
    %227 = arith.addf %226, %225 : vector<2x128xf32>
    %228 = arith.divf %226, %227 : vector<2x128xf32>
    %229 = vector.extract_strided_slice %222 {offsets = [0, 128], sizes = [2, 128], strides = [1, 1]} : vector<2x512xf32> to vector<2x128xf32>
    %230 = arith.negf %229 : vector<2x128xf32>
    %231 = math.exp %230 : vector<2x128xf32>
    %cst_64 = arith.constant 1.000000e+00 : f32
    %232 = vector.broadcast %cst_64 : f32 to vector<2x128xf32>
    %233 = arith.addf %232, %231 : vector<2x128xf32>
    %234 = arith.divf %232, %233 : vector<2x128xf32>
    %235 = vector.extract_strided_slice %222 {offsets = [0, 256], sizes = [2, 128], strides = [1, 1]} : vector<2x512xf32> to vector<2x128xf32>
    %236 = math.tanh %235 : vector<2x128xf32>
    %237 = vector.extract_strided_slice %222 {offsets = [0, 384], sizes = [2, 128], strides = [1, 1]} : vector<2x512xf32> to vector<2x128xf32>
    %238 = arith.negf %237 : vector<2x128xf32>
    %239 = math.exp %238 : vector<2x128xf32>
    %cst_65 = arith.constant 1.000000e+00 : f32
    %240 = vector.broadcast %cst_65 : f32 to vector<2x128xf32>
    %241 = arith.addf %240, %239 : vector<2x128xf32>
    %242 = arith.divf %240, %241 : vector<2x128xf32>
    %243 = arith.mulf %234, %172 : vector<2x128xf32>
    %244 = arith.mulf %228, %236 : vector<2x128xf32>
    %245 = arith.addf %243, %244 : vector<2x128xf32>
    %246 = math.tanh %245 : vector<2x128xf32>
    %247 = arith.mulf %242, %246 : vector<2x128xf32>
    %248 = arith.addi %8, %c2_i32 : i32
    %249 = vector.broadcast %248 : i32 to vector<2x128xi32>
    %250 = arith.cmpi slt, %249, %7 : vector<2x128xi32>
    %251 = arith.addi %10, %185 : i32
    %252 = vector.broadcast %251 : i32 to vector<2x128xi32>
    %253 = arith.cmpi slt, %252, %7 : vector<2x128xi32>
    %254 = arith.select %250, %216, %169 : vector<2x128xi1>, vector<2x128xf32>
    %255 = arith.select %250, %214, %170 : vector<2x128xi1>, vector<2x128xf32>
    %256 = arith.select %253, %247, %171 : vector<2x128xi1>, vector<2x128xf32>
    %257 = arith.select %253, %245, %172 : vector<2x128xi1>, vector<2x128xf32>
    %cst_66 = arith.constant 0.000000e+00 : f32
    %258 = vector.broadcast %cst_66 : f32 to vector<2x128xf32>
    %259 = arith.select %250, %216, %258 : vector<2x128xi1>, vector<2x128xf32>
    %260 = arith.index_cast %c2_i32 : i32 to index
    %c0_67 = arith.constant 0 : index
    %c0_68 = arith.constant 0 : index
    %261 = vector.load %arg6[%260, %c0_67, %c0_68] : memref<8x2x128xf32, #tpu.memory_space<vmem>>, vector<1x2x128xf32>
    %262 = vector.shape_cast %261 : vector<1x2x128xf32> to vector<2x128xf32>
    %263 = vector.shape_cast %259 : vector<2x128xf32> to vector<1x2x128xf32>
    tpu.vector_store %arg6[%260, %c0_67, %c0_68], %263 {strides = array<i32>} : memref<8x2x128xf32, #tpu.memory_space<vmem>>, vector<1x2x128xf32>,
    %cst_69 = arith.constant 0.000000e+00 : f32
    %264 = vector.broadcast %cst_69 : f32 to vector<2x128xf32>
    %265 = arith.select %253, %247, %264 : vector<2x128xi1>, vector<2x128xf32>
    %266 = arith.index_cast %185 : i32 to index
    %c0_70 = arith.constant 0 : index
    %c0_71 = arith.constant 0 : index
    %267 = vector.load %arg7[%266, %c0_70, %c0_71] : memref<8x2x128xf32, #tpu.memory_space<vmem>>, vector<1x2x128xf32>
    %268 = vector.shape_cast %267 : vector<1x2x128xf32> to vector<2x128xf32>
    %269 = vector.shape_cast %265 : vector<2x128xf32> to vector<1x2x128xf32>
    tpu.vector_store %arg7[%266, %c0_70, %c0_71], %269 {strides = array<i32>} : memref<8x2x128xf32, #tpu.memory_space<vmem>>, vector<1x2x128xf32>,
    %c3_i32 = arith.constant 3 : i32
    %c7_i32_72 = arith.constant 7 : i32
    %270 = arith.subi %c7_i32_72, %c3_i32 : i32
    %271 = arith.index_cast %c3_i32 : i32 to index
    %c0_73 = arith.constant 0 : index
    %c0_74 = arith.constant 0 : index
    %272 = vector.load %arg2[%271, %c0_73, %c0_74] : memref<8x2x512xbf16, #tpu.memory_space<vmem>>, vector<1x2x512xbf16>
    %273 = vector.shape_cast %272 : vector<1x2x512xbf16> to vector<2x512xbf16>
    %274 = arith.extf %273 : vector<2x512xbf16> to vector<2x512xf32>
    %cst_75 = arith.constant dense<0.000000e+00> : vector<2x512xf32>
    %275 = tpu.matmul %254, %3, %cst_75 {dimension_numbers = #tpu.dot_dimension_numbers<[1], [0], [0], [1], [0, 0, 1, 1], [], []>} : vector<2x128xf32>, vector<128x512xf32>, vector<2x512xf32> -> vector<2x512xf32>
    %276 = arith.addf %274, %275 : vector<2x512xf32>
    %277 = vector.extract_strided_slice %276 {offsets = [0, 0], sizes = [2, 128], strides = [1, 1]} : vector<2x512xf32> to vector<2x128xf32>
    %278 = arith.negf %277 : vector<2x128xf32>
    %279 = math.exp %278 : vector<2x128xf32>
    %cst_76 = arith.constant 1.000000e+00 : f32
    %280 = vector.broadcast %cst_76 : f32 to vector<2x128xf32>
    %281 = arith.addf %280, %279 : vector<2x128xf32>
    %282 = arith.divf %280, %281 : vector<2x128xf32>
    %283 = vector.extract_strided_slice %276 {offsets = [0, 128], sizes = [2, 128], strides = [1, 1]} : vector<2x512xf32> to vector<2x128xf32>
    %284 = arith.negf %283 : vector<2x128xf32>
    %285 = math.exp %284 : vector<2x128xf32>
    %cst_77 = arith.constant 1.000000e+00 : f32
    %286 = vector.broadcast %cst_77 : f32 to vector<2x128xf32>
    %287 = arith.addf %286, %285 : vector<2x128xf32>
    %288 = arith.divf %286, %287 : vector<2x128xf32>
    %289 = vector.extract_strided_slice %276 {offsets = [0, 256], sizes = [2, 128], strides = [1, 1]} : vector<2x512xf32> to vector<2x128xf32>
    %290 = math.tanh %289 : vector<2x128xf32>
    %291 = vector.extract_strided_slice %276 {offsets = [0, 384], sizes = [2, 128], strides = [1, 1]} : vector<2x512xf32> to vector<2x128xf32>
    %292 = arith.negf %291 : vector<2x128xf32>
    %293 = math.exp %292 : vector<2x128xf32>
    %cst_78 = arith.constant 1.000000e+00 : f32
    %294 = vector.broadcast %cst_78 : f32 to vector<2x128xf32>
    %295 = arith.addf %294, %293 : vector<2x128xf32>
    %296 = arith.divf %294, %295 : vector<2x128xf32>
    %297 = arith.mulf %288, %255 : vector<2x128xf32>
    %298 = arith.mulf %282, %290 : vector<2x128xf32>
    %299 = arith.addf %297, %298 : vector<2x128xf32>
    %300 = math.tanh %299 : vector<2x128xf32>
    %301 = arith.mulf %296, %300 : vector<2x128xf32>
    %302 = arith.index_cast %270 : i32 to index
    %c0_79 = arith.constant 0 : index
    %c0_80 = arith.constant 0 : index
    %303 = vector.load %arg3[%302, %c0_79, %c0_80] : memref<8x2x512xbf16, #tpu.memory_space<vmem>>, vector<1x2x512xbf16>
    %304 = vector.shape_cast %303 : vector<1x2x512xbf16> to vector<2x512xbf16>
    %305 = arith.extf %304 : vector<2x512xbf16> to vector<2x512xf32>
    %cst_81 = arith.constant dense<0.000000e+00> : vector<2x512xf32>
    %306 = tpu.matmul %256, %4, %cst_81 {dimension_numbers = #tpu.dot_dimension_numbers<[1], [0], [0], [1], [0, 0, 1, 1], [], []>} : vector<2x128xf32>, vector<128x512xf32>, vector<2x512xf32> -> vector<2x512xf32>
    %307 = arith.addf %305, %306 : vector<2x512xf32>
    %308 = vector.extract_strided_slice %307 {offsets = [0, 0], sizes = [2, 128], strides = [1, 1]} : vector<2x512xf32> to vector<2x128xf32>
    %309 = arith.negf %308 : vector<2x128xf32>
    %310 = math.exp %309 : vector<2x128xf32>
    %cst_82 = arith.constant 1.000000e+00 : f32
    %311 = vector.broadcast %cst_82 : f32 to vector<2x128xf32>
    %312 = arith.addf %311, %310 : vector<2x128xf32>
    %313 = arith.divf %311, %312 : vector<2x128xf32>
    %314 = vector.extract_strided_slice %307 {offsets = [0, 128], sizes = [2, 128], strides = [1, 1]} : vector<2x512xf32> to vector<2x128xf32>
    %315 = arith.negf %314 : vector<2x128xf32>
    %316 = math.exp %315 : vector<2x128xf32>
    %cst_83 = arith.constant 1.000000e+00 : f32
    %317 = vector.broadcast %cst_83 : f32 to vector<2x128xf32>
    %318 = arith.addf %317, %316 : vector<2x128xf32>
    %319 = arith.divf %317, %318 : vector<2x128xf32>
    %320 = vector.extract_strided_slice %307 {offsets = [0, 256], sizes = [2, 128], strides = [1, 1]} : vector<2x512xf32> to vector<2x128xf32>
    %321 = math.tanh %320 : vector<2x128xf32>
    %322 = vector.extract_strided_slice %307 {offsets = [0, 384], sizes = [2, 128], strides = [1, 1]} : vector<2x512xf32> to vector<2x128xf32>
    %323 = arith.negf %322 : vector<2x128xf32>
    %324 = math.exp %323 : vector<2x128xf32>
    %cst_84 = arith.constant 1.000000e+00 : f32
    %325 = vector.broadcast %cst_84 : f32 to vector<2x128xf32>
    %326 = arith.addf %325, %324 : vector<2x128xf32>
    %327 = arith.divf %325, %326 : vector<2x128xf32>
    %328 = arith.mulf %319, %257 : vector<2x128xf32>
    %329 = arith.mulf %313, %321 : vector<2x128xf32>
    %330 = arith.addf %328, %329 : vector<2x128xf32>
    %331 = math.tanh %330 : vector<2x128xf32>
    %332 = arith.mulf %327, %331 : vector<2x128xf32>
    %333 = arith.addi %8, %c3_i32 : i32
    %334 = vector.broadcast %333 : i32 to vector<2x128xi32>
    %335 = arith.cmpi slt, %334, %7 : vector<2x128xi32>
    %336 = arith.addi %10, %270 : i32
    %337 = vector.broadcast %336 : i32 to vector<2x128xi32>
    %338 = arith.cmpi slt, %337, %7 : vector<2x128xi32>
    %339 = arith.select %335, %301, %254 : vector<2x128xi1>, vector<2x128xf32>
    %340 = arith.select %335, %299, %255 : vector<2x128xi1>, vector<2x128xf32>
    %341 = arith.select %338, %332, %256 : vector<2x128xi1>, vector<2x128xf32>
    %342 = arith.select %338, %330, %257 : vector<2x128xi1>, vector<2x128xf32>
    %cst_85 = arith.constant 0.000000e+00 : f32
    %343 = vector.broadcast %cst_85 : f32 to vector<2x128xf32>
    %344 = arith.select %335, %301, %343 : vector<2x128xi1>, vector<2x128xf32>
    %345 = arith.index_cast %c3_i32 : i32 to index
    %c0_86 = arith.constant 0 : index
    %c0_87 = arith.constant 0 : index
    %346 = vector.load %arg6[%345, %c0_86, %c0_87] : memref<8x2x128xf32, #tpu.memory_space<vmem>>, vector<1x2x128xf32>
    %347 = vector.shape_cast %346 : vector<1x2x128xf32> to vector<2x128xf32>
    %348 = vector.shape_cast %344 : vector<2x128xf32> to vector<1x2x128xf32>
    tpu.vector_store %arg6[%345, %c0_86, %c0_87], %348 {strides = array<i32>} : memref<8x2x128xf32, #tpu.memory_space<vmem>>, vector<1x2x128xf32>,
    %cst_88 = arith.constant 0.000000e+00 : f32
    %349 = vector.broadcast %cst_88 : f32 to vector<2x128xf32>
    %350 = arith.select %338, %332, %349 : vector<2x128xi1>, vector<2x128xf32>
    %351 = arith.index_cast %270 : i32 to index
    %c0_89 = arith.constant 0 : index
    %c0_90 = arith.constant 0 : index
    %352 = vector.load %arg7[%351, %c0_89, %c0_90] : memref<8x2x128xf32, #tpu.memory_space<vmem>>, vector<1x2x128xf32>
    %353 = vector.shape_cast %352 : vector<1x2x128xf32> to vector<2x128xf32>
    %354 = vector.shape_cast %350 : vector<2x128xf32> to vector<1x2x128xf32>
    tpu.vector_store %arg7[%351, %c0_89, %c0_90], %354 {strides = array<i32>} : memref<8x2x128xf32, #tpu.memory_space<vmem>>, vector<1x2x128xf32>,
    %c4_i32 = arith.constant 4 : i32
    %c7_i32_91 = arith.constant 7 : i32
    %355 = arith.subi %c7_i32_91, %c4_i32 : i32
    %356 = arith.index_cast %c4_i32 : i32 to index
    %c0_92 = arith.constant 0 : index
    %c0_93 = arith.constant 0 : index
    %357 = vector.load %arg2[%356, %c0_92, %c0_93] : memref<8x2x512xbf16, #tpu.memory_space<vmem>>, vector<1x2x512xbf16>
    %358 = vector.shape_cast %357 : vector<1x2x512xbf16> to vector<2x512xbf16>
    %359 = arith.extf %358 : vector<2x512xbf16> to vector<2x512xf32>
    %cst_94 = arith.constant dense<0.000000e+00> : vector<2x512xf32>
    %360 = tpu.matmul %339, %3, %cst_94 {dimension_numbers = #tpu.dot_dimension_numbers<[1], [0], [0], [1], [0, 0, 1, 1], [], []>} : vector<2x128xf32>, vector<128x512xf32>, vector<2x512xf32> -> vector<2x512xf32>
    %361 = arith.addf %359, %360 : vector<2x512xf32>
    %362 = vector.extract_strided_slice %361 {offsets = [0, 0], sizes = [2, 128], strides = [1, 1]} : vector<2x512xf32> to vector<2x128xf32>
    %363 = arith.negf %362 : vector<2x128xf32>
    %364 = math.exp %363 : vector<2x128xf32>
    %cst_95 = arith.constant 1.000000e+00 : f32
    %365 = vector.broadcast %cst_95 : f32 to vector<2x128xf32>
    %366 = arith.addf %365, %364 : vector<2x128xf32>
    %367 = arith.divf %365, %366 : vector<2x128xf32>
    %368 = vector.extract_strided_slice %361 {offsets = [0, 128], sizes = [2, 128], strides = [1, 1]} : vector<2x512xf32> to vector<2x128xf32>
    %369 = arith.negf %368 : vector<2x128xf32>
    %370 = math.exp %369 : vector<2x128xf32>
    %cst_96 = arith.constant 1.000000e+00 : f32
    %371 = vector.broadcast %cst_96 : f32 to vector<2x128xf32>
    %372 = arith.addf %371, %370 : vector<2x128xf32>
    %373 = arith.divf %371, %372 : vector<2x128xf32>
    %374 = vector.extract_strided_slice %361 {offsets = [0, 256], sizes = [2, 128], strides = [1, 1]} : vector<2x512xf32> to vector<2x128xf32>
    %375 = math.tanh %374 : vector<2x128xf32>
    %376 = vector.extract_strided_slice %361 {offsets = [0, 384], sizes = [2, 128], strides = [1, 1]} : vector<2x512xf32> to vector<2x128xf32>
    %377 = arith.negf %376 : vector<2x128xf32>
    %378 = math.exp %377 : vector<2x128xf32>
    %cst_97 = arith.constant 1.000000e+00 : f32
    %379 = vector.broadcast %cst_97 : f32 to vector<2x128xf32>
    %380 = arith.addf %379, %378 : vector<2x128xf32>
    %381 = arith.divf %379, %380 : vector<2x128xf32>
    %382 = arith.mulf %373, %340 : vector<2x128xf32>
    %383 = arith.mulf %367, %375 : vector<2x128xf32>
    %384 = arith.addf %382, %383 : vector<2x128xf32>
    %385 = math.tanh %384 : vector<2x128xf32>
    %386 = arith.mulf %381, %385 : vector<2x128xf32>
    %387 = arith.index_cast %355 : i32 to index
    %c0_98 = arith.constant 0 : index
    %c0_99 = arith.constant 0 : index
    %388 = vector.load %arg3[%387, %c0_98, %c0_99] : memref<8x2x512xbf16, #tpu.memory_space<vmem>>, vector<1x2x512xbf16>
    %389 = vector.shape_cast %388 : vector<1x2x512xbf16> to vector<2x512xbf16>
    %390 = arith.extf %389 : vector<2x512xbf16> to vector<2x512xf32>
    %cst_100 = arith.constant dense<0.000000e+00> : vector<2x512xf32>
    %391 = tpu.matmul %341, %4, %cst_100 {dimension_numbers = #tpu.dot_dimension_numbers<[1], [0], [0], [1], [0, 0, 1, 1], [], []>} : vector<2x128xf32>, vector<128x512xf32>, vector<2x512xf32> -> vector<2x512xf32>
    %392 = arith.addf %390, %391 : vector<2x512xf32>
    %393 = vector.extract_strided_slice %392 {offsets = [0, 0], sizes = [2, 128], strides = [1, 1]} : vector<2x512xf32> to vector<2x128xf32>
    %394 = arith.negf %393 : vector<2x128xf32>
    %395 = math.exp %394 : vector<2x128xf32>
    %cst_101 = arith.constant 1.000000e+00 : f32
    %396 = vector.broadcast %cst_101 : f32 to vector<2x128xf32>
    %397 = arith.addf %396, %395 : vector<2x128xf32>
    %398 = arith.divf %396, %397 : vector<2x128xf32>
    %399 = vector.extract_strided_slice %392 {offsets = [0, 128], sizes = [2, 128], strides = [1, 1]} : vector<2x512xf32> to vector<2x128xf32>
    %400 = arith.negf %399 : vector<2x128xf32>
    %401 = math.exp %400 : vector<2x128xf32>
    %cst_102 = arith.constant 1.000000e+00 : f32
    %402 = vector.broadcast %cst_102 : f32 to vector<2x128xf32>
    %403 = arith.addf %402, %401 : vector<2x128xf32>
    %404 = arith.divf %402, %403 : vector<2x128xf32>
    %405 = vector.extract_strided_slice %392 {offsets = [0, 256], sizes = [2, 128], strides = [1, 1]} : vector<2x512xf32> to vector<2x128xf32>
    %406 = math.tanh %405 : vector<2x128xf32>
    %407 = vector.extract_strided_slice %392 {offsets = [0, 384], sizes = [2, 128], strides = [1, 1]} : vector<2x512xf32> to vector<2x128xf32>
    %408 = arith.negf %407 : vector<2x128xf32>
    %409 = math.exp %408 : vector<2x128xf32>
    %cst_103 = arith.constant 1.000000e+00 : f32
    %410 = vector.broadcast %cst_103 : f32 to vector<2x128xf32>
    %411 = arith.addf %410, %409 : vector<2x128xf32>
    %412 = arith.divf %410, %411 : vector<2x128xf32>
    %413 = arith.mulf %404, %342 : vector<2x128xf32>
    %414 = arith.mulf %398, %406 : vector<2x128xf32>
    %415 = arith.addf %413, %414 : vector<2x128xf32>
    %416 = math.tanh %415 : vector<2x128xf32>
    %417 = arith.mulf %412, %416 : vector<2x128xf32>
    %418 = arith.addi %8, %c4_i32 : i32
    %419 = vector.broadcast %418 : i32 to vector<2x128xi32>
    %420 = arith.cmpi slt, %419, %7 : vector<2x128xi32>
    %421 = arith.addi %10, %355 : i32
    %422 = vector.broadcast %421 : i32 to vector<2x128xi32>
    %423 = arith.cmpi slt, %422, %7 : vector<2x128xi32>
    %424 = arith.select %420, %386, %339 : vector<2x128xi1>, vector<2x128xf32>
    %425 = arith.select %420, %384, %340 : vector<2x128xi1>, vector<2x128xf32>
    %426 = arith.select %423, %417, %341 : vector<2x128xi1>, vector<2x128xf32>
    %427 = arith.select %423, %415, %342 : vector<2x128xi1>, vector<2x128xf32>
    %cst_104 = arith.constant 0.000000e+00 : f32
    %428 = vector.broadcast %cst_104 : f32 to vector<2x128xf32>
    %429 = arith.select %420, %386, %428 : vector<2x128xi1>, vector<2x128xf32>
    %430 = arith.index_cast %c4_i32 : i32 to index
    %c0_105 = arith.constant 0 : index
    %c0_106 = arith.constant 0 : index
    %431 = vector.load %arg6[%430, %c0_105, %c0_106] : memref<8x2x128xf32, #tpu.memory_space<vmem>>, vector<1x2x128xf32>
    %432 = vector.shape_cast %431 : vector<1x2x128xf32> to vector<2x128xf32>
    %433 = vector.shape_cast %429 : vector<2x128xf32> to vector<1x2x128xf32>
    tpu.vector_store %arg6[%430, %c0_105, %c0_106], %433 {strides = array<i32>} : memref<8x2x128xf32, #tpu.memory_space<vmem>>, vector<1x2x128xf32>,
    %cst_107 = arith.constant 0.000000e+00 : f32
    %434 = vector.broadcast %cst_107 : f32 to vector<2x128xf32>
    %435 = arith.select %423, %417, %434 : vector<2x128xi1>, vector<2x128xf32>
    %436 = arith.index_cast %355 : i32 to index
    %c0_108 = arith.constant 0 : index
    %c0_109 = arith.constant 0 : index
    %437 = vector.load %arg7[%436, %c0_108, %c0_109] : memref<8x2x128xf32, #tpu.memory_space<vmem>>, vector<1x2x128xf32>
    %438 = vector.shape_cast %437 : vector<1x2x128xf32> to vector<2x128xf32>
    %439 = vector.shape_cast %435 : vector<2x128xf32> to vector<1x2x128xf32>
    tpu.vector_store %arg7[%436, %c0_108, %c0_109], %439 {strides = array<i32>} : memref<8x2x128xf32, #tpu.memory_space<vmem>>, vector<1x2x128xf32>,
    %c5_i32 = arith.constant 5 : i32
    %c7_i32_110 = arith.constant 7 : i32
    %440 = arith.subi %c7_i32_110, %c5_i32 : i32
    %441 = arith.index_cast %c5_i32 : i32 to index
    %c0_111 = arith.constant 0 : index
    %c0_112 = arith.constant 0 : index
    %442 = vector.load %arg2[%441, %c0_111, %c0_112] : memref<8x2x512xbf16, #tpu.memory_space<vmem>>, vector<1x2x512xbf16>
    %443 = vector.shape_cast %442 : vector<1x2x512xbf16> to vector<2x512xbf16>
    %444 = arith.extf %443 : vector<2x512xbf16> to vector<2x512xf32>
    %cst_113 = arith.constant dense<0.000000e+00> : vector<2x512xf32>
    %445 = tpu.matmul %424, %3, %cst_113 {dimension_numbers = #tpu.dot_dimension_numbers<[1], [0], [0], [1], [0, 0, 1, 1], [], []>} : vector<2x128xf32>, vector<128x512xf32>, vector<2x512xf32> -> vector<2x512xf32>
    %446 = arith.addf %444, %445 : vector<2x512xf32>
    %447 = vector.extract_strided_slice %446 {offsets = [0, 0], sizes = [2, 128], strides = [1, 1]} : vector<2x512xf32> to vector<2x128xf32>
    %448 = arith.negf %447 : vector<2x128xf32>
    %449 = math.exp %448 : vector<2x128xf32>
    %cst_114 = arith.constant 1.000000e+00 : f32
    %450 = vector.broadcast %cst_114 : f32 to vector<2x128xf32>
    %451 = arith.addf %450, %449 : vector<2x128xf32>
    %452 = arith.divf %450, %451 : vector<2x128xf32>
    %453 = vector.extract_strided_slice %446 {offsets = [0, 128], sizes = [2, 128], strides = [1, 1]} : vector<2x512xf32> to vector<2x128xf32>
    %454 = arith.negf %453 : vector<2x128xf32>
    %455 = math.exp %454 : vector<2x128xf32>
    %cst_115 = arith.constant 1.000000e+00 : f32
    %456 = vector.broadcast %cst_115 : f32 to vector<2x128xf32>
    %457 = arith.addf %456, %455 : vector<2x128xf32>
    %458 = arith.divf %456, %457 : vector<2x128xf32>
    %459 = vector.extract_strided_slice %446 {offsets = [0, 256], sizes = [2, 128], strides = [1, 1]} : vector<2x512xf32> to vector<2x128xf32>
    %460 = math.tanh %459 : vector<2x128xf32>
    %461 = vector.extract_strided_slice %446 {offsets = [0, 384], sizes = [2, 128], strides = [1, 1]} : vector<2x512xf32> to vector<2x128xf32>
    %462 = arith.negf %461 : vector<2x128xf32>
    %463 = math.exp %462 : vector<2x128xf32>
    %cst_116 = arith.constant 1.000000e+00 : f32
    %464 = vector.broadcast %cst_116 : f32 to vector<2x128xf32>
    %465 = arith.addf %464, %463 : vector<2x128xf32>
    %466 = arith.divf %464, %465 : vector<2x128xf32>
    %467 = arith.mulf %458, %425 : vector<2x128xf32>
    %468 = arith.mulf %452, %460 : vector<2x128xf32>
    %469 = arith.addf %467, %468 : vector<2x128xf32>
    %470 = math.tanh %469 : vector<2x128xf32>
    %471 = arith.mulf %466, %470 : vector<2x128xf32>
    %472 = arith.index_cast %440 : i32 to index
    %c0_117 = arith.constant 0 : index
    %c0_118 = arith.constant 0 : index
    %473 = vector.load %arg3[%472, %c0_117, %c0_118] : memref<8x2x512xbf16, #tpu.memory_space<vmem>>, vector<1x2x512xbf16>
    %474 = vector.shape_cast %473 : vector<1x2x512xbf16> to vector<2x512xbf16>
    %475 = arith.extf %474 : vector<2x512xbf16> to vector<2x512xf32>
    %cst_119 = arith.constant dense<0.000000e+00> : vector<2x512xf32>
    %476 = tpu.matmul %426, %4, %cst_119 {dimension_numbers = #tpu.dot_dimension_numbers<[1], [0], [0], [1], [0, 0, 1, 1], [], []>} : vector<2x128xf32>, vector<128x512xf32>, vector<2x512xf32> -> vector<2x512xf32>
    %477 = arith.addf %475, %476 : vector<2x512xf32>
    %478 = vector.extract_strided_slice %477 {offsets = [0, 0], sizes = [2, 128], strides = [1, 1]} : vector<2x512xf32> to vector<2x128xf32>
    %479 = arith.negf %478 : vector<2x128xf32>
    %480 = math.exp %479 : vector<2x128xf32>
    %cst_120 = arith.constant 1.000000e+00 : f32
    %481 = vector.broadcast %cst_120 : f32 to vector<2x128xf32>
    %482 = arith.addf %481, %480 : vector<2x128xf32>
    %483 = arith.divf %481, %482 : vector<2x128xf32>
    %484 = vector.extract_strided_slice %477 {offsets = [0, 128], sizes = [2, 128], strides = [1, 1]} : vector<2x512xf32> to vector<2x128xf32>
    %485 = arith.negf %484 : vector<2x128xf32>
    %486 = math.exp %485 : vector<2x128xf32>
    %cst_121 = arith.constant 1.000000e+00 : f32
    %487 = vector.broadcast %cst_121 : f32 to vector<2x128xf32>
    %488 = arith.addf %487, %486 : vector<2x128xf32>
    %489 = arith.divf %487, %488 : vector<2x128xf32>
    %490 = vector.extract_strided_slice %477 {offsets = [0, 256], sizes = [2, 128], strides = [1, 1]} : vector<2x512xf32> to vector<2x128xf32>
    %491 = math.tanh %490 : vector<2x128xf32>
    %492 = vector.extract_strided_slice %477 {offsets = [0, 384], sizes = [2, 128], strides = [1, 1]} : vector<2x512xf32> to vector<2x128xf32>
    %493 = arith.negf %492 : vector<2x128xf32>
    %494 = math.exp %493 : vector<2x128xf32>
    %cst_122 = arith.constant 1.000000e+00 : f32
    %495 = vector.broadcast %cst_122 : f32 to vector<2x128xf32>
    %496 = arith.addf %495, %494 : vector<2x128xf32>
    %497 = arith.divf %495, %496 : vector<2x128xf32>
    %498 = arith.mulf %489, %427 : vector<2x128xf32>
    %499 = arith.mulf %483, %491 : vector<2x128xf32>
    %500 = arith.addf %498, %499 : vector<2x128xf32>
    %501 = math.tanh %500 : vector<2x128xf32>
    %502 = arith.mulf %497, %501 : vector<2x128xf32>
    %503 = arith.addi %8, %c5_i32 : i32
    %504 = vector.broadcast %503 : i32 to vector<2x128xi32>
    %505 = arith.cmpi slt, %504, %7 : vector<2x128xi32>
    %506 = arith.addi %10, %440 : i32
    %507 = vector.broadcast %506 : i32 to vector<2x128xi32>
    %508 = arith.cmpi slt, %507, %7 : vector<2x128xi32>
    %509 = arith.select %505, %471, %424 : vector<2x128xi1>, vector<2x128xf32>
    %510 = arith.select %505, %469, %425 : vector<2x128xi1>, vector<2x128xf32>
    %511 = arith.select %508, %502, %426 : vector<2x128xi1>, vector<2x128xf32>
    %512 = arith.select %508, %500, %427 : vector<2x128xi1>, vector<2x128xf32>
    %cst_123 = arith.constant 0.000000e+00 : f32
    %513 = vector.broadcast %cst_123 : f32 to vector<2x128xf32>
    %514 = arith.select %505, %471, %513 : vector<2x128xi1>, vector<2x128xf32>
    %515 = arith.index_cast %c5_i32 : i32 to index
    %c0_124 = arith.constant 0 : index
    %c0_125 = arith.constant 0 : index
    %516 = vector.load %arg6[%515, %c0_124, %c0_125] : memref<8x2x128xf32, #tpu.memory_space<vmem>>, vector<1x2x128xf32>
    %517 = vector.shape_cast %516 : vector<1x2x128xf32> to vector<2x128xf32>
    %518 = vector.shape_cast %514 : vector<2x128xf32> to vector<1x2x128xf32>
    tpu.vector_store %arg6[%515, %c0_124, %c0_125], %518 {strides = array<i32>} : memref<8x2x128xf32, #tpu.memory_space<vmem>>, vector<1x2x128xf32>,
    %cst_126 = arith.constant 0.000000e+00 : f32
    %519 = vector.broadcast %cst_126 : f32 to vector<2x128xf32>
    %520 = arith.select %508, %502, %519 : vector<2x128xi1>, vector<2x128xf32>
    %521 = arith.index_cast %440 : i32 to index
    %c0_127 = arith.constant 0 : index
    %c0_128 = arith.constant 0 : index
    %522 = vector.load %arg7[%521, %c0_127, %c0_128] : memref<8x2x128xf32, #tpu.memory_space<vmem>>, vector<1x2x128xf32>
    %523 = vector.shape_cast %522 : vector<1x2x128xf32> to vector<2x128xf32>
    %524 = vector.shape_cast %520 : vector<2x128xf32> to vector<1x2x128xf32>
    tpu.vector_store %arg7[%521, %c0_127, %c0_128], %524 {strides = array<i32>} : memref<8x2x128xf32, #tpu.memory_space<vmem>>, vector<1x2x128xf32>,
    %c6_i32 = arith.constant 6 : i32
    %c7_i32_129 = arith.constant 7 : i32
    %525 = arith.subi %c7_i32_129, %c6_i32 : i32
    %526 = arith.index_cast %c6_i32 : i32 to index
    %c0_130 = arith.constant 0 : index
    %c0_131 = arith.constant 0 : index
    %527 = vector.load %arg2[%526, %c0_130, %c0_131] : memref<8x2x512xbf16, #tpu.memory_space<vmem>>, vector<1x2x512xbf16>
    %528 = vector.shape_cast %527 : vector<1x2x512xbf16> to vector<2x512xbf16>
    %529 = arith.extf %528 : vector<2x512xbf16> to vector<2x512xf32>
    %cst_132 = arith.constant dense<0.000000e+00> : vector<2x512xf32>
    %530 = tpu.matmul %509, %3, %cst_132 {dimension_numbers = #tpu.dot_dimension_numbers<[1], [0], [0], [1], [0, 0, 1, 1], [], []>} : vector<2x128xf32>, vector<128x512xf32>, vector<2x512xf32> -> vector<2x512xf32>
    %531 = arith.addf %529, %530 : vector<2x512xf32>
    %532 = vector.extract_strided_slice %531 {offsets = [0, 0], sizes = [2, 128], strides = [1, 1]} : vector<2x512xf32> to vector<2x128xf32>
    %533 = arith.negf %532 : vector<2x128xf32>
    %534 = math.exp %533 : vector<2x128xf32>
    %cst_133 = arith.constant 1.000000e+00 : f32
    %535 = vector.broadcast %cst_133 : f32 to vector<2x128xf32>
    %536 = arith.addf %535, %534 : vector<2x128xf32>
    %537 = arith.divf %535, %536 : vector<2x128xf32>
    %538 = vector.extract_strided_slice %531 {offsets = [0, 128], sizes = [2, 128], strides = [1, 1]} : vector<2x512xf32> to vector<2x128xf32>
    %539 = arith.negf %538 : vector<2x128xf32>
    %540 = math.exp %539 : vector<2x128xf32>
    %cst_134 = arith.constant 1.000000e+00 : f32
    %541 = vector.broadcast %cst_134 : f32 to vector<2x128xf32>
    %542 = arith.addf %541, %540 : vector<2x128xf32>
    %543 = arith.divf %541, %542 : vector<2x128xf32>
    %544 = vector.extract_strided_slice %531 {offsets = [0, 256], sizes = [2, 128], strides = [1, 1]} : vector<2x512xf32> to vector<2x128xf32>
    %545 = math.tanh %544 : vector<2x128xf32>
    %546 = vector.extract_strided_slice %531 {offsets = [0, 384], sizes = [2, 128], strides = [1, 1]} : vector<2x512xf32> to vector<2x128xf32>
    %547 = arith.negf %546 : vector<2x128xf32>
    %548 = math.exp %547 : vector<2x128xf32>
    %cst_135 = arith.constant 1.000000e+00 : f32
    %549 = vector.broadcast %cst_135 : f32 to vector<2x128xf32>
    %550 = arith.addf %549, %548 : vector<2x128xf32>
    %551 = arith.divf %549, %550 : vector<2x128xf32>
    %552 = arith.mulf %543, %510 : vector<2x128xf32>
    %553 = arith.mulf %537, %545 : vector<2x128xf32>
    %554 = arith.addf %552, %553 : vector<2x128xf32>
    %555 = math.tanh %554 : vector<2x128xf32>
    %556 = arith.mulf %551, %555 : vector<2x128xf32>
    %557 = arith.index_cast %525 : i32 to index
    %c0_136 = arith.constant 0 : index
    %c0_137 = arith.constant 0 : index
    %558 = vector.load %arg3[%557, %c0_136, %c0_137] : memref<8x2x512xbf16, #tpu.memory_space<vmem>>, vector<1x2x512xbf16>
    %559 = vector.shape_cast %558 : vector<1x2x512xbf16> to vector<2x512xbf16>
    %560 = arith.extf %559 : vector<2x512xbf16> to vector<2x512xf32>
    %cst_138 = arith.constant dense<0.000000e+00> : vector<2x512xf32>
    %561 = tpu.matmul %511, %4, %cst_138 {dimension_numbers = #tpu.dot_dimension_numbers<[1], [0], [0], [1], [0, 0, 1, 1], [], []>} : vector<2x128xf32>, vector<128x512xf32>, vector<2x512xf32> -> vector<2x512xf32>
    %562 = arith.addf %560, %561 : vector<2x512xf32>
    %563 = vector.extract_strided_slice %562 {offsets = [0, 0], sizes = [2, 128], strides = [1, 1]} : vector<2x512xf32> to vector<2x128xf32>
    %564 = arith.negf %563 : vector<2x128xf32>
    %565 = math.exp %564 : vector<2x128xf32>
    %cst_139 = arith.constant 1.000000e+00 : f32
    %566 = vector.broadcast %cst_139 : f32 to vector<2x128xf32>
    %567 = arith.addf %566, %565 : vector<2x128xf32>
    %568 = arith.divf %566, %567 : vector<2x128xf32>
    %569 = vector.extract_strided_slice %562 {offsets = [0, 128], sizes = [2, 128], strides = [1, 1]} : vector<2x512xf32> to vector<2x128xf32>
    %570 = arith.negf %569 : vector<2x128xf32>
    %571 = math.exp %570 : vector<2x128xf32>
    %cst_140 = arith.constant 1.000000e+00 : f32
    %572 = vector.broadcast %cst_140 : f32 to vector<2x128xf32>
    %573 = arith.addf %572, %571 : vector<2x128xf32>
    %574 = arith.divf %572, %573 : vector<2x128xf32>
    %575 = vector.extract_strided_slice %562 {offsets = [0, 256], sizes = [2, 128], strides = [1, 1]} : vector<2x512xf32> to vector<2x128xf32>
    %576 = math.tanh %575 : vector<2x128xf32>
    %577 = vector.extract_strided_slice %562 {offsets = [0, 384], sizes = [2, 128], strides = [1, 1]} : vector<2x512xf32> to vector<2x128xf32>
    %578 = arith.negf %577 : vector<2x128xf32>
    %579 = math.exp %578 : vector<2x128xf32>
    %cst_141 = arith.constant 1.000000e+00 : f32
    %580 = vector.broadcast %cst_141 : f32 to vector<2x128xf32>
    %581 = arith.addf %580, %579 : vector<2x128xf32>
    %582 = arith.divf %580, %581 : vector<2x128xf32>
    %583 = arith.mulf %574, %512 : vector<2x128xf32>
    %584 = arith.mulf %568, %576 : vector<2x128xf32>
    %585 = arith.addf %583, %584 : vector<2x128xf32>
    %586 = math.tanh %585 : vector<2x128xf32>
    %587 = arith.mulf %582, %586 : vector<2x128xf32>
    %588 = arith.addi %8, %c6_i32 : i32
    %589 = vector.broadcast %588 : i32 to vector<2x128xi32>
    %590 = arith.cmpi slt, %589, %7 : vector<2x128xi32>
    %591 = arith.addi %10, %525 : i32
    %592 = vector.broadcast %591 : i32 to vector<2x128xi32>
    %593 = arith.cmpi slt, %592, %7 : vector<2x128xi32>
    %594 = arith.select %590, %556, %509 : vector<2x128xi1>, vector<2x128xf32>
    %595 = arith.select %590, %554, %510 : vector<2x128xi1>, vector<2x128xf32>
    %596 = arith.select %593, %587, %511 : vector<2x128xi1>, vector<2x128xf32>
    %597 = arith.select %593, %585, %512 : vector<2x128xi1>, vector<2x128xf32>
    %cst_142 = arith.constant 0.000000e+00 : f32
    %598 = vector.broadcast %cst_142 : f32 to vector<2x128xf32>
    %599 = arith.select %590, %556, %598 : vector<2x128xi1>, vector<2x128xf32>
    %600 = arith.index_cast %c6_i32 : i32 to index
    %c0_143 = arith.constant 0 : index
    %c0_144 = arith.constant 0 : index
    %601 = vector.load %arg6[%600, %c0_143, %c0_144] : memref<8x2x128xf32, #tpu.memory_space<vmem>>, vector<1x2x128xf32>
    %602 = vector.shape_cast %601 : vector<1x2x128xf32> to vector<2x128xf32>
    %603 = vector.shape_cast %599 : vector<2x128xf32> to vector<1x2x128xf32>
    tpu.vector_store %arg6[%600, %c0_143, %c0_144], %603 {strides = array<i32>} : memref<8x2x128xf32, #tpu.memory_space<vmem>>, vector<1x2x128xf32>,
    %cst_145 = arith.constant 0.000000e+00 : f32
    %604 = vector.broadcast %cst_145 : f32 to vector<2x128xf32>
    %605 = arith.select %593, %587, %604 : vector<2x128xi1>, vector<2x128xf32>
    %606 = arith.index_cast %525 : i32 to index
    %c0_146 = arith.constant 0 : index
    %c0_147 = arith.constant 0 : index
    %607 = vector.load %arg7[%606, %c0_146, %c0_147] : memref<8x2x128xf32, #tpu.memory_space<vmem>>, vector<1x2x128xf32>
    %608 = vector.shape_cast %607 : vector<1x2x128xf32> to vector<2x128xf32>
    %609 = vector.shape_cast %605 : vector<2x128xf32> to vector<1x2x128xf32>
    tpu.vector_store %arg7[%606, %c0_146, %c0_147], %609 {strides = array<i32>} : memref<8x2x128xf32, #tpu.memory_space<vmem>>, vector<1x2x128xf32>,
    %c7_i32_148 = arith.constant 7 : i32
    %c7_i32_149 = arith.constant 7 : i32
    %610 = arith.subi %c7_i32_149, %c7_i32_148 : i32
    %611 = arith.index_cast %c7_i32_148 : i32 to index
    %c0_150 = arith.constant 0 : index
    %c0_151 = arith.constant 0 : index
    %612 = vector.load %arg2[%611, %c0_150, %c0_151] : memref<8x2x512xbf16, #tpu.memory_space<vmem>>, vector<1x2x512xbf16>
    %613 = vector.shape_cast %612 : vector<1x2x512xbf16> to vector<2x512xbf16>
    %614 = arith.extf %613 : vector<2x512xbf16> to vector<2x512xf32>
    %cst_152 = arith.constant dense<0.000000e+00> : vector<2x512xf32>
    %615 = tpu.matmul %594, %3, %cst_152 {dimension_numbers = #tpu.dot_dimension_numbers<[1], [0], [0], [1], [0, 0, 1, 1], [], []>} : vector<2x128xf32>, vector<128x512xf32>, vector<2x512xf32> -> vector<2x512xf32>
    %616 = arith.addf %614, %615 : vector<2x512xf32>
    %617 = vector.extract_strided_slice %616 {offsets = [0, 0], sizes = [2, 128], strides = [1, 1]} : vector<2x512xf32> to vector<2x128xf32>
    %618 = arith.negf %617 : vector<2x128xf32>
    %619 = math.exp %618 : vector<2x128xf32>
    %cst_153 = arith.constant 1.000000e+00 : f32
    %620 = vector.broadcast %cst_153 : f32 to vector<2x128xf32>
    %621 = arith.addf %620, %619 : vector<2x128xf32>
    %622 = arith.divf %620, %621 : vector<2x128xf32>
    %623 = vector.extract_strided_slice %616 {offsets = [0, 128], sizes = [2, 128], strides = [1, 1]} : vector<2x512xf32> to vector<2x128xf32>
    %624 = arith.negf %623 : vector<2x128xf32>
    %625 = math.exp %624 : vector<2x128xf32>
    %cst_154 = arith.constant 1.000000e+00 : f32
    %626 = vector.broadcast %cst_154 : f32 to vector<2x128xf32>
    %627 = arith.addf %626, %625 : vector<2x128xf32>
    %628 = arith.divf %626, %627 : vector<2x128xf32>
    %629 = vector.extract_strided_slice %616 {offsets = [0, 256], sizes = [2, 128], strides = [1, 1]} : vector<2x512xf32> to vector<2x128xf32>
    %630 = math.tanh %629 : vector<2x128xf32>
    %631 = vector.extract_strided_slice %616 {offsets = [0, 384], sizes = [2, 128], strides = [1, 1]} : vector<2x512xf32> to vector<2x128xf32>
    %632 = arith.negf %631 : vector<2x128xf32>
    %633 = math.exp %632 : vector<2x128xf32>
    %cst_155 = arith.constant 1.000000e+00 : f32
    %634 = vector.broadcast %cst_155 : f32 to vector<2x128xf32>
    %635 = arith.addf %634, %633 : vector<2x128xf32>
    %636 = arith.divf %634, %635 : vector<2x128xf32>
    %637 = arith.mulf %628, %595 : vector<2x128xf32>
    %638 = arith.mulf %622, %630 : vector<2x128xf32>
    %639 = arith.addf %637, %638 : vector<2x128xf32>
    %640 = math.tanh %639 : vector<2x128xf32>
    %641 = arith.mulf %636, %640 : vector<2x128xf32>
    %642 = arith.index_cast %610 : i32 to index
    %c0_156 = arith.constant 0 : index
    %c0_157 = arith.constant 0 : index
    %643 = vector.load %arg3[%642, %c0_156, %c0_157] : memref<8x2x512xbf16, #tpu.memory_space<vmem>>, vector<1x2x512xbf16>
    %644 = vector.shape_cast %643 : vector<1x2x512xbf16> to vector<2x512xbf16>
    %645 = arith.extf %644 : vector<2x512xbf16> to vector<2x512xf32>
    %cst_158 = arith.constant dense<0.000000e+00> : vector<2x512xf32>
    %646 = tpu.matmul %596, %4, %cst_158 {dimension_numbers = #tpu.dot_dimension_numbers<[1], [0], [0], [1], [0, 0, 1, 1], [], []>} : vector<2x128xf32>, vector<128x512xf32>, vector<2x512xf32> -> vector<2x512xf32>
    %647 = arith.addf %645, %646 : vector<2x512xf32>
    %648 = vector.extract_strided_slice %647 {offsets = [0, 0], sizes = [2, 128], strides = [1, 1]} : vector<2x512xf32> to vector<2x128xf32>
    %649 = arith.negf %648 : vector<2x128xf32>
    %650 = math.exp %649 : vector<2x128xf32>
    %cst_159 = arith.constant 1.000000e+00 : f32
    %651 = vector.broadcast %cst_159 : f32 to vector<2x128xf32>
    %652 = arith.addf %651, %650 : vector<2x128xf32>
    %653 = arith.divf %651, %652 : vector<2x128xf32>
    %654 = vector.extract_strided_slice %647 {offsets = [0, 128], sizes = [2, 128], strides = [1, 1]} : vector<2x512xf32> to vector<2x128xf32>
    %655 = arith.negf %654 : vector<2x128xf32>
    %656 = math.exp %655 : vector<2x128xf32>
    %cst_160 = arith.constant 1.000000e+00 : f32
    %657 = vector.broadcast %cst_160 : f32 to vector<2x128xf32>
    %658 = arith.addf %657, %656 : vector<2x128xf32>
    %659 = arith.divf %657, %658 : vector<2x128xf32>
    %660 = vector.extract_strided_slice %647 {offsets = [0, 256], sizes = [2, 128], strides = [1, 1]} : vector<2x512xf32> to vector<2x128xf32>
    %661 = math.tanh %660 : vector<2x128xf32>
    %662 = vector.extract_strided_slice %647 {offsets = [0, 384], sizes = [2, 128], strides = [1, 1]} : vector<2x512xf32> to vector<2x128xf32>
    %663 = arith.negf %662 : vector<2x128xf32>
    %664 = math.exp %663 : vector<2x128xf32>
    %cst_161 = arith.constant 1.000000e+00 : f32
    %665 = vector.broadcast %cst_161 : f32 to vector<2x128xf32>
    %666 = arith.addf %665, %664 : vector<2x128xf32>
    %667 = arith.divf %665, %666 : vector<2x128xf32>
    %668 = arith.mulf %659, %597 : vector<2x128xf32>
    %669 = arith.mulf %653, %661 : vector<2x128xf32>
    %670 = arith.addf %668, %669 : vector<2x128xf32>
    %671 = math.tanh %670 : vector<2x128xf32>
    %672 = arith.mulf %667, %671 : vector<2x128xf32>
    %673 = arith.addi %8, %c7_i32_148 : i32
    %674 = vector.broadcast %673 : i32 to vector<2x128xi32>
    %675 = arith.cmpi slt, %674, %7 : vector<2x128xi32>
    %676 = arith.addi %10, %610 : i32
    %677 = vector.broadcast %676 : i32 to vector<2x128xi32>
    %678 = arith.cmpi slt, %677, %7 : vector<2x128xi32>
    %679 = arith.select %675, %641, %594 : vector<2x128xi1>, vector<2x128xf32>
    %680 = arith.select %675, %639, %595 : vector<2x128xi1>, vector<2x128xf32>
    %681 = arith.select %678, %672, %596 : vector<2x128xi1>, vector<2x128xf32>
    %682 = arith.select %678, %670, %597 : vector<2x128xi1>, vector<2x128xf32>
    %cst_162 = arith.constant 0.000000e+00 : f32
    %683 = vector.broadcast %cst_162 : f32 to vector<2x128xf32>
    %684 = arith.select %675, %641, %683 : vector<2x128xi1>, vector<2x128xf32>
    %685 = arith.index_cast %c7_i32_148 : i32 to index
    %c0_163 = arith.constant 0 : index
    %c0_164 = arith.constant 0 : index
    %686 = vector.load %arg6[%685, %c0_163, %c0_164] : memref<8x2x128xf32, #tpu.memory_space<vmem>>, vector<1x2x128xf32>
    %687 = vector.shape_cast %686 : vector<1x2x128xf32> to vector<2x128xf32>
    %688 = vector.shape_cast %684 : vector<2x128xf32> to vector<1x2x128xf32>
    tpu.vector_store %arg6[%685, %c0_163, %c0_164], %688 {strides = array<i32>} : memref<8x2x128xf32, #tpu.memory_space<vmem>>, vector<1x2x128xf32>,
    %cst_165 = arith.constant 0.000000e+00 : f32
    %689 = vector.broadcast %cst_165 : f32 to vector<2x128xf32>
    %690 = arith.select %678, %672, %689 : vector<2x128xi1>, vector<2x128xf32>
    %691 = arith.index_cast %610 : i32 to index
    %c0_166 = arith.constant 0 : index
    %c0_167 = arith.constant 0 : index
    %692 = vector.load %arg7[%691, %c0_166, %c0_167] : memref<8x2x128xf32, #tpu.memory_space<vmem>>, vector<1x2x128xf32>
    %693 = vector.shape_cast %692 : vector<1x2x128xf32> to vector<2x128xf32>
    %694 = vector.shape_cast %690 : vector<2x128xf32> to vector<1x2x128xf32>
    tpu.vector_store %arg7[%691, %c0_166, %c0_167], %694 {strides = array<i32>} : memref<8x2x128xf32, #tpu.memory_space<vmem>>, vector<1x2x128xf32>,
    %c8_i32_168 = arith.constant 8 : i32
    %c0_169 = arith.constant 0 : index
    %c0_170 = arith.constant 0 : index
    %695 = vector.load %arg8[%c0_169, %c0_170] : memref<2x128xf32, #tpu.memory_space<vmem>>, vector<2x128xf32>
    tpu.vector_store %arg8[%c0_169, %c0_170], %679 {strides = array<i32>} : memref<2x128xf32, #tpu.memory_space<vmem>>, vector<2x128xf32>,
    %c0_171 = arith.constant 0 : index
    %c0_172 = arith.constant 0 : index
    %696 = vector.load %arg9[%c0_171, %c0_172] : memref<2x128xf32, #tpu.memory_space<vmem>>, vector<2x128xf32>
    tpu.vector_store %arg9[%c0_171, %c0_172], %680 {strides = array<i32>} : memref<2x128xf32, #tpu.memory_space<vmem>>, vector<2x128xf32>,
    %c0_173 = arith.constant 0 : index
    %c0_174 = arith.constant 0 : index
    %697 = vector.load %arg10[%c0_173, %c0_174] : memref<2x128xf32, #tpu.memory_space<vmem>>, vector<2x128xf32>
    tpu.vector_store %arg10[%c0_173, %c0_174], %681 {strides = array<i32>} : memref<2x128xf32, #tpu.memory_space<vmem>>, vector<2x128xf32>,
    %c0_175 = arith.constant 0 : index
    %c0_176 = arith.constant 0 : index
    %698 = vector.load %arg11[%c0_175, %c0_176] : memref<2x128xf32, #tpu.memory_space<vmem>>, vector<2x128xf32>
    tpu.vector_store %arg11[%c0_175, %c0_176], %682 {strides = array<i32>} : memref<2x128xf32, #tpu.memory_space<vmem>>, vector<2x128xf32>,
    return
  }
  func.func @transform_0(%arg0: i32) -> (i32, i32) {
    %c0_i32 = arith.constant 0 : i32
    %c0_i32_0 = arith.constant 0 : i32
    %c0_i32_1 = arith.constant 0 : i32
    return %c0_i32, %c0_i32_0 : i32, i32
  }
  func.func @transform_1(%arg0: i32) -> (i32, i32, i32) {
    %c0_i32 = arith.constant 0 : i32
    %c0_i32_0 = arith.constant 0 : i32
    %c0_i32_1 = arith.constant 0 : i32
    return %arg0, %c0_i32, %c0_i32_0 : i32, i32, i32
  }
  func.func @transform_2(%arg0: i32) -> (i32, i32, i32) {
    %c1_i32 = arith.constant 1 : i32
    %0 = arith.subi %c1_i32, %arg0 : i32
    %c0_i32 = arith.constant 0 : i32
    %c1_i32_0 = arith.constant 1 : i32
    %c0_i32_1 = arith.constant 0 : i32
    return %0, %c0_i32, %c1_i32_0 : i32, i32, i32
  }
  func.func @transform_3(%arg0: i32) -> (i32, i32) {
    %c0_i32 = arith.constant 0 : i32
    %c0_i32_0 = arith.constant 0 : i32
    %c0_i32_1 = arith.constant 0 : i32
    return %c0_i32, %c0_i32_0 : i32, i32
  }
  func.func @transform_4(%arg0: i32) -> (i32, i32) {
    %c0_i32 = arith.constant 0 : i32
    %c0_i32_0 = arith.constant 0 : i32
    %c0_i32_1 = arith.constant 0 : i32
    return %c0_i32, %c0_i32_0 : i32, i32
  }
  func.func @transform_5(%arg0: i32) -> (i32, i32, i32) {
    %c0_i32 = arith.constant 0 : i32
    %c0_i32_0 = arith.constant 0 : i32
    %c0_i32_1 = arith.constant 0 : i32
    return %arg0, %c0_i32, %c0_i32_0 : i32, i32, i32
  }
  func.func @transform_6(%arg0: i32) -> (i32, i32, i32) {
    %c1_i32 = arith.constant 1 : i32
    %0 = arith.subi %c1_i32, %arg0 : i32
    %c0_i32 = arith.constant 0 : i32
    %c0_i32_0 = arith.constant 0 : i32
    %c0_i32_1 = arith.constant 0 : i32
    return %0, %c0_i32, %c0_i32_0 : i32, i32, i32
  }
}

</mosaic_0001>

<bundles_post_ra>
// kernel: audio_to_face_forward.2
= control target key start
LH: loop header
LB: loop body
LE: loop exit
PB: predicated region body
PF: predicated region fallthrough
CT: control target
= control target key end

     0   :  { %11 = vsyncpa [#allocation3], 0  ;;  %s1737_s0 = inlined_call_operand.hbm [shape: f32[32,32], index: 0, kind: input, shape index: {}]   ;;  %s1738_s1 = inlined_call_operand.hbm [shape: f32[1,32], index: 1, kind: input, shape index: {}]   ;;  %s1739_s2 = inlined_call_operand.hbm [shape: f32[1,32], index: 2, kind: input, shape index: {}]   ;;  %s1740_s3 = inlined_call_operand.hbm [shape: bf16[32,32], index: 3, kind: input, shape index: {}]   ;;  %s1741_s4 = inlined_call_operand.hbm [shape: f32[1,32], index: 4, kind: input, shape index: {}]   ;;  %s1742_s5 = inlined_call_operand.hbm [shape: bf16[32,1024], index: 5, kind: input, shape index: {}]   ;;  %s1743_s6 = inlined_call_operand.hbm [shape: bf16[32,1024], index: 6, kind: output, shape index: {}]  }
   0x1   :  { %13 = vsyncpa [#allocation3 + $0x1], 0 }
   0x2   :  { %14 = vsyncpa [#allocation6], 0 }
   0x3   :  { %15 = vsyncpa [#allocation9], 0 }
   0x4   :  { %16 = vsyncpa [#allocation12], 0 }
   0x5   :  { %17 = vsyncpa [#allocation4], 0 }
   0x6   :  { %19 = vsyncpa [#allocation4 + $0x1], 0  ;;  %s1424_s21 = smov 0   ;;  %s1426_s22 = smov 0  }
   0x7   :  { %s1428_s23 = smov 0   ;;  %s1430_s24 = smov 0  }
   0x8 LB: > { %s1371_s25 = smov [#allocation5]   ;;  %s1445_s27 = sadd.s32 4294967295, %s1369_s24   ;;  %s1369_s24 = sphi %s1430_s24, %s1768_s24   ;;  %s1365_s23 = sphi %s1428_s23, %s1767_s23   ;;  %s1361_s22 = sphi %s1426_s22, %s1766_s22   ;;  %s1357_s21 = sphi %s1424_s21, %s1765_s21  }
   0x9   : > { %s200_s26 = sshll.u32 %s1371_s25, 4  ;;  %p927_p0 = scmp.ge.s32.totalorder %s1369_s24, 1  ;;  %s1450_s26 = int_to_ptr.vmem [resolvable:$true] %s200_s26 }
   0xa   : > { %p1744_p1 = scmp.eq.s32.totalorder %s1445_s27, 0  ;;  %p187_p2 = scmp.lt.s32.totalorder %s1369_s24, 3 }
   0xb   : > { %s1372_s29 = smov [#allocation8]   ;;  %s1373_s8 = smov [#allocation7]  }
   0xc   : > { %p1452_p3 = pnand %p927_p0, %p187_p2  ;;  %s221_s30 = sshll.u32 %s1372_s29, 4  ;;  %s1459_s30 = int_to_ptr.vmem [resolvable:$true] %s221_s30 }
   0xd   : > { %s211_s9 = sshll.u32 %s1373_s8, 4  ;;  %s1121_s12 = scalar_lea.hbm %s1738_s1, 16  ;;  %s1467_s9 = int_to_ptr.vmem [resolvable:$true] %s211_s9 }
   0xe   : > { %s1747_s28 = scalar_select %p1452_p3, 1, 0 }
   0xf   : > { %p1031_p5 = pneg %p1452_p3  ;;  %p1122_p7 = scmp.ne.s32.totalorder %s1738_s1, %s1121_s12 }
  0x10   : > { %p1128_p11 = scmp.lt.u32.totalorder %s1121_s12, %s1738_s1 }
  0x11   : > { %p1463_p6 = pnand %p1031_p5, %p1744_p1 }
  0x13   : > { %p1477_p8 = pneg %p1463_p6 }
  0x15   : > { %p1124_p9 = pnand %p1477_p8, %p1122_p7 }
  0x17   : > { %p1125_p10 = pneg %p1124_p9 }
  0x19   : > { %p1130_p12 = pnand %p1128_p11, %p1125_p10 }
  0x1b   : > { %1133 = shalt.err (!%p1130_p12)
}
  0x1c   : > { %s1134_s18 = scalar_lea.vmem %s1450_s26, 16  ;;  %s1141_s19 = scalar_lea.vmem %s1450_s26, 32 }
  0x1d   : > { %p1135_p13 = scmp.ne.s32.totalorder %s1450_s26, %s1134_s18  ;;  %p1142_p5 = scmp.lt.s32.totalorder %s1450_s26, %s1450_s26 }
  0x1e   : > { %p1143_p7 = scmp.lt.s32.totalorder %s1141_s19, %s1134_s18 }
  0x1f   : > { %p1137_p0 = pnand %p1135_p13, %p1477_p8 }
  0x20   : > { %p1144_p9 = por %p1143_p7, %p1142_p5 }
  0x21   : > { %p1138_p2 = pneg %p1137_p0 }
  0x23   : > { %p1145_p4 = pnand %p1144_p9, %p1138_p2 }
  0x25   : > { %1148 = shalt.err (!%p1145_p4)
}
  0x26   : > { %1034 = dma.hbm_to_vmem [thread:$0]  (!%p1463_p6), %s1738_s1, 16, %s1450_s26, [#allocation6]  }
  0x27   : > { %s1149_s10 = scalar_lea.hbm %s1740_s3, 256 }
  0x28   : > { %p1150_p10 = scmp.ne.s32.totalorder %s1740_s3, %s1149_s10  ;;  %p1156_p4 = scmp.lt.u32.totalorder %s1149_s10, %s1740_s3 }
  0x2a   : > { %p1152_p11 = pnand %p1150_p10, %p1477_p8 }
  0x2c   : > { %p1153_p12 = pneg %p1152_p11 }
  0x2e   : > { %p1158_p13 = pnand %p1156_p4, %p1153_p12 }
  0x30   : > { %1161 = shalt.err (!%p1158_p13)
}
  0x31   : > { %s1162_s26 = scalar_lea.vmem %s1459_s30, 256  ;;  %p1170_p7 = scmp.lt.s32.totalorder %s1459_s30, %s1459_s30 }
  0x32   : > { %p1163_p0 = scmp.ne.s32.totalorder %s1459_s30, %s1162_s26  ;;  %p1171_p9 = scmp.lt.s32.totalorder %s1162_s26, %s1162_s26 }
  0x34   : > { %p1165_p2 = pnand %p1163_p0, %p1477_p8  ;;  %p1172_p10 = por %p1171_p9, %p1170_p7 }
  0x36   : > { %p1166_p5 = pneg %p1165_p2 }
  0x38   : > { %p1173_p11 = pnand %p1172_p10, %p1166_p5 }
  0x3a   : > { %1176 = shalt.err (!%p1173_p11)
}
  0x3b   : > { %s1374_s16 = smov 64   ;;  %s1375_s17 = smov 4  }
  0x3c   : > { %1040 = dma.hbm_to_vmem [thread:$0]  (!%p1463_p6), %s1740_s3, 256, %s1459_s30, [#allocation9], %s1374_s16, %s1374_s16, %s1375_s17  }
  0x3d   : > { %s1177_s29 = scalar_lea.hbm %s1739_s2, 16 }
  0x3e   : > { %p1178_p12 = scmp.ne.s32.totalorder %s1739_s2, %s1177_s29  ;;  %p1184_p0 = scmp.lt.u32.totalorder %s1177_s29, %s1739_s2 }
  0x40   : > { %p1180_p4 = pnand %p1178_p12, %p1477_p8 }
  0x42   : > { %p1181_p13 = pneg %p1180_p4 }
  0x44   : > { %p1186_p2 = pnand %p1184_p0, %p1181_p13 }
  0x46   : > { %1189 = shalt.err (!%p1186_p2)
}
  0x47   : > { %s1190_s30 = scalar_lea.vmem %s1467_s9, 16  ;;  %s1197_s13 = scalar_lea.vmem %s1467_s9, 32 }
  0x48   : > { %p1191_p5 = scmp.ne.s32.totalorder %s1467_s9, %s1190_s30  ;;  %p1198_p10 = scmp.lt.s32.totalorder %s1467_s9, %s1467_s9 }
  0x49   : > { %p1199_p11 = scmp.lt.s32.totalorder %s1197_s13, %s1190_s30 }
  0x4a   : > { %p1193_p7 = pnand %p1191_p5, %p1477_p8 }
  0x4b   : > { %p1200_p12 = por %p1199_p11, %p1198_p10 }
  0x4c   : > { %p1194_p9 = pneg %p1193_p7 }
  0x4e   : > { %p1201_p4 = pnand %p1200_p12, %p1194_p9 }
  0x50   : > { %1204 = shalt.err (!%p1201_p4)
}
  0x51   : > { %1037 = dma.hbm_to_vmem [thread:$0]  (!%p1463_p6), %s1739_s2, 16, %s1467_s9, [#allocation6]  }
  0x52   : > { %s1376_s16 = smov [#allocation10]   ;;  %s1377_s18 = smov [#allocation11]  }
  0x53   : > { %s235_s17 = sshll.u32 %s1376_s16, 4  ;;  %s245_s19 = sshll.u32 %s1377_s18, 4  ;;  %s236_s17 = int_to_ptr.vmem [resolvable:$true] %s235_s17  ;;  %s246_s19 = int_to_ptr.vmem [resolvable:$true] %s245_s19 }
  0x54   : > { %s1205_s29 = scalar_lea.hbm %s1741_s4, 16 }
  0x55   : > { %p1206_p13 = scmp.ne.s32.totalorder %s1741_s4, %s1205_s29  ;;  %p1212_p5 = scmp.lt.u32.totalorder %s1205_s29, %s1741_s4 }
  0x57   : > { %p1208_p0 = pnand %p1206_p13, %p1477_p8 }
  0x59   : > { %p1209_p2 = pneg %p1208_p0 }
  0x5b   : > { %p1214_p7 = pnand %p1212_p5, %p1209_p2 }
  0x5d   : > { %1217 = shalt.err (!%p1214_p7)
}
  0x5e   : > { %s1218_s9 = scalar_lea.vmem %s236_s17, 16  ;;  %s1225_s30 = scalar_lea.vmem %s236_s17, 32 }
  0x5f   : > { %p1219_p9 = scmp.ne.s32.totalorder %s236_s17, %s1218_s9  ;;  %p1226_p12 = scmp.lt.s32.totalorder %s236_s17, %s236_s17 }
  0x60   : > { %p1227_p4 = scmp.lt.s32.totalorder %s1225_s30, %s1218_s9 }
  0x61   : > { %p1221_p10 = pnand %p1219_p9, %p1477_p8 }
  0x62   : > { %p1228_p1 = por %p1227_p4, %p1226_p12 }
  0x63   : > { %p1222_p11 = pneg %p1221_p10 }
  0x65   : > { %p1229_p3 = pnand %p1228_p1, %p1222_p11 }
  0x67   : > { %1232 = shalt.err (!%p1229_p3)
}
  0x68   : > { %1043 = dma.hbm_to_vmem [thread:$0]  (!%p1463_p6), %s1741_s4, 16, %s236_s17, [#allocation9]  }
  0x69   : > { %s1233_s18 = scalar_lea.hbm %s1742_s5, 2048 }
  0x6a   : > { %p1234_p13 = scmp.ne.s32.totalorder %s1742_s5, %s1233_s18  ;;  %p1240_p3 = scmp.lt.u32.totalorder %s1233_s18, %s1742_s5 }
  0x6c   : > { %p1236_p0 = pnand %p1234_p13, %p1477_p8 }
  0x6e   : > { %p1237_p1 = pneg %p1236_p0 }
  0x70   : > { %p1242_p2 = pnand %p1240_p3, %p1237_p1 }
  0x72   : > { %1245 = shalt.err (!%p1242_p2)
}
  0x73   : > { %s1246_s10 = scalar_lea.vmem %s246_s19, 2048  ;;  %p1254_p10 = scmp.lt.s32.totalorder %s246_s19, %s246_s19 }
  0x74   : > { %p1247_p5 = scmp.ne.s32.totalorder %s246_s19, %s1246_s10  ;;  %p1255_p11 = scmp.lt.s32.totalorder %s1246_s10, %s1246_s10 }
  0x76   : > { %p1249_p7 = pnand %p1247_p5, %p1477_p8  ;;  %p1256_p12 = por %p1255_p11, %p1254_p10 }
  0x78   : > { %p1250_p9 = pneg %p1249_p7 }
  0x7a   : > { %p1257_p4 = pnand %p1256_p12, %p1250_p9 }
  0x7c   : > { %1260 = shalt.err (!%p1257_p4)
}
  0x7d   : > { %s1378_s17 = smov 512   ;;  %s1379_s15 = smov 32  }
  0x7e   : > { %1046 = dma.hbm_to_vmem [thread:$0]  (!%p1463_p6), %s1742_s5, 2048, %s246_s19, [#allocation12], %s1378_s17, %s1378_s17, %s1379_s15  }
  0x7f   : > { %s926_s9 = sadd.s32 4294967294, %s1369_s24   ;;  %s1584_s30 = sadd.s32 1, %s1369_s24  }
  0x80   : > { %s32_s13 = sadd.s32 1, %s1365_s23  ;;  %s29_s14 = ssub.s32 %s1369_s24, %s1584_s30 }
  0x81   : > { %p39_p8 = scmp.ne.s32.totalorder %s1365_s23, %s1361_s22  ;;  %p30_p13 = scmp.eq.s32.totalorder %s29_s14, 0 }
  0x82   : > { %p40_p0 = scmp.eq.s32.totalorder %s1369_s24, 0  ;;  %p45_p1 = scmp.ne.s32.totalorder %s1361_s22, %s1357_s21 }
  0x83   : > { %p174_p3 = scmp.eq.s32.totalorder %s1445_s27, 1  ;;  %p1750_p5 = scmp.eq.s32.totalorder %s1445_s27, 0 }
  0x84   : > { %s1596_s26 = scalar_select %p30_p13, %s1365_s23, %s32_s13  }
  0x85   : > { %p41_p2 = por %p40_p0, %p39_p8  ;;  %p1600_p7 = por %p1750_p5, %p45_p1 }
  0x86   : > { %p1604_p6 = por %p174_p3, %p39_p8  ;;  %p180_p9 = scmp.eq.s32.totalorder %s926_s9, 1 }
  0x87   : > { %p1060_p10 = scmp.lt.s32.totalorder %s1369_s24, 2  ;;  %s259_s16 = sand.u32 1, %s1365_s23  }
  0x88   : > { %s1752_s19 = scalar_select %p1604_p6, 1, 0 }
  0x89   : > { %p1610_p11 = por %p180_p9, %p45_p1  ;;  %s934_s20 = sshll.u32 %s259_s16, 4 }
  0x8a   : > { %s985_s25 = sshll.u32 %s1369_s24, 8  ;;  %s263_s17 = scalar_lea.vmem [#allocation2], %s934_s20 }
  0x8b   : > { %s1753_s18 = scalar_select %p1610_p11, 1, 0 }
  0x8c   : > { %s1618_s10 = scalar_lea.hbm %s1737_s0, %s985_s25  ;;  %s270_s15 = sshll.u32 %s263_s17, 4  ;;  %s1624_s15 = int_to_ptr.vmem [resolvable:$true] %s270_s15 }
  0x8d   : > { %p1620_p12 = pnand %p1060_p10, %p41_p2  ;;  %s1626_s12 = scalar_lea.sflag [#allocation3], %s259_s16 }
  0x8e   : > { %s1261_s9 = scalar_lea.hbm %s1618_s10, 256  ;;  %s1266_s20 = scalar_lea.hbm %s1737_s0, 512 }
  0x8f   : > { %p1262_p4 = scmp.ne.s32.totalorder %s1618_s10, %s1261_s9  ;;  %p1263_p8 = pneg %p1620_p12 }
  0x90   : > { %p1267_p1 = scmp.lt.u32.totalorder %s1618_s10, %s1737_s0  ;;  %p1268_p3 = scmp.lt.u32.totalorder %s1266_s20, %s1261_s9 }
  0x91   : > { %p1264_p13 = pnand %p1263_p8, %p1262_p4  ;;  %p1270_p5 = scmp.lt.u32.totalorder %s1261_s9, %s1618_s10 }
  0x92   : > { %p1269_p2 = por %p1268_p3, %p1267_p1 }
  0x93   : > { %p1265_p0 = pneg %p1264_p13 }
  0x94   : > { %p1271_p9 = por %p1270_p5, %p1269_p2 }
  0x96   : > { %p1272_p10 = pnand %p1271_p9, %p1265_p0 }
  0x98   : > { %1275 = shalt.err (!%p1272_p10)
}
  0x99   : > { %s1276_s16 = scalar_lea.vmem %s1624_s15, 256  ;;  %s1380_s8 = smov [#allocation2]  }
  0x9a   : > { %p1277_p4 = scmp.ne.s32.totalorder %s1624_s15, %s1276_s16  ;;  %s1281_s17 = sshll.u32 %s1380_s8, 4  ;;  %s1282_s17 = int_to_ptr.vmem [resolvable:$false] %s1281_s17 }
  0x9b   : > { %s1283_s13 = scalar_lea.vmem %s1282_s17, 512  ;;  %p1284_p6 = scmp.lt.s32.totalorder %s1624_s15, %s1282_s17 }
  0x9c   : > { %p1279_p13 = pnand %p1277_p4, %p1263_p8  ;;  %p1285_p1 = scmp.lt.s32.totalorder %s1283_s13, %s1276_s16 }
  0x9e   : > { %p1280_p11 = pneg %p1279_p13  ;;  %p1286_p3 = por %p1285_p1, %p1284_p6 }
  0xa0   : > { %p1287_p2 = pnand %p1286_p3, %p1280_p11 }
  0xa2   : > { %1290 = shalt.err (!%p1287_p2)
}
  0xa3   : > { %s1381_s9 = smov 128   ;;  %s1382_s14 = smov 8  }
  0xa4   : > { %1050 = dma.hbm_to_vmem [thread:$0]  (!%p1620_p12), %s1618_s10, 256, %s1624_s15, %s1626_s12, %s1381_s9, %s1381_s9, %s1382_s14  }
  0xa5   : > { %p1755_p8 = scmp.ne.s32.totalorder %s1747_s28, 0 }
  0xa6   : > { %s1657_s20 = sand.u32 (!%p1755_p8), 1, %s1361_s22  }
  0xa7   : > { %282 = sbr.rel (%p1755_p8) target bundleno = 820 (0x334), region = 44  ;;  %s938_s25 = sshll.u32 (!%p1755_p8), %s1657_s20, 4 }
  0xa8   : > { %s285_s29 = scalar_lea.sflag (!%p1755_p8), [#allocation3], %s1657_s20  ;;  %s288_s16 = scalar_lea.vmem (!%p1755_p8), [#allocation2], %s938_s25 }
  0xae   : > { %1336 = dma.done.wait (%p1600_p7), %s285_s29, 256  }
  0xaf   : > { %1338 = vsyncadd (%p1600_p7), %s285_s29, 4294967040  ;;  %p1756_p6 = scmp.eq.s32.totalorder %s1445_s27, 0 }
  0xb1   : > { %1340 = dma.done.wait (%p1756_p6), [#allocation6], 32   ;;  %p1757_p11 = pmov %p1756_p6 }
  0xb2   : > { %p1758_p12 = pmov %p1756_p6 }
  0xb3   : > { %1342 = vsyncadd (%p1757_p11), [#allocation6], 4294967264 }
  0xb4   : > { %1344 = dma.done.wait (%p1758_p12), [#allocation9], 272   ;;  %p1759_p0 = pmov %p1756_p6 }
  0xb6   : > { %1346 = vsyncadd (%p1759_p0), [#allocation9], 4294967024  ;;  %p1760_p5 = pmov %p1759_p0 }
  0xb7   : > { %p1761_p9 = pmov %p1759_p0 }
  0xb8   : > { %1348 = dma.done.wait (%p1760_p5), [#allocation12], 2048  }
  0xb9   : > { %1350 = vsyncadd (%p1761_p9), [#allocation12], 4294965248  ;;  %vm342_vm0 = vcmask 261120   ;;  %v340_v0 = vld [vmem:[%s288_s16] sm:$0xff]  ;;  %v341_v1 = vld [vmem:[%s288_s16 + $0x8] sm:$0xff]  ;;  %v1383_v9 = vmov 0.0  }
  0xba   : > { %v343_v2 = vsel %vm342_vm0, %v340_v0, 0.0  ;;  %v352_v3 = vmul.f32 %v340_v0, %v340_v0  ;;  %v353_v4 = vmul.f32 %v341_v1, %v341_v1  ;;  %v346_v6 = vsel %vm342_vm0, %v341_v1, 0.0  ;;  %v1115_v8 = vld [vmem:[#allocation8] sm:$0xff]   ;;  %999 = vmatprep.subr.bf16.mxu0 %v1383_v9  ;;  %v1116_v10 = vld [vmem:[#allocation8 + $0x8] sm:$0xff]   ;;  %v945_v28 = vld [vmem:[#allocation5] ss:$0 sm:$0xff] }
  0xbb   : > { %344 = vadd.xlane.f32.xlu0 %v343_v2  ;;  %vm1384_vm1 = vmmov 0   ;;  %1000 = vmatpush3.bf16.msra.mxu0 %v1115_v8  ;;  %v946_v33 = vld [vmem:[#allocation7] ss:$0 sm:$0xff]  ;;  %v463_v38 = vld [vmem:[#allocation11] sm:$0xff]  ;;  %v465_v54 = vld [vmem:[#allocation11 + $0x10] sm:$0xff]  ;;  %v1385_v60 = vmov 0  }
  0xbc   : > { %v354_v5 = vsel %vm342_vm0, %v352_v3, 0.0  ;;  %v357_v7 = vsel %vm342_vm0, %v353_v4, 0.0  ;;  %1003 = vmatprep.mubr.msk.bf16.mxu0 %vm1384_vm1, %v1383_v9  ;;  %1001 = vmatprep.subr.bf16.mxu0 %v1383_v9  ;;  %v467_v39 = vld [vmem:[#allocation11 + $0x20] sm:$0xff]  ;;  %v464_v40 = vld [vmem:[#allocation11 + $0x8] sm:$0xff]  ;;  %v469_v55 = vld [vmem:[#allocation11 + $0x30] sm:$0xff]  ;;  %s944_s28 = sshll.u32 %s1657_s20, 6 }
  0xbd   : > { %355 = vadd.xlane.f32.xlu1 %v354_v5  ;;  %v952_v41 = vcombine.high %v463_v38, %v467_v39  ;;  %v468_v42 = vld [vmem:[#allocation11 + $0x28] sm:$0xff]  ;;  %v951_v45 = vcombine.low %v463_v38, %v467_v39  ;;  %v471_v46 = vld [vmem:[#allocation11 + $0x40] sm:$0xff]  ;;  %v466_v56 = vld [vmem:[#allocation11 + $0x18] sm:$0xff]  ;;  %v955_v57 = vcombine.low %v465_v54, %v469_v55  ;;  %v956_v58 = vcombine.high %v465_v54, %v469_v55  ;;  %s336_s7 = scalar_lea.vmem [#allocation13], %s944_s28  ;;  %s995_s15 = sshll.u32 %s1445_s27, 10 }
  0xbe   : > { %v953_v43 = vcombine.low %v464_v40, %v468_v42  ;;  %v954_v44 = vcombine.high %v464_v40, %v468_v42  ;;  %v475_v47 = vld [vmem:[#allocation11 + $0x60] sm:$0xff]  ;;  %v472_v48 = vld [vmem:[#allocation11 + $0x48] sm:$0xff]  ;;  %v470_v59 = vld [vmem:[#allocation11 + $0x38] sm:$0xff]  ;;  %594 = vmatprep.mubr.bf16.mxu1 %v1385_v60  ;;  %s805_s10 = sshll.u32 %s336_s7, 4  ;;  %s1693_s8 = scalar_lea.hbm %s1743_s6, %s995_s15  ;;  %s1688_s10 = int_to_ptr.vmem [resolvable:$true] %s805_s10 }
  0xbf   : > { %347 = vadd.xlane.f32.xlu0 %v346_v6  ;;  %1002 = vmatpush3.bf16.msra.mxu0 %v1116_v10  ;;  %v960_v49 = vcombine.high %v471_v46, %v475_v47  ;;  %v476_v50 = vld [vmem:[#allocation11 + $0x68] sm:$0xff]  ;;  %v959_v53 = vcombine.low %v471_v46, %v475_v47  ;;  %v957_v61 = vcombine.low %v466_v56, %v470_v59  ;;  %v947_v63 = vld [vmem:[#allocation10] ss:$0 sm:$0xff]  ;;  %v473_v6 = vld [vmem:[#allocation11 + $0x50] sm:$0xff]  ;;  %s791_s27 = scalar_lea.sflag [#allocation4], %s1657_s20  ;;  %s1291_s17 = scalar_lea.vmem %s1688_s10, 1024 }
  0xc0   : > { %562 = vmatprep.subr.bf16.mxu1 %v952_v41  ;;  %605 = vmatprep.subr.bf16.mxu0 %v954_v44  ;;  %v961_v51 = vcombine.low %v472_v48, %v476_v50  ;;  %v962_v52 = vcombine.high %v472_v48, %v476_v50  ;;  %v958_v62 = vcombine.high %v466_v56, %v470_v59  ;;  %v474_v8 = vld [vmem:[#allocation11 + $0x58] sm:$0xff]  ;;  %p1292_p7 = scmp.ne.s32.totalorder %s1688_s10, %s1291_s17  ;;  %p1762_p10 = scmp.ne.s32.totalorder %s1752_s19, 0 }
  0xc1   : > { %358 = vadd.xlane.f32.xlu1 %v357_v7  ;;  %563 = vmatpush1.bf16.msra.mxu1 %v951_v45  ;;  %v477_v7 = vld [vmem:[#allocation11 + $0x70] sm:$0xff]  ;;  %v478_v9 = vld [vmem:[#allocation11 + $0x78] sm:$0xff]  ;;  %s1386_s13 = smov [#allocation13]  }
  0xc2   : > { %564 = vmatprep.subr.bf16.mxu1 %v960_v49  ;;  %p1293_p4 = pnand %p1292_p7, %p1762_p10  ;;  %s1295_s9 = sshll.u32 %s1386_s13, 4  ;;  %s1296_s9 = int_to_ptr.vmem [resolvable:$false] %s1295_s9 }
  0xc3   : > { %s1297_s14 = scalar_lea.vmem %s1296_s9, 2048  ;;  %p1298_p1 = scmp.lt.s32.totalorder %s1688_s10, %s1296_s9 }
  0xc4   : > { %p1294_p13 = pneg %p1293_p4  ;;  %p1299_p3 = scmp.lt.s32.totalorder %s1297_s14, %s1291_s17 }
  0xc5   : > { %565 = vmatpush1.bf16.msra.mxu1 %v959_v53 }
  0xc6   : > { %648 = vmatprep.subr.bf16.mxu1 %v956_v58  ;;  %p1300_p2 = por %p1299_p3, %p1298_p1 }
  0xc8   : > { %p1301_p8 = pnand %p1300_p2, %p1294_p13 }
 0x148   : > { %v345_v11 = vpop.xlane.xlu0 %344 }
 0x149   : > { %v350_v12 = vmul.f32 0.03125, %v345_v11 }
 0x14a   : > { %v356_v13 = vpop.xlane.xlu1 %355 }
 0x14b   : > { %v362_v14 = vmul.f32 %v350_v12, %v350_v12  ;;  %v360_v15 = vmul.f32 0.03125, %v356_v13  ;;  %v366_v25 = vsub.f32 %v340_v0, %v350_v12  ;;  %v964_v13 = vcombine.high %v473_v6, %v477_v7 }
 0x14c   : > { %v348_v16 = vpop.xlane.xlu0 %347 }
 0x14d   : > { %v364_v17 = vsub.f32 %v360_v15, %v362_v14  ;;  %v351_v18 = vmul.f32 0.03125, %v348_v16  ;;  %v966_v14 = vcombine.high %v474_v8, %v478_v9  ;;  %v963_v15 = vcombine.low %v473_v6, %v477_v7 }
 0x14e   : > { %v359_v19 = vpop.xlane.xlu1 %358  ;;  %v965_v16 = vcombine.low %v474_v8, %v478_v9 }
 0x14f   : > { %v368_v20 = vadd.f32 1e-05, %v364_v17  ;;  %v363_v21 = vmul.f32 %v351_v18, %v351_v18  ;;  %v361_v22 = vmul.f32 0.03125, %v359_v19  ;;  %v367_v29 = vsub.f32 %v341_v1, %v351_v18 }
 0x151   : > { %1117 = vrsqrt.f32 %v368_v20  ;;  %v365_v23 = vsub.f32 %v361_v22, %v363_v21 }
 0x153   : > { %v369_v24 = vadd.f32 1e-05, %v365_v23 }
 0x155   : > { %1119 = vrsqrt.f32 %v369_v24 }
 0x15b   : > { %v1118_v26 = vpop.eup %1117 }
 0x15c   : > { %v372_v27 = vmul.f32 %v1118_v26, %v366_v25 }
 0x15e   : > { %v381_v32 = vmul.f32 %v945_v28, %v372_v27 }
 0x15f   : > { %v1120_v30 = vpop.eup %1119 }
 0x160   : > { %v373_v31 = vmul.f32 %v1120_v30, %v367_v29  ;;  %v390_v35 = vadd.f32 %v946_v33, %v381_v32 }
 0x162   : > { %v382_v34 = vmul.f32 %v945_v28, %v373_v31 }
 0x164   : > { %v391_v36 = vadd.f32 %v946_v33, %v382_v34 }
 0x166   : > { %v392_v37 = vpack.c.bf16 %v391_v36, %v390_v35 }
 0x168   : > { %1004 = vmatmul.mubr.msk.bf16.vlgmr.msra.gmra.mrb[0].mxu0 %vm342_vm0, %v392_v37 }
 0x169   : > { %606 = vmatpush1.bf16.msra.mxu0 %v953_v43  ;;  %637 = vmatprep.mubr.bf16.mxu0 %v1385_v60 }
 0x16a   : > { %607 = vmatprep.subr.bf16.mxu0 %v962_v52 }
 0x16d   : > { %608 = vmatpush1.bf16.msra.mxu0 %v961_v51 }
 0x16e   : > { %691 = vmatprep.subr.bf16.mxu0 %v958_v62 }
 0x23b   : > { %v453_v0 = vpop.f32.mrb[0].mxu0 }
 0x23c   : > { %v454_v1 = vadd.f32 %v947_v63, %v453_v0  ;;  %v1005_v2 = vpop.f32.mrb[1].mxu0 }
 0x23d   : > { %v456_v3 = vpop.f32.mrb[2].mxu0 }
 0x23e   : > { %v457_v4 = vadd.f32 %v947_v63, %v456_v3  ;;  %v1006_v5 = vpop.f32.mrb[3].mxu0  ;;  %v460_v10 = vmax.f32 %v454_v1, 0.0 }
 0x240   : > { %v461_v11 = vmax.f32 %v457_v4, 0.0 }
 0x242   : > { %v462_v12 = vpack.c.bf16 %v461_v11, %v460_v10 }
 0x244   : > { %967 = vmatmul.mubr.msk.bf16.vlgmr.msra.gmra.mrb[0].mxu1 %vm342_vm0, %v462_v12  ;;  %968 = vmatmul.mubr.msk.bf16.vlgmr.msra.gmra.mrb[4].mxu0 %vm342_vm0, %v462_v12 }
 0x245   : > { %649 = vmatpush1.bf16.msra.mxu1 %v955_v57  ;;  %692 = vmatpush1.bf16.msra.mxu0 %v957_v61 }
 0x246   : > { %650 = vmatprep.subr.bf16.mxu1 %v964_v13  ;;  %693 = vmatprep.subr.bf16.mxu0 %v966_v14 }
 0x247   : > { %680 = vmatprep.mubr.bf16.mxu1 %v1385_v60  ;;  %723 = vmatprep.mubr.bf16.mxu0 %v1385_v60 }
 0x249   : > { %651 = vmatpush1.bf16.msra.mxu1 %v963_v15  ;;  %694 = vmatpush1.bf16.msra.mxu0 %v965_v16 }
 0x24c   : > { %969 = vmatmul.mubr.msk.bf16.vlgmr.msra.gmra.mrb[4].mxu1 %vm342_vm0, %v462_v12  ;;  %970 = vmatmul.mubr.msk.bf16.vlgmr.msra.gmra.mrb[8].mxu0 %vm342_vm0, %v462_v12 }
 0x317   : > { %v596_v17 = vpop.f32.mrb[0].mxu1  ;;  %v639_v18 = vpop.f32.mrb[4].mxu0 }
 0x318   : > { %v598_v19 = vpop.f32.mrb[1].mxu1  ;;  %v641_v20 = vpop.f32.mrb[5].mxu0 }
 0x319   : > { %v986_v21 = vpack.c.bf16 %v598_v19, %v596_v17  ;;  %v987_v22 = vpack.c.bf16 %v641_v20, %v639_v18  ;;  %v600_v23 = vpop.f32.mrb[2].mxu1  ;;  %v643_v24 = vpop.f32.mrb[6].mxu0 }
 0x31a   : > { %v602_v25 = vpop.f32.mrb[3].mxu1  ;;  %v645_v26 = vpop.f32.mrb[7].mxu0 }
 0x31b   : > { %782 = vst [vmem:[%s336_s7] sm:$0xff] %v986_v21  ;;  %783 = vst [vmem:[%s336_s7 + $0x8] sm:$0xff] %v987_v22  ;;  %v990_v27 = vpack.c.bf16 %v602_v25, %v600_v23  ;;  %v991_v28 = vpack.c.bf16 %v645_v26, %v643_v24 }
 0x31d   : > { %786 = vst [vmem:[%s336_s7 + $0x20] sm:$0xff] %v990_v27  ;;  %787 = vst [vmem:[%s336_s7 + $0x28] sm:$0xff] %v991_v28 }
 0x31f   : > { %v682_v29 = vpop.f32.mrb[4].mxu1  ;;  %v725_v30 = vpop.f32.mrb[8].mxu0 }
 0x320   : > { %v684_v31 = vpop.f32.mrb[5].mxu1  ;;  %v727_v32 = vpop.f32.mrb[9].mxu0 }
 0x321   : > { %v988_v33 = vpack.c.bf16 %v684_v31, %v682_v29  ;;  %v989_v34 = vpack.c.bf16 %v727_v32, %v725_v30  ;;  %v686_v35 = vpop.f32.mrb[6].mxu1  ;;  %v729_v36 = vpop.f32.mrb[10].mxu0 }
 0x322   : > { %v688_v37 = vpop.f32.mrb[7].mxu1  ;;  %v731_v38 = vpop.f32.mrb[11].mxu0 }
 0x323   : > { %784 = vst [vmem:[%s336_s7 + $0x10] sm:$0xff] %v988_v33  ;;  %785 = vst [vmem:[%s336_s7 + $0x18] sm:$0xff] %v989_v34  ;;  %v992_v39 = vpack.c.bf16 %v688_v37, %v686_v35  ;;  %v993_v40 = vpack.c.bf16 %v731_v38, %v729_v36 }
 0x325   : > { %788 = vst [vmem:[%s336_s7 + $0x30] sm:$0xff] %v992_v39  ;;  %789 = vst [vmem:[%s336_s7 + $0x38] sm:$0xff] %v993_v40 }
 0x326   : > { %1304 = shalt.err (!%p1301_p8)
}
 0x327   : > { %s1305_s25 = scalar_lea.hbm %s1693_s8, 1024  ;;  %s1309_s28 = scalar_lea.hbm %s1743_s6, 2048 }
 0x328   : > { %p1306_p6 = scmp.ne.s32.totalorder %s1693_s8, %s1305_s25  ;;  %p1310_p0 = scmp.lt.u32.totalorder %s1693_s8, %s1743_s6 }
 0x329   : > { %p1311_p5 = scmp.lt.u32.totalorder %s1309_s28, %s1305_s25  ;;  %p1313_p7 = scmp.lt.u32.totalorder %s1305_s25, %s1693_s8 }
 0x32a   : > { %p1307_p11 = pnand %p1306_p6, %p1762_p10 }
 0x32b   : > { %p1312_p9 = por %p1311_p5, %p1310_p0 }
 0x32c   : > { %p1308_p12 = pneg %p1307_p11 }
 0x32d   : > { %p1314_p4 = por %p1313_p7, %p1312_p9 }
 0x32f   : > { %p1315_p13 = pnand %p1314_p4, %p1308_p12 }
 0x331   : > { %1318 = shalt.err (!%p1315_p13)
}
 0x332   : > { %s1387_s11 = smov 512   ;;  %s1388_s12 = smov 32  }
 0x333   : > { %1029 = dma.vmem_to_hbm [thread:$0]  (%p1762_p10), %s1688_s10, 1024, %s1693_s8, %s791_s27, %s1387_s11, %s1387_s11, %s1388_s12  }
 0x334 PF: > { %s820_s17 = sand.u32 1, %s1357_s21   ;;  %p1763_p1 = scmp.ne.s32.totalorder %s1753_s18, 0 }
 0x335   : > { %p1764_p3 = scmp.ge.s32.totalorder %s1369_s24, 2  ;;  %s821_s13 = scalar_lea.sflag [#allocation4], %s820_s17 }
 0x337   : > { %p1052_p2 = pnand %p1764_p3, %p1763_p1 }
 0x339   : > { %1352 = dma.done.wait (!%p1052_p2), %s821_s13, 1024  }
 0x33a   : > { %1354 = vsyncadd (!%p1052_p2), %s821_s13, 4294966272  ;;  %p22_p8 = scmp.ge.s32.totalorder %s1584_s30, 4   ;;  %s1765_s21 = smov %s1361_s22 }
 0x33b   : > { %s1766_s22 = smov %s1365_s23  ;;  %s1767_s23 = smov %s1596_s26 }
 0x33c   : > { %s1768_s24 = smov %s1584_s30  ;;  %24 = sbr.rel (!%p22_p8) target bundleno = 8 (0x8), region = 109 }
 0x343   :  { %826 = vsyncpa [#allocation3], 1 }
 0x344   :  { %828 = vsyncpa [#allocation3 + $0x1], 1 }
 0x345   :  { %829 = vsyncpa [#allocation6], 1 }
 0x346   :  { %830 = vsyncpa [#allocation9], 1 }
 0x347   :  { %831 = vsyncpa [#allocation12], 1 }
 0x348   :  { %832 = vsyncpa [#allocation4], 1 }
 0x349   :  { %834 = vsyncpa [#allocation4 + $0x1], 1 }

// kernel: audio_to_face_forward.3
= control target key start
LH: loop header
LB: loop body
LE: loop exit
PB: predicated region body
PF: predicated region fallthrough
CT: control target
= control target key end

     0   :  { %12 = vsyncpa [#allocation9], 0  ;;  %s6886_s0 = inlined_call_operand.vmem [shape: s32[2,1], index: 0, kind: input, shape index: {}]   ;;  %s6887_s1 = inlined_call_operand.vmem [shape: bf16[16,2,1024], index: 1, kind: input, shape index: {}, may-alias: {1,2}]   ;;  %s6888_s2 = inlined_call_operand.vmem [shape: bf16[16,2,1024], index: 2, kind: input, shape index: {}, may-alias: {1,2}]   ;;  %s6889_s3 = inlined_call_operand.hbm [shape: f32[128,512], index: 3, kind: input, shape index: {}]   ;;  %s6890_s4 = inlined_call_operand.hbm [shape: f32[128,512], index: 4, kind: input, shape index: {}]   ;;  %s6891_s5 = inlined_call_operand.vmem [shape: f32[16,2,128], index: 5, kind: output, shape index: {0}]   ;;  %s6892_s6 = inlined_call_operand.vmem [shape: f32[16,2,128], index: 6, kind: output, shape index: {1}]  }
   0x1   :  { %13 = vsyncpa [#allocation11], 0  ;;  %s5671_s21 = smov 0   ;;  %s5673_s22 = smov 0  }
   0x2   :  { %s5675_s23 = smov 0   ;;  %s5677_s24 = smov 0  }
   0x3   :  { %s5679_s25 = smov 0  }
   0x4 LB: > { %s5697_s26 = sadd.s32 4294967295, %s5626_s25   ;;  %s5700_s27 = sadd.s32 1, %s5626_s25   ;;  %s5626_s25 = sphi %s5679_s25, %s7213_s25   ;;  %s5622_s24 = sphi %s5677_s24, %s7212_s24   ;;  %s5618_s23 = sphi %s5675_s23, %s7211_s23   ;;  %s5614_s22 = sphi %s5673_s22, %s7210_s22   ;;  %s5610_s21 = sphi %s5671_s21, %s7209_s21  }
   0x5   : > { %s44_s28 = ssub.s32 %s5626_s25, %s5700_s27  ;;  %s47_s29 = sadd.s32 1, %s5622_s24 }
   0x6   : > { %p45_p0 = scmp.eq.s32.totalorder %s44_s28, 0  ;;  %p54_p1 = scmp.ne.s32.totalorder %s5622_s24, %s5618_s23 }
   0x7   : > { %p55_p2 = scmp.eq.s32.totalorder %s5626_s25, 0  ;;  %s6895_s30 = ssub.s32 1, %s5626_s25 }
   0x8   : > { %s5710_s7 = scalar_select %p45_p0, %s5622_s24, %s47_s29  }
   0x9   : > { %p5712_p3 = por %p55_p2, %p54_p1  ;;  %s71_s9 = ssub.s32 1, %s5700_s27 }
   0xa   : > { %6979 = sst [smem:[#allocation14_spill]] %s5710_s7  ;;  %s72_s10 = ssub.s32 %s6895_s30, %s71_s9 }
   0xb   : > { %s6980_s8 = scalar_select %p5712_p3, 1, 0 }
   0xc   : > { %s75_s11 = sadd.s32 1, %s5614_s22  ;;  %p73_p4 = scmp.eq.s32.totalorder %s72_s10, 0 }
   0xd   : > { %p82_p5 = scmp.ne.s32.totalorder %s5614_s22, %s5610_s21  ;;  %p4068_p6 = scmp.ge.s32.totalorder %s5626_s25, 1 }
   0xe   : > { %p195_p7 = scmp.lt.s32.totalorder %s5626_s25, 3  ;;  %p6893_p11 = scmp.eq.s32.totalorder %s5697_s26, 0 }
   0xf   : > { %s5725_s12 = scalar_select %p73_p4, %s5614_s22, %s75_s11  }
  0x10   : > { %p5727_p8 = por %p82_p5, %p55_p2  ;;  %p5731_p9 = pnand %p4068_p6, %p195_p7 }
  0x11   : > { %6981 = sst [smem:[#allocation15_spill]] %s5725_s12  ;;  %s5628_s15 = smov [#allocation8]  }
  0x12   : > { %s6982_s13 = scalar_select %p5727_p8, 1, 0 }
  0x13   : > { %s6983_s14 = scalar_select %p5731_p9, 1, 0 }
  0x14   : > { %p5208_p12 = pneg %p5731_p9  ;;  %s210_s16 = sshll.u32 %s5628_s15, 4  ;;  %s211_s16 = int_to_ptr.vmem [resolvable:$true] %s210_s16 }
  0x15   : > { %s5629_s18 = smov [#allocation10]   ;;  %s5524_s29 = scalar_lea.hbm %s6889_s3, 8192 }
  0x16   : > { %p5741_p13 = pnand %p6893_p11, %p5208_p12  ;;  %s223_s19 = sshll.u32 %s5629_s18, 4  ;;  %s224_s19 = int_to_ptr.vmem [resolvable:$true] %s223_s19 }
  0x17   : > { %p5525_p0 = scmp.ne.s32.totalorder %s6889_s3, %s5524_s29  ;;  %p5531_p5 = scmp.lt.u32.totalorder %s5524_s29, %s6889_s3 }
  0x18   : > { %p5526_p1 = pneg %p5741_p13 }
  0x1a   : > { %p5527_p2 = pnand %p5526_p1, %p5525_p0 }
  0x1c   : > { %p5528_p4 = pneg %p5527_p2 }
  0x1e   : > { %p5533_p6 = pnand %p5531_p5, %p5528_p4 }
  0x20   : > { %5536 = shalt.err (!%p5533_p6)
}
  0x21   : > { %s5537_s18 = scalar_lea.vmem %s211_s16, 8192  ;;  %p5545_p11 = scmp.lt.s32.totalorder %s211_s16, %s211_s16 }
  0x22   : > { %p5538_p7 = scmp.ne.s32.totalorder %s211_s16, %s5537_s18  ;;  %p5546_p9 = scmp.lt.s32.totalorder %s5537_s18, %s5537_s18 }
  0x24   : > { %p5540_p12 = pnand %p5538_p7, %p5526_p1  ;;  %p5547_p8 = por %p5546_p9, %p5545_p11 }
  0x26   : > { %p5541_p10 = pneg %p5540_p12 }
  0x28   : > { %p5548_p3 = pnand %p5547_p8, %p5541_p10 }
  0x2a   : > { %5551 = shalt.err (!%p5548_p3)
}
  0x2b   : > { %s5630_s20 = smov 512   ;;  %s5631_s28 = smov 32  }
  0x2c   : > { %5211 = dma.hbm_to_vmem [thread:$0]  (!%p5741_p13), %s6889_s3, 8192, %s211_s16, [#allocation9], %s5630_s20, %s5630_s20, %s5631_s28  }
  0x2d   : > { %s5552_s15 = scalar_lea.hbm %s6890_s4, 8192 }
  0x2e   : > { %p5553_p9 = scmp.ne.s32.totalorder %s6890_s4, %s5552_s15  ;;  %p5559_p10 = scmp.lt.u32.totalorder %s5552_s15, %s6890_s4 }
  0x30   : > { %p5555_p3 = pnand %p5553_p9, %p5526_p1 }
  0x32   : > { %p5556_p8 = pneg %p5555_p3 }
  0x34   : > { %p5561_p11 = pnand %p5559_p10, %p5556_p8 }
  0x36   : > { %5564 = shalt.err (!%p5561_p11)
}
  0x37   : > { %s5565_s16 = scalar_lea.vmem %s224_s19, 8192  ;;  %p5573_p5 = scmp.lt.s32.totalorder %s224_s19, %s224_s19 }
  0x38   : > { %p5566_p0 = scmp.ne.s32.totalorder %s224_s19, %s5565_s16  ;;  %p5574_p6 = scmp.lt.s32.totalorder %s5565_s16, %s5565_s16 }
  0x3a   : > { %p5568_p2 = pnand %p5566_p0, %p5526_p1  ;;  %p5575_p7 = por %p5574_p6, %p5573_p5 }
  0x3c   : > { %p5569_p4 = pneg %p5568_p2 }
  0x3e   : > { %p5576_p12 = pnand %p5575_p7, %p5569_p4 }
  0x40   : > { %5579 = shalt.err (!%p5576_p12)
}
  0x41   : > { %5214 = dma.hbm_to_vmem [thread:$0]  (!%p5741_p13), %s6890_s4, 8192, %s224_s19, [#allocation11], %s5630_s20, %s5630_s20, %s5631_s28  }
  0x42   : > { %p4071_p9 = scmp.ge.s32.totalorder %s5626_s25, 2 }
  0x43   : > { %p6985_p3 = scmp.ne.s32.totalorder (!%p4071_p9), %s6980_s8, 0 }
  0x44   : > { %233 = sbr.rel (%p4071_p9) target bundleno = 94 (0x5e), region = 28 }
  0x4b   : > { %236 = sbr.rel (!%p6985_p3) target bundleno = 84 (0x54), region = 32  ;;  %s238_s12 = sand.u32 (%p6985_p3), 1, %s5622_s24  }
  0x4c   : > { %s4175_s29 = sshll.u32 (%p6985_p3), %s5626_s25, 6  ;;  %s4072_s9 = sshll.u32 (%p6985_p3), %s238_s12, 5 }
  0x4d   : > { %s243_s15 = scalar_lea.vmem (%p6985_p3), %s6887_s1, %s4175_s29  ;;  %s240_s17 = scalar_lea.vmem (%p6985_p3), [#allocation6], %s4072_s9 }
  0x4e   : > { %v259_v0 = vld [vmem:[%s243_s15] sm:$0xf] (%p6985_p3)  ;;  %v261_v1 = vld [vmem:[%s243_s15 + $0x8] sm:$0xf] (%p6985_p3)  ;;  %v263_v2 = vld [vmem:[%s243_s15 + $0x10] sm:$0xf] (%p6985_p3) }
  0x4f   : > { %260 = vst [vmem:[%s240_s17] sm:$0xf] (%p6985_p3), %v259_v0  ;;  %262 = vst [vmem:[%s240_s17 + $0x4] sm:$0xf] (%p6985_p3), %v261_v1  ;;  %v265_v3 = vld [vmem:[%s243_s15 + $0x18] sm:$0xf] (%p6985_p3) }
  0x50   : > { %v267_v4 = vld [vmem:[%s243_s15 + $0x20] sm:$0xf] (%p6985_p3)  ;;  %264 = vst [vmem:[%s240_s17 + $0x8] sm:$0xf] (%p6985_p3), %v263_v2  ;;  %266 = vst [vmem:[%s240_s17 + $0xc] sm:$0xf] (%p6985_p3), %v265_v3 }
  0x51   : > { %268 = vst [vmem:[%s240_s17 + $0x10] sm:$0xf] (%p6985_p3), %v267_v4  ;;  %v269_v5 = vld [vmem:[%s243_s15 + $0x28] sm:$0xf] (%p6985_p3)  ;;  %v271_v6 = vld [vmem:[%s243_s15 + $0x30] sm:$0xf] (%p6985_p3) }
  0x52   : > { %v273_v7 = vld [vmem:[%s243_s15 + $0x38] sm:$0xf]  ;;  %270 = vst [vmem:[%s240_s17 + $0x14] sm:$0xf] %v269_v5  ;;  %272 = vst [vmem:[%s240_s17 + $0x18] sm:$0xf] %v271_v6 }
  0x53   : > { %274 = vst [vmem:[%s240_s17 + $0x1c] sm:$0xf] %v273_v7 }
  0x54 PF: > { %p6986_p13 = scmp.ne.s32.totalorder %s6982_s13, 0 }
  0x55   : > { %s315_s8 = sand.u32 (%p6986_p13), 1, %s5614_s22   ;;  %s6987_s19 = ssub.s32 (%p6986_p13), 1, %s5626_s25 }
  0x56   : > { %313 = sbr.rel (!%p6986_p13) target bundleno = 94 (0x5e), region = 73  ;;  %s4076_s20 = sshll.u32 (%p6986_p13), %s6987_s19, 6 }
  0x57   : > { %s4075_s28 = sshll.u32 (%p6986_p13), %s315_s8, 5  ;;  %s3979_s30 = scalar_lea.vmem (%p6986_p13), %s6888_s2, %s4076_s20 }
  0x58   : > { %v4077_v8 = vld [vmem:[%s3979_s30 + $0x4] sm:$0xf] (%p6986_p13)  ;;  %v4078_v9 = vld [vmem:[%s3979_s30 + $0xc] sm:$0xf] (%p6986_p13)  ;;  %s317_s7 = scalar_lea.vmem (%p6986_p13), [#allocation7], %s4075_s28 }
  0x59   : > { %339 = vst [vmem:[%s317_s7] sm:$0xf] (%p6986_p13), %v4077_v8  ;;  %341 = vst [vmem:[%s317_s7 + $0x4] sm:$0xf] (%p6986_p13), %v4078_v9  ;;  %v4079_v10 = vld [vmem:[%s3979_s30 + $0x14] sm:$0xf] (%p6986_p13) }
  0x5a   : > { %v4080_v11 = vld [vmem:[%s3979_s30 + $0x1c] sm:$0xf] (%p6986_p13)  ;;  %v4081_v12 = vld [vmem:[%s3979_s30 + $0x24] sm:$0xf] (%p6986_p13)  ;;  %343 = vst [vmem:[%s317_s7 + $0x8] sm:$0xf] (%p6986_p13), %v4079_v10 }
  0x5b   : > { %345 = vst [vmem:[%s317_s7 + $0xc] sm:$0xf] (%p6986_p13), %v4080_v11  ;;  %347 = vst [vmem:[%s317_s7 + $0x10] sm:$0xf] (%p6986_p13), %v4081_v12  ;;  %v4082_v13 = vld [vmem:[%s3979_s30 + $0x2c] sm:$0xf] (%p6986_p13) }
  0x5c   : > { %v4083_v14 = vld [vmem:[%s3979_s30 + $0x34] sm:$0xf] (%p6986_p13)  ;;  %v4084_v15 = vld [vmem:[%s3979_s30 + $0x3c] sm:$0xf] (%p6986_p13)  ;;  %349 = vst [vmem:[%s317_s7 + $0x14] sm:$0xf] (%p6986_p13), %v4082_v13 }
  0x5d   : > { %351 = vst [vmem:[%s317_s7 + $0x18] sm:$0xf] %v4083_v14  ;;  %353 = vst [vmem:[%s317_s7 + $0x1c] sm:$0xf] %v4084_v15 }
  0x5e PF: > { %p6988_p1 = scmp.ne.s32.totalorder %s6983_s14, 0 }
  0x60   : > { %395 = sbr.rel (%p6988_p1) target bundleno = 2330 (0x91a), region = 114 }
  0x67   : > { %s398_s25 = sand.u32 1, %s5618_s23   ;;  %s405_s13 = sand.u32 1, %s5610_s21  }
  0x68   : > { %s4086_s12 = sshll.u32 %s398_s25, 5  ;;  %s4087_s29 = sshll.u32 %s405_s13, 5 }
  0x69   : > { %s5807_s9 = scalar_lea.vmem [#allocation6], %s4086_s12  ;;  %s5809_s10 = scalar_lea.vmem [#allocation7], %s4087_s29 }
  0x6a   : > { %p6989_p8 = scmp.eq.s32.totalorder %s5697_s26, 0 }
  0x6c   : > { %5601 = dma.done.wait (%p6989_p8), [#allocation9], 8192   ;;  %p6990_p10 = pmov %p6989_p8 }
  0x6d   : > { %p6991_p11 = pmov %p6989_p8 }
  0x6e   : > { %5603 = vsyncadd (%p6990_p10), [#allocation9], 4294959104 }
  0x6f   : > { %5605 = dma.done.wait (%p6991_p11), [#allocation11], 8192   ;;  %p6992_p0 = pmov %p6989_p8 }
  0x70   : > { %s5820_s21 = sshll.u32 %s5697_s26, 3  ;;  %s461_s23 = ssub.s32 1, %s5697_s26 }
  0x71   : > { %5607 = vsyncadd (%p6992_p0), [#allocation11], 4294959104  ;;  %p456_p2 = scmp.lt.s32.totalorder %s5820_s21, 15  ;;  %s5824_s14 = sshll.u32 %s461_s23, 3 }
  0x72   : > { %p463_p4 = scmp.lt.s32.totalorder %s5824_s14, 15  ;;  %p6993_p5 = scmp.ne.s32.totalorder %s5697_s26, 0 }
  0x73   : > { %s457_s11 = scalar_select %p456_p2, %s5820_s21, 15 }
  0x74   : > { %s464_s15 = scalar_select %p463_p4, %s5824_s14, 15 }
  0x75   : > { %s4091_s17 = sshll.u32 %s457_s11, 1  ;;  %472 = sbr.rel (%p6993_p5) target bundleno = 124 (0x7c), region = 134  ;;  %v5632_v16 = vmov (!%p6993_p5), 0.0  }
  0x76   : > { %s5832_s20 = scalar_lea.vmem %s6891_s5, %s4091_s17  ;;  %s4093_s28 = sshll.u32 %s464_s15, 1  ;;  %473 = vst [vmem:[#allocation2] sm:$0x3] (!%p6993_p5), %v5632_v16  ;;  %474 = vst [vmem:[#allocation3] sm:$0x3] (!%p6993_p5), %v5632_v16 }
  0x77   : > { %s5837_s30 = scalar_lea.vmem %s6892_s6, %s4093_s28  ;;  %475 = vst [vmem:[#allocation4] sm:$0x3] (!%p6993_p5), %v5632_v16  ;;  %476 = vst [vmem:[#allocation5] sm:$0x3] (!%p6993_p5), %v5632_v16 }
  0x7c PF: > { %v478_v17 = vld [vmem:[#allocation8 + $0x8] sm:$0xff]  ;;  %v480_v19 = vld [vmem:[#allocation8 + $0x18] sm:$0xff]  ;;  %v477_v22 = vld [vmem:[#allocation8] sm:$0xff]  ;;  %v6896_v24 = vmov 0.0   ;;  %v5634_v30 = vmov 0   ;;  %s1015_s25 = sadd.s32 7, %s5824_s14 }
  0x7d   : > { %v482_v18 = vld [vmem:[#allocation8 + $0x28] sm:$0xff]  ;;  %v484_v21 = vld [vmem:[#allocation8 + $0x38] sm:$0xff]  ;;  %v481_v23 = vld [vmem:[#allocation8 + $0x20] sm:$0xff]  ;;  %682 = vmatprep.mubr.f32.mxu0 %v6896_v24  ;;  %753 = vmatprep.mubr.f32.mxu1 %v6896_v24  ;;  %s1425_s13 = sadd.s32 1, %s5820_s21  ;;  %s1428_s12 = sadd.s32 6, %s5824_s14 }
  0x7e   : > { %v5841_v20 = vpack.c.bf16 %v482_v18, %v478_v17  ;;  %v5845_v25 = vpack.c.bf16 %v484_v21, %v480_v19  ;;  %v5847_v26 = vpack.c.bf16 %v481_v23, %v477_v22  ;;  %v479_v27 = vld [vmem:[#allocation8 + $0x10] sm:$0xff]  ;;  %v486_v29 = vld [vmem:[#allocation8 + $0x48] sm:$0xff]  ;;  %5267 = vset.pattern.permute.xlu0 %v5634_v30  ;;  %v488_v33 = vld [vmem:[#allocation8 + $0x58] sm:$0xff]  ;;  %s1839_s29 = sadd.s32 2, %s5820_s21  ;;  %s1842_s23 = sadd.s32 5, %s5824_s14 }
  0x7f   : > { %v483_v28 = vld [vmem:[#allocation8 + $0x30] sm:$0xff]  ;;  %v490_v32 = vld [vmem:[#allocation8 + $0x68] sm:$0xff]  ;;  %v492_v34 = vld [vmem:[#allocation8 + $0x78] sm:$0xff]  ;;  %s2253_s11 = sadd.s32 3, %s5820_s21  ;;  %s2256_s15 = sadd.s32 4, %s5824_s14 }
  0x80   : > { %4177 = vmatprep.subr.bf16.mxu0 %v5841_v20  ;;  %v5850_v31 = vpack.c.bf16 %v483_v28, %v479_v27  ;;  %4209 = vmatprep.subr.bf16.mxu1 %v5845_v25  ;;  %v5854_v35 = vpack.c.bf16 %v490_v32, %v486_v29  ;;  %v5856_v36 = vpack.c.bf16 %v492_v34, %v488_v33  ;;  %v485_v37 = vld [vmem:[#allocation8 + $0x40] sm:$0xff]  ;;  %v487_v39 = vld [vmem:[#allocation8 + $0x50] sm:$0xff]  ;;  %v494_v42 = vld [vmem:[#allocation8 + $0x88] sm:$0xff]  ;;  %s2667_s17 = sadd.s32 4, %s5820_s21  ;;  %s2670_s8 = sadd.s32 3, %s5824_s14 }
  0x81   : > { %4179 = vmatpush1.bf16.msra.mxu0 %v5847_v26  ;;  %v489_v38 = vld [vmem:[#allocation8 + $0x60] sm:$0xff]  ;;  %v491_v41 = vld [vmem:[#allocation8 + $0x70] sm:$0xff]  ;;  %v498_v43 = vld [vmem:[#allocation8 + $0xa8] sm:$0xff]  ;;  %s3081_s19 = sadd.s32 5, %s5820_s21  ;;  %s3084_s28 = sadd.s32 2, %s5824_s14 }
  0x82   : > { %4211 = vmatpush1.bf16.msra.mxu1 %v5850_v31  ;;  %v5859_v40 = vpack.c.bf16 %v489_v38, %v485_v37  ;;  %4181 = vmatprep.subr.bf16.mxu0 %v5854_v35  ;;  %v5863_v44 = vpack.c.bf16 %v491_v41, %v487_v39  ;;  %v5865_v45 = vpack.c.bf16 %v498_v43, %v494_v42  ;;  %v496_v46 = vld [vmem:[#allocation8 + $0x98] sm:$0xff]  ;;  %v493_v48 = vld [vmem:[#allocation8 + $0x80] sm:$0xff]  ;;  %v495_v51 = vld [vmem:[#allocation8 + $0x90] sm:$0xff]  ;;  %s3908_s18 = sadd.s32 7, %s5820_s21 }
  0x83   : > { %4213 = vmatprep.subr.bf16.mxu1 %v5856_v36  ;;  %v500_v47 = vld [vmem:[#allocation8 + $0xb8] sm:$0xff]  ;;  %v497_v50 = vld [vmem:[#allocation8 + $0xa0] sm:$0xff]  ;;  %v499_v52 = vld [vmem:[#allocation8 + $0xb0] sm:$0xff] }
  0x84   : > { %6994 = vst [vmem:[#allocation16_spill] sm:$0xff] %v5859_v40  ;;  %6995 = vst [vmem:[#allocation17_spill] sm:$0xff] %v5863_v44  ;;  %v5867_v49 = vpack.c.bf16 %v500_v47, %v496_v46  ;;  %v5870_v53 = vpack.c.bf16 %v497_v50, %v493_v48  ;;  %v502_v54 = vld [vmem:[#allocation8 + $0xc8] sm:$0xff]  ;;  %v504_v56 = vld [vmem:[#allocation8 + $0xd8] sm:$0xff]  ;;  %v5874_v57 = vpack.c.bf16 %v499_v52, %v495_v51 }
  0x85   : > { %6996 = vst [vmem:[#allocation18_spill] sm:$0xff] %v5865_v45  ;;  %4183 = vmatpush1.bf16.msra.mxu0 %v5859_v40  ;;  %v506_v55 = vld [vmem:[#allocation8 + $0xe8] sm:$0xff]  ;;  %v508_v59 = vld [vmem:[#allocation8 + $0xf8] sm:$0xff]  ;;  %v501_v60 = vld [vmem:[#allocation8 + $0xc0] sm:$0xff] }
  0x86   : > { %6997 = vst [vmem:[#allocation19_spill] sm:$0xff] %v5867_v49  ;;  %6998 = vst [vmem:[#allocation20_spill] sm:$0xff] %v5870_v53  ;;  %4215 = vmatpush1.bf16.msra.mxu1 %v5863_v44  ;;  %4185 = vmatprep.subr.bf16.mxu0 %v5865_v45  ;;  %v5876_v58 = vpack.c.bf16 %v506_v55, %v502_v54  ;;  %v505_v61 = vld [vmem:[#allocation8 + $0xe0] sm:$0xff]  ;;  %v5879_v62 = vpack.c.bf16 %v508_v59, %v504_v56  ;;  %v503_v63 = vld [vmem:[#allocation8 + $0xd0] sm:$0xff] }
  0x87   : > { %6999 = vst [vmem:[#allocation21_spill] sm:$0xff] %v5874_v57  ;;  %4217 = vmatprep.subr.bf16.mxu1 %v5867_v49  ;;  %v507_v0 = vld [vmem:[#allocation8 + $0xf0] sm:$0xff]  ;;  %v510_v1 = vld [vmem:[#allocation8 + $0x108] sm:$0xff]  ;;  %v512_v3 = vld [vmem:[#allocation8 + $0x118] sm:$0xff]  ;;  %v5882_v5 = vpack.c.bf16 %v505_v61, %v501_v60 }
  0x88   : > { %7000 = vst [vmem:[#allocation22_spill] sm:$0xff] %v5876_v58  ;;  %7001 = vst [vmem:[#allocation23_spill] sm:$0xff] %v5879_v62  ;;  %v514_v2 = vld [vmem:[#allocation8 + $0x128] sm:$0xff]  ;;  %v516_v4 = vld [vmem:[#allocation8 + $0x138] sm:$0xff]  ;;  %v5886_v6 = vpack.c.bf16 %v507_v0, %v503_v63 }
  0x89   : > { %4187 = vmatpush1.bf16.msra.mxu0 %v5870_v53  ;;  %7002 = vst [vmem:[#allocation24_spill] sm:$0xff] %v5882_v5  ;;  %v5888_v7 = vpack.c.bf16 %v514_v2, %v510_v1  ;;  %v509_v8 = vld [vmem:[#allocation8 + $0x100] sm:$0xff]  ;;  %v511_v10 = vld [vmem:[#allocation8 + $0x110] sm:$0xff]  ;;  %v5891_v11 = vpack.c.bf16 %v516_v4, %v512_v3  ;;  %v518_v13 = vld [vmem:[#allocation8 + $0x148] sm:$0xff] }
  0x8a   : > { %4219 = vmatpush1.bf16.msra.mxu1 %v5874_v57  ;;  %4189 = vmatprep.subr.bf16.mxu0 %v5876_v58  ;;  %7003 = vst [vmem:[#allocation25_spill] sm:$0xff] %v5886_v6  ;;  %v513_v9 = vld [vmem:[#allocation8 + $0x120] sm:$0xff]  ;;  %v515_v12 = vld [vmem:[#allocation8 + $0x130] sm:$0xff]  ;;  %v522_v14 = vld [vmem:[#allocation8 + $0x168] sm:$0xff] }
  0x8b   : > { %7004 = vst [vmem:[#allocation26_spill] sm:$0xff] %v5888_v7  ;;  %4221 = vmatprep.subr.bf16.mxu1 %v5879_v62  ;;  %7005 = vst [vmem:[#allocation27_spill] sm:$0xff] %v5891_v11  ;;  %v520_v15 = vld [vmem:[#allocation8 + $0x158] sm:$0xff]  ;;  %v5894_v17 = vpack.c.bf16 %v513_v9, %v509_v8  ;;  %v5898_v18 = vpack.c.bf16 %v515_v12, %v511_v10  ;;  %v5900_v19 = vpack.c.bf16 %v522_v14, %v518_v13  ;;  %v517_v21 = vld [vmem:[#allocation8 + $0x140] sm:$0xff] }
  0x8c   : > { %v524_v16 = vld [vmem:[#allocation8 + $0x178] sm:$0xff]  ;;  %v521_v22 = vld [vmem:[#allocation8 + $0x160] sm:$0xff]  ;;  %v519_v23 = vld [vmem:[#allocation8 + $0x150] sm:$0xff] }
  0x8d   : > { %4191 = vmatpush1.bf16.msra.mxu0 %v5882_v5  ;;  %7006 = vst [vmem:[#allocation28_spill] sm:$0xff] %v5894_v17  ;;  %7007 = vst [vmem:[#allocation29_spill] sm:$0xff] %v5898_v18  ;;  %v5903_v27 = vpack.c.bf16 %v524_v16, %v520_v15  ;;  %v523_v28 = vld [vmem:[#allocation8 + $0x170] sm:$0xff]  ;;  %v526_v29 = vld [vmem:[#allocation8 + $0x188] sm:$0xff]  ;;  %v5906_v34 = vpack.c.bf16 %v521_v22, %v517_v21 }
  0x8e   : > { %4223 = vmatpush1.bf16.msra.mxu1 %v5886_v6  ;;  %4193 = vmatprep.subr.bf16.mxu0 %v5888_v7  ;;  %7008 = vst [vmem:[#allocation30_spill] sm:$0xff] %v5900_v19  ;;  %v530_v30 = vld [vmem:[#allocation8 + $0x1a8] sm:$0xff]  ;;  %v528_v32 = vld [vmem:[#allocation8 + $0x198] sm:$0xff]  ;;  %v5910_v37 = vpack.c.bf16 %v523_v28, %v519_v23  ;;  %v525_v39 = vld [vmem:[#allocation8 + $0x180] sm:$0xff] }
  0x8f   : > { %4225 = vmatprep.subr.bf16.mxu1 %v5891_v11  ;;  %7009 = vst [vmem:[#allocation31_spill] sm:$0xff] %v5903_v27  ;;  %v532_v33 = vld [vmem:[#allocation8 + $0x1b8] sm:$0xff]  ;;  %7010 = vst [vmem:[#allocation32_spill] sm:$0xff] %v5906_v34  ;;  %v5912_v38 = vpack.c.bf16 %v530_v30, %v526_v29  ;;  %v529_v41 = vld [vmem:[#allocation8 + $0x1a0] sm:$0xff] }
  0x90   : > { %7011 = vst [vmem:[#allocation33_spill] sm:$0xff] %v5910_v37  ;;  %v527_v42 = vld [vmem:[#allocation8 + $0x190] sm:$0xff]  ;;  %v5915_v43 = vpack.c.bf16 %v532_v33, %v528_v32  ;;  %v534_v47 = vld [vmem:[#allocation8 + $0x1c8] sm:$0xff]  ;;  %v536_v50 = vld [vmem:[#allocation8 + $0x1d8] sm:$0xff]  ;;  %v5918_v52 = vpack.c.bf16 %v529_v41, %v525_v39 }
  0x91   : > { %4195 = vmatpush1.bf16.msra.mxu0 %v5894_v17  ;;  %7012 = vst [vmem:[#allocation34_spill] sm:$0xff] %v5912_v38  ;;  %v531_v46 = vld [vmem:[#allocation8 + $0x1b0] sm:$0xff]  ;;  %v538_v48 = vld [vmem:[#allocation8 + $0x1e8] sm:$0xff]  ;;  %v540_v51 = vld [vmem:[#allocation8 + $0x1f8] sm:$0xff] }
  0x92   : > { %4227 = vmatpush1.bf16.msra.mxu1 %v5898_v18  ;;  %4197 = vmatprep.subr.bf16.mxu0 %v5900_v19  ;;  %7013 = vst [vmem:[#allocation35_spill] sm:$0xff] %v5915_v43  ;;  %7014 = vst [vmem:[#allocation36_spill] sm:$0xff] %v5918_v52  ;;  %v5922_v54 = vpack.c.bf16 %v531_v46, %v527_v42  ;;  %v5924_v55 = vpack.c.bf16 %v538_v48, %v534_v47  ;;  %v533_v56 = vld [vmem:[#allocation8 + $0x1c0] sm:$0xff]  ;;  %v535_v60 = vld [vmem:[#allocation8 + $0x1d0] sm:$0xff] }
  0x93   : > { %4229 = vmatprep.subr.bf16.mxu1 %v5903_v27  ;;  %v537_v59 = vld [vmem:[#allocation8 + $0x1e0] sm:$0xff]  ;;  %v5927_v61 = vpack.c.bf16 %v540_v51, %v536_v50  ;;  %v539_v63 = vld [vmem:[#allocation8 + $0x1f0] sm:$0xff]  ;;  %v542_v0 = vld [vmem:[#allocation10 + $0x8] sm:$0xff] }
  0x94   : > { %7015 = vst [vmem:[#allocation37_spill] sm:$0xff] %v5922_v54  ;;  %7016 = vst [vmem:[#allocation38_spill] sm:$0xff] %v5924_v55  ;;  %v546_v1 = vld [vmem:[#allocation10 + $0x28] sm:$0xff]  ;;  %v544_v2 = vld [vmem:[#allocation10 + $0x18] sm:$0xff]  ;;  %v5930_v4 = vpack.c.bf16 %v537_v59, %v533_v56  ;;  %v5934_v8 = vpack.c.bf16 %v539_v63, %v535_v60 }
  0x95   : > { %4199 = vmatpush1.bf16.msra.mxu0 %v5906_v34  ;;  %7017 = vst [vmem:[#allocation39_spill] sm:$0xff] %v5927_v61  ;;  %v548_v3 = vld [vmem:[#allocation10 + $0x38] sm:$0xff]  ;;  %v5936_v9 = vpack.c.bf16 %v546_v1, %v542_v0  ;;  %v541_v10 = vld [vmem:[#allocation10] sm:$0xff]  ;;  %v543_v13 = vld [vmem:[#allocation10 + $0x10] sm:$0xff] }
  0x96   : > { %4231 = vmatpush1.bf16.msra.mxu1 %v5910_v37  ;;  %4201 = vmatprep.subr.bf16.mxu0 %v5912_v38  ;;  %7018 = vst [vmem:[#allocation40_spill] sm:$0xff] %v5930_v4  ;;  %7019 = vst [vmem:[#allocation41_spill] sm:$0xff] %v5934_v8  ;;  %v545_v12 = vld [vmem:[#allocation10 + $0x20] sm:$0xff]  ;;  %v5939_v14 = vpack.c.bf16 %v548_v3, %v544_v2  ;;  %v547_v15 = vld [vmem:[#allocation10 + $0x30] sm:$0xff] }
  0x97   : > { %4233 = vmatprep.subr.bf16.mxu1 %v5915_v43  ;;  %7020 = vst [vmem:[#allocation42_spill] sm:$0xff] %v5936_v9  ;;  %v550_v16 = vld [vmem:[#allocation10 + $0x48] sm:$0xff]  ;;  %v552_v22 = vld [vmem:[#allocation10 + $0x58] sm:$0xff]  ;;  %v5944_v29 = vpack.c.bf16 %v545_v12, %v541_v10  ;;  %v5948_v30 = vpack.c.bf16 %v547_v15, %v543_v13  ;;  %v549_v33 = vld [vmem:[#allocation10 + $0x40] sm:$0xff] }
  0x98   : > { %7021 = vst [vmem:[#allocation43_spill] sm:$0xff] %v5939_v14  ;;  %v554_v21 = vld [vmem:[#allocation10 + $0x68] sm:$0xff]  ;;  %v556_v23 = vld [vmem:[#allocation10 + $0x78] sm:$0xff]  ;;  %v553_v39 = vld [vmem:[#allocation10 + $0x60] sm:$0xff] }
  0x99   : > { %4203 = vmatpush1.bf16.msra.mxu0 %v5918_v52  ;;  %v5942_v28 = vld [vmem:[#allocation2] sm:$0x3]  ;;  %v5950_v32 = vpack.c.bf16 %v554_v21, %v550_v16  ;;  %v551_v41 = vld [vmem:[#allocation10 + $0x50] sm:$0xff]  ;;  %v5953_v42 = vpack.c.bf16 %v556_v23, %v552_v22  ;;  %v558_v47 = vld [vmem:[#allocation10 + $0x88] sm:$0xff]  ;;  %v5958_v56 = vpack.c.bf16 %v553_v39, %v549_v33 }
  0x9a   : > { %4235 = vmatpush1.bf16.msra.mxu1 %v5922_v54  ;;  %4205 = vmatprep.subr.bf16.mxu0 %v5924_v55  ;;  %v555_v46 = vld [vmem:[#allocation10 + $0x70] sm:$0xff]  ;;  %v562_v48 = vld [vmem:[#allocation10 + $0xa8] sm:$0xff]  ;;  %v560_v50 = vld [vmem:[#allocation10 + $0x98] sm:$0xff] }
  0x9b   : > { %4237 = vmatprep.subr.bf16.mxu1 %v5927_v61  ;;  %v564_v51 = vld [vmem:[#allocation10 + $0xb8] sm:$0xff]  ;;  %v5962_v59 = vpack.c.bf16 %v555_v46, %v551_v41  ;;  %v5964_v60 = vpack.c.bf16 %v562_v48, %v558_v47  ;;  %v557_v63 = vld [vmem:[#allocation10 + $0x80] sm:$0xff]  ;;  %v559_v1 = vld [vmem:[#allocation10 + $0x90] sm:$0xff] }
  0x9c   : > { %v561_v0 = vld [vmem:[#allocation10 + $0xa0] sm:$0xff]  ;;  %v5967_v2 = vpack.c.bf16 %v564_v51, %v560_v50  ;;  %v563_v3 = vld [vmem:[#allocation10 + $0xb0] sm:$0xff]  ;;  %v566_v10 = vld [vmem:[#allocation10 + $0xc8] sm:$0xff] }
  0x9d   : > { %4207 = vmatpush1.bf16.msra.mxu0 %v5930_v4  ;;  %v570_v12 = vld [vmem:[#allocation10 + $0xe8] sm:$0xff]  ;;  %v568_v13 = vld [vmem:[#allocation10 + $0xd8] sm:$0xff]  ;;  %v5972_v16 = vpack.c.bf16 %v561_v0, %v557_v63  ;;  %v5976_v21 = vpack.c.bf16 %v563_v3, %v559_v1  ;;  %v565_v23 = vld [vmem:[#allocation10 + $0xc0] sm:$0xff] }
  0x9e   : > { %4239 = vmatpush1.bf16.msra.mxu1 %v5934_v8  ;;  %4241 = vmatprep.subr.bf16.mxu0 %v5936_v9  ;;  %v572_v15 = vld [vmem:[#allocation10 + $0xf8] sm:$0xff]  ;;  %v5978_v22 = vpack.c.bf16 %v570_v12, %v566_v10  ;;  %v569_v33 = vld [vmem:[#allocation10 + $0xe0] sm:$0xff]  ;;  %v567_v39 = vld [vmem:[#allocation10 + $0xd0] sm:$0xff] }
  0x9f   : > { %4273 = vmatprep.subr.bf16.mxu1 %v5939_v14  ;;  %7022 = vst [vmem:[#allocation44_spill] sm:$0xff] %v5972_v16  ;;  %7023 = vst [vmem:[#allocation45_spill] sm:$0xff] %v5976_v21  ;;  %v5981_v41 = vpack.c.bf16 %v572_v15, %v568_v13  ;;  %v571_v46 = vld [vmem:[#allocation10 + $0xf0] sm:$0xff]  ;;  %v574_v47 = vld [vmem:[#allocation10 + $0x108] sm:$0xff]  ;;  %v5987_v0 = vpack.c.bf16 %v569_v33, %v565_v23 }
  0xa0   : > { %683 = vmatmul.mubr.f32.vlgmr.msra.gmra.mrb[0].mxu0 %v5942_v28  ;;  %7024 = vst [vmem:[#allocation46_spill] sm:$0xff] %v5978_v22  ;;  %v578_v48 = vld [vmem:[#allocation10 + $0x128] sm:$0xff]  ;;  %v576_v50 = vld [vmem:[#allocation10 + $0x118] sm:$0xff]  ;;  %v5991_v1 = vpack.c.bf16 %v571_v46, %v567_v39  ;;  %v573_v10 = vld [vmem:[#allocation10 + $0x100] sm:$0xff] }
  0xa1   : > { %754 = vmatmul.mubr.f32.vlgmr.msra.gmra.mrb[0].mxu1 %v5942_v28  ;;  %4243 = vmatpush1.bf16.msra.mxu0 %v5944_v29  ;;  %7025 = vst [vmem:[#allocation47_spill] sm:$0xff] %v5981_v41  ;;  %v580_v51 = vld [vmem:[#allocation10 + $0x138] sm:$0xff]  ;;  %7026 = vst [vmem:[#allocation48_spill] sm:$0xff] %v5987_v0  ;;  %v5993_v3 = vpack.c.bf16 %v578_v48, %v574_v47  ;;  %v577_v12 = vld [vmem:[#allocation10 + $0x120] sm:$0xff] }
  0xa2   : > { %4275 = vmatpush1.bf16.msra.mxu1 %v5948_v30  ;;  %4245 = vmatprep.subr.bf16.mxu0 %v5950_v32  ;;  %v605_v63 = vld [vmem:[%s6886_s0] sm:$0x3]  ;;  %7027 = vst [vmem:[#allocation49_spill] sm:$0xff] %v5991_v1  ;;  %v575_v13 = vld [vmem:[#allocation10 + $0x110] sm:$0xff]  ;;  %v5996_v15 = vpack.c.bf16 %v580_v51, %v576_v50  ;;  %v586_v23 = vld [vmem:[#allocation10 + $0x168] sm:$0xff] }
  0xa3   : > { %4277 = vmatprep.subr.bf16.mxu1 %v5953_v42  ;;  %881 = vmatprep.mubr.f32.mxu0 %v6896_v24  ;;  %7028 = vst [vmem:[#allocation50_spill] sm:$0xff] %v5993_v3  ;;  %v584_v33 = vld [vmem:[#allocation10 + $0x158] sm:$0xff]  ;;  %v581_v47 = vld [vmem:[#allocation10 + $0x140] sm:$0xff]  ;;  %v583_v50 = vld [vmem:[#allocation10 + $0x150] sm:$0xff] }
  0xa4   : > { %952 = vmatprep.mubr.f32.mxu1 %v6896_v24  ;;  %607 = vperm.xlu0 %5267, %v605_v63   ;;  %7029 = vst [vmem:[#allocation51_spill] sm:$0xff] %v5996_v15  ;;  %v579_v24 = vld [vmem:[#allocation10 + $0x130] sm:$0xff]  ;;  %v588_v63 = vld [vmem:[#allocation10 + $0x178] sm:$0xff]  ;;  %v585_v48 = vld [vmem:[#allocation10 + $0x160] sm:$0xff] }
  0xa5   : > { %4247 = vmatpush1.bf16.msra.mxu0 %v5958_v56  ;;  %v6003_v39 = vpack.c.bf16 %v579_v24, %v575_v13  ;;  %v6008_v51 = vpack.c.bf16 %v588_v63, %v584_v33  ;;  %v589_v13 = vld [vmem:[#allocation10 + $0x180] sm:$0xff]  ;;  %v591_v33 = vld [vmem:[#allocation10 + $0x190] sm:$0xff] }
  0xa6   : > { %4279 = vmatpush1.bf16.msra.mxu1 %v5962_v59  ;;  %4249 = vmatprep.subr.bf16.mxu0 %v5964_v60 }
  0xa7   : > { %4281 = vmatprep.subr.bf16.mxu1 %v5967_v2  ;;  %7031 = vst [vmem:[#allocation53_spill] sm:$0xff] %v6003_v39  ;;  %7032 = vst [vmem:[#allocation54_spill] sm:$0xff] %v6008_v51 }
  0xa9   : > { %4251 = vmatpush1.bf16.msra.mxu0 %v5972_v16  ;;  %v582_v16 = vld [vmem:[#allocation10 + $0x148] sm:$0xff] }
  0xaa   : > { %4283 = vmatpush1.bf16.msra.mxu1 %v5976_v21  ;;  %4253 = vmatprep.subr.bf16.mxu0 %v5978_v22  ;;  %v5999_v21 = vpack.c.bf16 %v577_v12, %v573_v10  ;;  %v6005_v46 = vpack.c.bf16 %v586_v23, %v582_v16  ;;  %v590_v22 = vld [vmem:[#allocation10 + $0x188] sm:$0xff]  ;;  %v592_v10 = vld [vmem:[#allocation10 + $0x198] sm:$0xff]  ;;  %v593_v23 = vld [vmem:[#allocation10 + $0x1a0] sm:$0xff] }
  0xab   : > { %4285 = vmatprep.subr.bf16.mxu1 %v5981_v41  ;;  %v587_v41 = vld [vmem:[#allocation10 + $0x170] sm:$0xff]  ;;  %v596_v12 = vld [vmem:[#allocation10 + $0x1b8] sm:$0xff] }
  0xac   : > { %7030 = vst [vmem:[#allocation52_spill] sm:$0xff] %v5999_v21  ;;  %v6015_v24 = vpack.c.bf16 %v587_v41, %v583_v50  ;;  %v6020_v63 = vpack.c.bf16 %v596_v12, %v592_v10  ;;  %v601_v50 = vld [vmem:[#allocation10 + $0x1e0] sm:$0xff]  ;;  %v599_v12 = vld [vmem:[#allocation10 + $0x1d0] sm:$0xff] }
  0xad   : > { %4255 = vmatpush1.bf16.msra.mxu0 %v5987_v0  ;;  %v594_v0 = vld [vmem:[#allocation10 + $0x1a8] sm:$0xff] }
  0xae   : > { %4287 = vmatpush1.bf16.msra.mxu1 %v5991_v1  ;;  %4257 = vmatprep.subr.bf16.mxu0 %v5993_v3  ;;  %v6011_v1 = vpack.c.bf16 %v585_v48, %v581_v47  ;;  %v6017_v16 = vpack.c.bf16 %v594_v0, %v590_v22  ;;  %v598_v3 = vld [vmem:[#allocation10 + $0x1c8] sm:$0xff]  ;;  %v600_v47 = vld [vmem:[#allocation10 + $0x1d8] sm:$0xff]  ;;  %v597_v0 = vld [vmem:[#allocation10 + $0x1c0] sm:$0xff] }
  0xaf   : > { %4289 = vmatprep.subr.bf16.mxu1 %v5996_v15  ;;  %v595_v15 = vld [vmem:[#allocation10 + $0x1b0] sm:$0xff]  ;;  %v604_v48 = vld [vmem:[#allocation10 + $0x1f8] sm:$0xff] }
  0xb0   : > { %v6027_v22 = vpack.c.bf16 %v595_v15, %v591_v33  ;;  %v6032_v10 = vpack.c.bf16 %v604_v48, %v600_v47  ;;  %v769_v33 = vlaneseq }
  0xb1   : > { %4259 = vmatpush1.bf16.msra.mxu0 %v5999_v21  ;;  %v602_v21 = vld [vmem:[#allocation10 + $0x1e8] sm:$0xff] }
  0xb2   : > { %4291 = vmatpush1.bf16.msra.mxu1 %v6003_v39  ;;  %4261 = vmatprep.subr.bf16.mxu0 %v6005_v46  ;;  %v6023_v39 = vpack.c.bf16 %v593_v23, %v589_v13  ;;  %v6029_v41 = vpack.c.bf16 %v602_v21, %v598_v3  ;;  %v6035_v13 = vpack.c.bf16 %v601_v50, %v597_v0  ;;  %v6043_v21 = vld [vmem:[#allocation4] sm:$0x3]  ;;  %v7033_v3 = vmov 0.0  }
  0xb3   : > { %4293 = vmatprep.subr.bf16.mxu1 %v6008_v51  ;;  %v603_v51 = vld [vmem:[#allocation10 + $0x1f0] sm:$0xff]  ;;  %v770_v48 = vshrl.u32 %v769_v33, 7 }
  0xb4   : > { %v6039_v15 = vpack.c.bf16 %v603_v51, %v599_v12  ;;  %v5635_v51 = vmov 1983009808  }
  0xb5   : > { %4263 = vmatpush1.bf16.msra.mxu0 %v6011_v1  ;;  %v767_v23 = vunpack.c.l.s4 %v5635_v51 }
  0xb6   : > { %4295 = vmatpush1.bf16.msra.mxu1 %v6015_v24  ;;  %4265 = vmatprep.subr.bf16.mxu0 %v6017_v16 }
  0xb7   : > { %4297 = vmatprep.subr.bf16.mxu1 %v6020_v63  ;;  %v768_v47 = vunpack.c.0.s8 %v767_v23 }
  0xb9   : > { %4267 = vmatpush1.bf16.msra.mxu0 %v6023_v39  ;;  %v6084_v50 = vsub.s32 %v768_v47, %v770_v48 }
  0xba   : > { %4299 = vmatpush1.bf16.msra.mxu1 %v6027_v22  ;;  %4269 = vmatprep.subr.bf16.mxu0 %v6029_v41 }
  0xbb   : > { %4301 = vmatprep.subr.bf16.mxu1 %v6032_v10 }
  0xbd   : > { %4271 = vmatpush1.bf16.msra.mxu0 %v6035_v13 }
  0xbe   : > { %4303 = vmatpush1.bf16.msra.mxu1 %v6039_v15  ;;  %4305 = vmatprep.subr.bf16.mxu0 %v5841_v20 }
  0xbf   : > { %4337 = vmatprep.subr.bf16.mxu1 %v5845_v25 }
  0xc0   : > { %882 = vmatmul.mubr.f32.vlgmr.msra.gmra.mrb[2].mxu0 %v6043_v21 }
  0xc1   : > { %953 = vmatmul.mubr.f32.vlgmr.msra.gmra.mrb[2].mxu1 %v6043_v21  ;;  %4307 = vmatpush1.bf16.msra.mxu0 %v5847_v26 }
  0xc2   : > { %4339 = vmatpush1.bf16.msra.mxu1 %v5850_v31  ;;  %4309 = vmatprep.subr.bf16.mxu0 %v5854_v35 }
  0xc3   : > { %4341 = vmatprep.subr.bf16.mxu1 %v5856_v36  ;;  %1094 = vmatprep.mubr.f32.mxu0 %v7033_v3 }
  0xc4   : > { %1165 = vmatprep.mubr.f32.mxu1 %v7033_v3 }
  0xc5   : > { %4311 = vmatpush1.bf16.msra.mxu0 %v5859_v40 }
  0xc6   : > { %4343 = vmatpush1.bf16.msra.mxu1 %v5863_v44  ;;  %4313 = vmatprep.subr.bf16.mxu0 %v5865_v45 }
  0xc7   : > { %4345 = vmatprep.subr.bf16.mxu1 %v5867_v49 }
  0xc9   : > { %4315 = vmatpush1.bf16.msra.mxu0 %v5870_v53 }
  0xca   : > { %4347 = vmatpush1.bf16.msra.mxu1 %v5874_v57  ;;  %4317 = vmatprep.subr.bf16.mxu0 %v5876_v58 }
  0xcb   : > { %4349 = vmatprep.subr.bf16.mxu1 %v5879_v62 }
  0xcd   : > { %4319 = vmatpush1.bf16.msra.mxu0 %v5882_v5 }
  0xce   : > { %4351 = vmatpush1.bf16.msra.mxu1 %v5886_v6  ;;  %4321 = vmatprep.subr.bf16.mxu0 %v5888_v7 }
  0xcf   : > { %4353 = vmatprep.subr.bf16.mxu1 %v5891_v11 }
  0xd1   : > { %4323 = vmatpush1.bf16.msra.mxu0 %v5894_v17 }
  0xd2   : > { %4355 = vmatpush1.bf16.msra.mxu1 %v5898_v18  ;;  %4325 = vmatprep.subr.bf16.mxu0 %v5900_v19 }
  0xd3   : > { %4357 = vmatprep.subr.bf16.mxu1 %v5903_v27 }
  0xd5   : > { %4327 = vmatpush1.bf16.msra.mxu0 %v5906_v34 }
  0xd6   : > { %4359 = vmatpush1.bf16.msra.mxu1 %v5910_v37  ;;  %4329 = vmatprep.subr.bf16.mxu0 %v5912_v38 }
  0xd7   : > { %4361 = vmatprep.subr.bf16.mxu1 %v5915_v43 }
  0xd9   : > { %4331 = vmatpush1.bf16.msra.mxu0 %v5918_v52 }
  0xda   : > { %4363 = vmatpush1.bf16.msra.mxu1 %v5922_v54  ;;  %4333 = vmatprep.subr.bf16.mxu0 %v5924_v55 }
  0xdb   : > { %4365 = vmatprep.subr.bf16.mxu1 %v5927_v61  ;;  %v6087_v61 = vld [vmem:[%s5807_s9] sm:$0xff]  }
  0xdc   : > { %7034 = vst [vmem:[#allocation55_spill] sm:$0xff] %v6087_v61 }
  0xdd   : > { %4335 = vmatpush1.bf16.msra.mxu0 %v5930_v4 }
  0xde   : > { %4367 = vmatpush1.bf16.msra.mxu1 %v5934_v8  ;;  %4369 = vmatprep.subr.bf16.mxu0 %v5936_v9  ;;  %v617_v9 = vunpack.c.l.bf16 %v6087_v61 }
  0xdf   : > { %4401 = vmatprep.subr.bf16.mxu1 %v5939_v14 }
 0x173   : > { %v684_v0 = vpop.f32.mrb[0].mxu0 }
 0x174   : > { %v755_v12 = vpop.f32.mrb[0].mxu1  ;;  %v686_v55 = vpop.f32.mrb[1].mxu0 }
 0x175   : > { %v764_v54 = vcombine.low %v684_v0, %v686_v55  ;;  %v757_v4 = vpop.f32.mrb[1].mxu1 }
 0x176   : > { %v765_v52 = vcombine.low %v755_v12, %v757_v4  ;;  %v6093_v12 = vld [vmem:[%s5809_s10 + $0x18] sm:$0xff]  }
 0x177   : > { %v772_v8 = vrot.slane %v764_v54, %v6084_v50 }
 0x178   : > { %v779_v14 = vrot.slane %v765_v52, %v6084_v50 }
 0x17a   : > { %v780_v51 = vcombine.low %v772_v8, %v779_v14 }
 0x17c   : > { %v782_v43 = vadd.f32 %v780_v51, %v617_v9 }
 0x17e   : > { %v4097_v23 = vmul.f32 -1.442695, %v782_v43  ;;  %v790_v33 = vrot.slane %v782_v43, 2  ;;  %v801_v48 = vrot.slane %v782_v43, 6  ;;  %v798_v38 = vrot.slane %v782_v43, 4 }
 0x180   : > { %5268 = vpow2.f32 %v4097_v23  ;;  %v4098_v47 = vmul.f32 -1.442695, %v790_v33  ;;  %v4099_v55 = vmul.f32 -1.442695, %v801_v48  ;;  %v613_v48 = vld [vmem:[#allocation3] sm:$0x3] }
 0x182   : > { %5270 = vpow2.f32 %v4098_v47 }
 0x183   : > { %5272 = vpow2.f32 %v4099_v55 }
 0x18a   : > { %v5269_v0 = vpop.eup %5268 }
 0x18b   : > { %v786_v37 = vadd.f32 1.0, %v5269_v0 }
 0x18c   : > { %v5271_v4 = vpop.eup %5270 }
 0x18d   : > { %5274 = vrcp.f32 %v786_v37  ;;  %v795_v54 = vadd.f32 1.0, %v5271_v4  ;;  %v5273_v23 = vpop.eup %5272  ;;  %v816_v37 = vunpack.c.h.bf16 %v6093_v12  ;;  %v6098_v4 = vpop.permute.xlu0 %607 }
 0x18e   : > { %5276 = vtanh.f32 %v798_v38  ;;  %v806_v61 = vadd.f32 1.0, %v5273_v23 }
 0x18f   : > { %5278 = vrcp.f32 %v795_v54  ;;  %v1013_v54 = vstv %s5820_s21 }
 0x190   : > { %vm6102_vm0 = vcmp.lt.s32.totalorder %v1013_v54, %v6098_v4  ;;  %5280 = vrcp.f32 %v806_v61 }
 0x193   : > { %v883_v52 = vpop.f32.mrb[2].mxu0 }
 0x194   : > { %v954_v8 = vpop.f32.mrb[2].mxu1  ;;  %v885_v9 = vpop.f32.mrb[3].mxu0 }
 0x195   : > { %v963_v14 = vcombine.low %v883_v52, %v885_v9  ;;  %v956_v51 = vpop.f32.mrb[3].mxu1 }
 0x196   : > { %v964_v33 = vcombine.low %v954_v8, %v956_v51 }
 0x197   : > { %v5275_v47 = vpop.eup %5274  ;;  %v971_v43 = vrot.slane %v963_v14, %v6084_v50 }
 0x198   : > { %v5277_v0 = vpop.eup %5276  ;;  %v978_v38 = vrot.slane %v964_v33, %v6084_v50 }
 0x199   : > { %v5279_v55 = vpop.eup %5278  ;;  %v810_v34 = vmul.f32 %v5277_v0, %v5275_v47 }
 0x19a   : > { %v979_v52 = vcombine.low %v971_v43, %v978_v38  ;;  %v809_v9 = vmul.f32 %v5279_v55, %v613_v48  ;;  %v5281_v43 = vpop.eup %5280 }
 0x19c   : > { %v981_v27 = vadd.f32 %v979_v52, %v816_v37  ;;  %v811_v19 = vadd.f32 %v810_v34, %v809_v9  ;;  %v7038_v9 = vld [vmem:[#allocation45_spill] sm:$0xff] }
 0x19e   : > { %v4101_v14 = vmul.f32 -1.442695, %v981_v27  ;;  %v989_v51 = vrot.slane %v981_v27, 2  ;;  %5282 = vtanh.f32 %v811_v19  ;;  %v6108_v33 = vsel %vm6102_vm0, %v811_v19, %v613_v48 }
 0x19f   : > { %v1000_v47 = vrot.slane %v981_v27, 6  ;;  %v997_v38 = vrot.slane %v981_v27, 4 }
 0x1a0   : > { %5284 = vpow2.f32 %v4101_v14  ;;  %v4102_v23 = vmul.f32 -1.442695, %v989_v51  ;;  %v7039_v14 = vld [vmem:[#allocation46_spill] sm:$0xff]  ;;  %v7040_v51 = vld [vmem:[#allocation47_spill] sm:$0xff] }
 0x1a1   : > { %v4103_v34 = vmul.f32 -1.442695, %v1000_v47 }
 0x1a2   : > { %5286 = vpow2.f32 %v4102_v23  ;;  %v615_v23 = vld [vmem:[#allocation5] sm:$0x3] }
 0x1a3   : > { %5288 = vpow2.f32 %v4103_v34 }
 0x1a8   : > { %v5283_v0 = vpop.eup %5282 }
 0x1a9   : > { %v813_v55 = vmul.f32 %v5283_v0, %v5281_v43  ;;  %v7041_v0 = vld [vmem:[#allocation48_spill] sm:$0xff] }
 0x1aa   : > { %v5285_v37 = vpop.eup %5284 }
 0x1ab   : > { %v985_v54 = vadd.f32 1.0, %v5285_v37  ;;  %v6113_v52 = vsel %vm6102_vm0, %v813_v55, %v5942_v28  ;;  %v1022_v19 = vsel %vm6102_vm0, %v813_v55, 0.0  ;;  %v7037_v28 = vld [vmem:[#allocation44_spill] sm:$0xff]  ;;  %v7042_v37 = vld [vmem:[#allocation49_spill] sm:$0xff] }
 0x1ac   : > { %v5287_v61 = vpop.eup %5286  ;;  %1023 = vst [vmem:[%s5832_s20] sm:$0x3] %v1022_v19  ;;  %1095 = vmatmul.mubr.f32.vlgmr.msra.gmra.mrb[4].mxu0 %v6113_v52  ;;  %1166 = vmatmul.mubr.f32.vlgmr.msra.gmra.mrb[4].mxu1 %v6113_v52  ;;  %v7044_v19 = vld [vmem:[#allocation51_spill] sm:$0xff] }
 0x1ad   : > { %5290 = vrcp.f32 %v985_v54  ;;  %v994_v48 = vadd.f32 1.0, %v5287_v61  ;;  %4371 = vmatpush1.bf16.msra.mxu0 %v5944_v29  ;;  %4403 = vmatpush1.bf16.msra.mxu1 %v5948_v30  ;;  %v5289_v27 = vpop.eup %5288  ;;  %v1016_v54 = vstv %s1015_s25  ;;  %v7043_v61 = vld [vmem:[#allocation50_spill] sm:$0xff] }
 0x1ae   : > { %5292 = vtanh.f32 %v997_v38  ;;  %4373 = vmatprep.subr.bf16.mxu0 %v5950_v32  ;;  %4405 = vmatprep.subr.bf16.mxu1 %v5953_v42  ;;  %v1005_v34 = vadd.f32 1.0, %v5289_v27  ;;  %vm1017_vm1 = vcmp.lt.s32.totalorder %v1016_v54, %v6098_v4  ;;  %v7050_v54 = vld [vmem:[#allocation32_spill] sm:$0xff] }
 0x1af   : > { %5294 = vrcp.f32 %v994_v48  ;;  %1293 = vmatprep.mubr.f32.mxu0 %v7033_v3  ;;  %1364 = vmatprep.mubr.f32.mxu1 %v7033_v3 }
 0x1b0   : > { %5296 = vrcp.f32 %v1005_v34 }
 0x1b1   : > { %4375 = vmatpush1.bf16.msra.mxu0 %v5958_v56  ;;  %4407 = vmatpush1.bf16.msra.mxu1 %v5962_v59 }
 0x1b2   : > { %4377 = vmatprep.subr.bf16.mxu0 %v5964_v60  ;;  %4409 = vmatprep.subr.bf16.mxu1 %v5967_v2 }
 0x1b5   : > { %4379 = vmatpush1.bf16.msra.mxu0 %v7037_v28  ;;  %4411 = vmatpush1.bf16.msra.mxu1 %v7038_v9 }
 0x1b6   : > { %4381 = vmatprep.subr.bf16.mxu0 %v7039_v14  ;;  %4413 = vmatprep.subr.bf16.mxu1 %v7040_v51  ;;  %v7045_v51 = vld [vmem:[#allocation52_spill] sm:$0xff]  ;;  %v7046_v14 = vld [vmem:[#allocation53_spill] sm:$0xff] }
 0x1b7   : > { %v5291_v8 = vpop.eup %5290 }
 0x1b8   : > { %v5293_v47 = vpop.eup %5292 }
 0x1b9   : > { %v5295_v43 = vpop.eup %5294  ;;  %4383 = vmatpush1.bf16.msra.mxu0 %v7041_v0  ;;  %4415 = vmatpush1.bf16.msra.mxu1 %v7042_v37  ;;  %v1009_v55 = vmul.f32 %v5293_v47, %v5291_v8  ;;  %v7047_v8 = vld [vmem:[#allocation54_spill] sm:$0xff] }
 0x1ba   : > { %v1008_v38 = vmul.f32 %v5295_v43, %v615_v23  ;;  %4385 = vmatprep.subr.bf16.mxu0 %v7043_v61  ;;  %4417 = vmatprep.subr.bf16.mxu1 %v7044_v19  ;;  %v5297_v47 = vpop.eup %5296 }
 0x1bc   : > { %v1010_v48 = vadd.f32 %v1009_v55, %v1008_v38  ;;  %v7049_v55 = vld [vmem:[#allocation31_spill] sm:$0xff] }
 0x1bd   : > { %4387 = vmatpush1.bf16.msra.mxu0 %v7045_v51  ;;  %4419 = vmatpush1.bf16.msra.mxu1 %v7046_v14 }
 0x1be   : > { %5298 = vtanh.f32 %v1010_v48  ;;  %v6144_v27 = vsel %vm1017_vm1, %v1010_v48, %v615_v23  ;;  %4389 = vmatprep.subr.bf16.mxu0 %v6005_v46  ;;  %4421 = vmatprep.subr.bf16.mxu1 %v7047_v8  ;;  %v7051_v48 = vld [vmem:[#allocation33_spill] sm:$0xff] }
 0x1c1   : > { %4391 = vmatpush1.bf16.msra.mxu0 %v6011_v1  ;;  %4423 = vmatpush1.bf16.msra.mxu1 %v6015_v24 }
 0x1c2   : > { %4393 = vmatprep.subr.bf16.mxu0 %v6017_v16  ;;  %4425 = vmatprep.subr.bf16.mxu1 %v6020_v63 }
 0x1c5   : > { %4395 = vmatpush1.bf16.msra.mxu0 %v6023_v39  ;;  %4427 = vmatpush1.bf16.msra.mxu1 %v6027_v22 }
 0x1c6   : > { %4397 = vmatprep.subr.bf16.mxu0 %v6029_v41  ;;  %4429 = vmatprep.subr.bf16.mxu1 %v6032_v10 }
 0x1c8   : > { %v5299_v23 = vpop.eup %5298 }
 0x1c9   : > { %v1012_v43 = vmul.f32 %v5299_v23, %v5297_v47  ;;  %4399 = vmatpush1.bf16.msra.mxu0 %v6035_v13  ;;  %4431 = vmatpush1.bf16.msra.mxu1 %v6039_v15  ;;  %v7052_v47 = vld [vmem:[#allocation34_spill] sm:$0xff]  ;;  %v7053_v23 = vld [vmem:[#allocation35_spill] sm:$0xff] }
 0x1ca   : > { %4433 = vmatprep.subr.bf16.mxu0 %v5841_v20  ;;  %4465 = vmatprep.subr.bf16.mxu1 %v5845_v25 }
 0x1cb   : > { %v6161_v34 = vsel %vm1017_vm1, %v1012_v43, %v6043_v21  ;;  %v1024_v38 = vsel %vm1017_vm1, %v1012_v43, 0.0  ;;  %v7048_v21 = vld [vmem:[#allocation30_spill] sm:$0xff]  ;;  %v7054_v43 = vld [vmem:[#allocation36_spill] sm:$0xff] }
 0x1cc   : > { %4104 = vst [vmem:[%s5837_s30 + $0xe] sm:$0x3] %v1024_v38  ;;  %1294 = vmatmul.mubr.f32.vlgmr.msra.gmra.mrb[6].mxu0 %v6161_v34  ;;  %1365 = vmatmul.mubr.f32.vlgmr.msra.gmra.mrb[6].mxu1 %v6161_v34  ;;  %v7055_v38 = vld [vmem:[#allocation37_spill] sm:$0xff] }
 0x1cd   : > { %4435 = vmatpush1.bf16.msra.mxu0 %v5847_v26  ;;  %4467 = vmatpush1.bf16.msra.mxu1 %v5850_v31 }
 0x1ce   : > { %4437 = vmatprep.subr.bf16.mxu0 %v5854_v35  ;;  %4469 = vmatprep.subr.bf16.mxu1 %v5856_v36 }
 0x1cf   : > { %1508 = vmatprep.mubr.f32.mxu0 %v7033_v3  ;;  %1579 = vmatprep.mubr.f32.mxu1 %v7033_v3 }
 0x1d1   : > { %4439 = vmatpush1.bf16.msra.mxu0 %v5859_v40  ;;  %4471 = vmatpush1.bf16.msra.mxu1 %v5863_v44 }
 0x1d2   : > { %4441 = vmatprep.subr.bf16.mxu0 %v5865_v45  ;;  %4473 = vmatprep.subr.bf16.mxu1 %v5867_v49 }
 0x1d5   : > { %4443 = vmatpush1.bf16.msra.mxu0 %v5870_v53  ;;  %4475 = vmatpush1.bf16.msra.mxu1 %v5874_v57 }
 0x1d6   : > { %4445 = vmatprep.subr.bf16.mxu0 %v5876_v58  ;;  %4477 = vmatprep.subr.bf16.mxu1 %v5879_v62 }
 0x1d9   : > { %4447 = vmatpush1.bf16.msra.mxu0 %v5882_v5  ;;  %4479 = vmatpush1.bf16.msra.mxu1 %v5886_v6  ;;  %v7062_v5 = vld [vmem:[#allocation55_spill] sm:$0xff] }
 0x1da   : > { %4449 = vmatprep.subr.bf16.mxu0 %v5888_v7  ;;  %4481 = vmatprep.subr.bf16.mxu1 %v5891_v11  ;;  %v7056_v11 = vld [vmem:[#allocation38_spill] sm:$0xff] }
 0x1dd   : > { %4451 = vmatpush1.bf16.msra.mxu0 %v5894_v17  ;;  %4483 = vmatpush1.bf16.msra.mxu1 %v5898_v18  ;;  %v7057_v17 = vld [vmem:[#allocation39_spill] sm:$0xff]  ;;  %v7058_v18 = vld [vmem:[#allocation40_spill] sm:$0xff] }
 0x1de   : > { %4453 = vmatprep.subr.bf16.mxu0 %v7048_v21  ;;  %4485 = vmatprep.subr.bf16.mxu1 %v7049_v55  ;;  %v7059_v21 = vld [vmem:[#allocation41_spill] sm:$0xff]  ;;  %v7060_v55 = vld [vmem:[#allocation42_spill] sm:$0xff] }
 0x1e1   : > { %4455 = vmatpush1.bf16.msra.mxu0 %v7050_v54  ;;  %4487 = vmatpush1.bf16.msra.mxu1 %v7051_v48  ;;  %v7061_v54 = vld [vmem:[#allocation43_spill] sm:$0xff] }
 0x1e2   : > { %4457 = vmatprep.subr.bf16.mxu0 %v7052_v47  ;;  %4489 = vmatprep.subr.bf16.mxu1 %v7053_v23 }
 0x1e5   : > { %4459 = vmatpush1.bf16.msra.mxu0 %v7054_v43  ;;  %4491 = vmatpush1.bf16.msra.mxu1 %v7055_v38 }
 0x1e6   : > { %4461 = vmatprep.subr.bf16.mxu0 %v7056_v11  ;;  %4493 = vmatprep.subr.bf16.mxu1 %v7057_v17  ;;  %v1029_v11 = vunpack.c.h.bf16 %v7062_v5 }
 0x1e9   : > { %4463 = vmatpush1.bf16.msra.mxu0 %v7058_v18  ;;  %4495 = vmatpush1.bf16.msra.mxu1 %v7059_v21 }
 0x1ea   : > { %4497 = vmatprep.subr.bf16.mxu0 %v7060_v55  ;;  %4529 = vmatprep.subr.bf16.mxu1 %v7061_v54 }
 0x27f   : > { %v1096_v48 = vpop.f32.mrb[4].mxu0  ;;  %v1167_v47 = vpop.f32.mrb[4].mxu1 }
 0x280   : > { %v1098_v7 = vpop.f32.mrb[5].mxu0  ;;  %v1169_v23 = vpop.f32.mrb[5].mxu1 }
 0x281   : > { %v1176_v6 = vcombine.low %v1096_v48, %v1098_v7  ;;  %v1177_v43 = vcombine.low %v1167_v47, %v1169_v23 }
 0x283   : > { %v1184_v38 = vrot.slane %v1176_v6, %v6084_v50  ;;  %v1191_v17 = vrot.slane %v1177_v43, %v6084_v50 }
 0x285   : > { %v1192_v62 = vcombine.low %v1184_v38, %v1191_v17  ;;  %v1426_v38 = vstv %s1425_s13 }
 0x286   : > { %vm1427_vm2 = vcmp.lt.s32.totalorder %v1426_v38, %v6098_v4 }
 0x287   : > { %v1194_v18 = vadd.f32 %v1192_v62, %v1029_v11 }
 0x289   : > { %v4106_v58 = vmul.f32 -1.442695, %v1194_v18  ;;  %v1202_v21 = vrot.slane %v1194_v18, 2  ;;  %v1213_v54 = vrot.slane %v1194_v18, 6  ;;  %v1210_v49 = vrot.slane %v1194_v18, 4 }
 0x28b   : > { %5300 = vpow2.f32 %v4106_v58  ;;  %v4107_v55 = vmul.f32 -1.442695, %v1202_v21  ;;  %v4108_v57 = vmul.f32 -1.442695, %v1213_v54 }
 0x28d   : > { %5302 = vpow2.f32 %v4107_v55 }
 0x28e   : > { %5304 = vpow2.f32 %v4108_v57 }
 0x295   : > { %v5301_v53 = vpop.eup %5300 }
 0x296   : > { %v1198_v45 = vadd.f32 1.0, %v5301_v53  ;;  %v1228_v53 = vunpack.c.l.bf16 %v6093_v12 }
 0x297   : > { %v5303_v7 = vpop.eup %5302 }
 0x298   : > { %5306 = vrcp.f32 %v1198_v45  ;;  %v1207_v6 = vadd.f32 1.0, %v5303_v7  ;;  %v5305_v48 = vpop.eup %5304 }
 0x299   : > { %5308 = vtanh.f32 %v1210_v49  ;;  %v1218_v18 = vadd.f32 1.0, %v5305_v48 }
 0x29a   : > { %5310 = vrcp.f32 %v1207_v6 }
 0x29b   : > { %5312 = vrcp.f32 %v1218_v18 }
 0x29f   : > { %v1295_v5 = vpop.f32.mrb[6].mxu0  ;;  %v1366_v17 = vpop.f32.mrb[6].mxu1 }
 0x2a0   : > { %v1297_v62 = vpop.f32.mrb[7].mxu0  ;;  %v1368_v11 = vpop.f32.mrb[7].mxu1 }
 0x2a1   : > { %v1375_v58 = vcombine.low %v1295_v5, %v1297_v62  ;;  %v1376_v21 = vcombine.low %v1366_v17, %v1368_v11 }
 0x2a2   : > { %v5307_v55 = vpop.eup %5306 }
 0x2a3   : > { %v5309_v47 = vpop.eup %5308  ;;  %v1383_v54 = vrot.slane %v1375_v58, %v6084_v50  ;;  %v1390_v57 = vrot.slane %v1376_v21, %v6084_v50 }
 0x2a4   : > { %v5311_v45 = vpop.eup %5310  ;;  %v1222_v43 = vmul.f32 %v5309_v47, %v5307_v55 }
 0x2a5   : > { %v1391_v49 = vcombine.low %v1383_v54, %v1390_v57  ;;  %v1221_v23 = vmul.f32 %v5311_v45, %v6108_v33  ;;  %v5313_v48 = vpop.eup %5312 }
 0x2a7   : > { %v1393_v7 = vadd.f32 %v1391_v49, %v1228_v53  ;;  %v1223_v6 = vadd.f32 %v1222_v43, %v1221_v23  ;;  %v7063_v23 = vld [vmem:[#allocation46_spill] sm:$0xff]  ;;  %v7064_v43 = vld [vmem:[#allocation47_spill] sm:$0xff] }
 0x2a9   : > { %v4110_v5 = vmul.f32 -1.442695, %v1393_v7  ;;  %v1401_v17 = vrot.slane %v1393_v7, 2  ;;  %5314 = vtanh.f32 %v1223_v6  ;;  %v6216_v12 = vsel %vm1427_vm2, %v1223_v6, %v6108_v33 }
 0x2aa   : > { %v1412_v11 = vrot.slane %v1393_v7, 6  ;;  %v1409_v47 = vrot.slane %v1393_v7, 4 }
 0x2ab   : > { %5316 = vpow2.f32 %v4110_v5  ;;  %v4111_v62 = vmul.f32 -1.442695, %v1401_v17 }
 0x2ac   : > { %v4112_v58 = vmul.f32 -1.442695, %v1412_v11 }
 0x2ad   : > { %5318 = vpow2.f32 %v4111_v62  ;;  %v1429_v62 = vstv %s1428_s12 }
 0x2ae   : > { %5320 = vpow2.f32 %v4112_v58  ;;  %vm1430_vm3 = vcmp.lt.s32.totalorder %v1429_v62, %v6098_v4  ;;  %v7078_v62 = vld [vmem:[#allocation31_spill] sm:$0xff] }
 0x2b3   : > { %v5315_v21 = vpop.eup %5314 }
 0x2b4   : > { %v1225_v54 = vmul.f32 %v5315_v21, %v5313_v48 }
 0x2b5   : > { %v5317_v55 = vpop.eup %5316 }
 0x2b6   : > { %v1397_v53 = vadd.f32 1.0, %v5317_v55  ;;  %v6221_v45 = vsel %vm1427_vm2, %v1225_v54, %v6113_v52  ;;  %v1435_v33 = vsel %vm1427_vm2, %v1225_v54, 0.0  ;;  %v7066_v54 = vld [vmem:[#allocation19_spill] sm:$0xff] }
 0x2b7   : > { %v5319_v57 = vpop.eup %5318  ;;  %4113 = vst [vmem:[%s5832_s20 + $0x2] sm:$0x3] %v1435_v33  ;;  %1509 = vmatmul.mubr.f32.vlgmr.msra.gmra.mrb[8].mxu0 %v6221_v45  ;;  %1580 = vmatmul.mubr.f32.vlgmr.msra.gmra.mrb[8].mxu1 %v6221_v45  ;;  %v7069_v33 = vld [vmem:[#allocation22_spill] sm:$0xff] }
 0x2b8   : > { %5322 = vrcp.f32 %v1397_v53  ;;  %v1406_v18 = vadd.f32 1.0, %v5319_v57  ;;  %4499 = vmatpush1.bf16.msra.mxu0 %v5944_v29  ;;  %4531 = vmatpush1.bf16.msra.mxu1 %v5948_v30  ;;  %v5321_v52 = vpop.eup %5320  ;;  %v7067_v53 = vld [vmem:[#allocation20_spill] sm:$0xff]  ;;  %v7068_v57 = vld [vmem:[#allocation21_spill] sm:$0xff] }
 0x2b9   : > { %5324 = vtanh.f32 %v1409_v47  ;;  %4501 = vmatprep.subr.bf16.mxu0 %v5950_v32  ;;  %4533 = vmatprep.subr.bf16.mxu1 %v5953_v42  ;;  %v1417_v6 = vadd.f32 1.0, %v5321_v52  ;;  %v7071_v52 = vld [vmem:[#allocation24_spill] sm:$0xff] }
 0x2ba   : > { %5326 = vrcp.f32 %v1406_v18  ;;  %1707 = vmatprep.mubr.f32.mxu0 %v7033_v3  ;;  %1778 = vmatprep.mubr.f32.mxu1 %v7033_v3  ;;  %v7070_v18 = vld [vmem:[#allocation23_spill] sm:$0xff] }
 0x2bb   : > { %5328 = vrcp.f32 %v1417_v6  ;;  %v7075_v6 = vld [vmem:[#allocation28_spill] sm:$0xff] }
 0x2bc   : > { %4503 = vmatpush1.bf16.msra.mxu0 %v5958_v56  ;;  %4535 = vmatpush1.bf16.msra.mxu1 %v5962_v59 }
 0x2bd   : > { %4505 = vmatprep.subr.bf16.mxu0 %v5964_v60  ;;  %4537 = vmatprep.subr.bf16.mxu1 %v5967_v2 }
 0x2c0   : > { %4507 = vmatpush1.bf16.msra.mxu0 %v7037_v28  ;;  %4539 = vmatpush1.bf16.msra.mxu1 %v7038_v9 }
 0x2c1   : > { %4509 = vmatprep.subr.bf16.mxu0 %v7063_v23  ;;  %4541 = vmatprep.subr.bf16.mxu1 %v7064_v43 }
 0x2c2   : > { %v5323_v49 = vpop.eup %5322 }
 0x2c3   : > { %v5325_v38 = vpop.eup %5324 }
 0x2c4   : > { %v5327_v7 = vpop.eup %5326  ;;  %4511 = vmatpush1.bf16.msra.mxu0 %v7041_v0  ;;  %4543 = vmatpush1.bf16.msra.mxu1 %v7042_v37  ;;  %v1421_v17 = vmul.f32 %v5325_v38, %v5323_v49  ;;  %v7072_v49 = vld [vmem:[#allocation25_spill] sm:$0xff]  ;;  %v7073_v38 = vld [vmem:[#allocation26_spill] sm:$0xff] }
 0x2c5   : > { %v1420_v5 = vmul.f32 %v5327_v7, %v6144_v27  ;;  %4513 = vmatprep.subr.bf16.mxu0 %v7043_v61  ;;  %4545 = vmatprep.subr.bf16.mxu1 %v7044_v19  ;;  %v5329_v58 = vpop.eup %5328  ;;  %v7074_v7 = vld [vmem:[#allocation27_spill] sm:$0xff] }
 0x2c7   : > { %v1422_v11 = vadd.f32 %v1421_v17, %v1420_v5  ;;  %v7076_v5 = vld [vmem:[#allocation29_spill] sm:$0xff]  ;;  %v7077_v17 = vld [vmem:[#allocation30_spill] sm:$0xff] }
 0x2c8   : > { %4515 = vmatpush1.bf16.msra.mxu0 %v7045_v51  ;;  %4547 = vmatpush1.bf16.msra.mxu1 %v7046_v14 }
 0x2c9   : > { %5330 = vtanh.f32 %v1422_v11  ;;  %v6254_v48 = vsel %vm1430_vm3, %v1422_v11, %v6144_v27  ;;  %4517 = vmatprep.subr.bf16.mxu0 %v6005_v46  ;;  %4549 = vmatprep.subr.bf16.mxu1 %v7047_v8  ;;  %v7079_v11 = vld [vmem:[#allocation32_spill] sm:$0xff] }
 0x2cc   : > { %4519 = vmatpush1.bf16.msra.mxu0 %v6011_v1  ;;  %4551 = vmatpush1.bf16.msra.mxu1 %v6015_v24 }
 0x2cd   : > { %4521 = vmatprep.subr.bf16.mxu0 %v6017_v16  ;;  %4553 = vmatprep.subr.bf16.mxu1 %v6020_v63 }
 0x2d0   : > { %4523 = vmatpush1.bf16.msra.mxu0 %v6023_v39  ;;  %4555 = vmatpush1.bf16.msra.mxu1 %v6027_v22 }
 0x2d1   : > { %4525 = vmatprep.subr.bf16.mxu0 %v6029_v41  ;;  %4557 = vmatprep.subr.bf16.mxu1 %v6032_v10 }
 0x2d3   : > { %v5331_v27 = vpop.eup %5330 }
 0x2d4   : > { %v1424_v21 = vmul.f32 %v5331_v27, %v5329_v58  ;;  %4527 = vmatpush1.bf16.msra.mxu0 %v6035_v13  ;;  %4559 = vmatpush1.bf16.msra.mxu1 %v6039_v15  ;;  %v7080_v58 = vld [vmem:[#allocation33_spill] sm:$0xff]  ;;  %v7081_v27 = vld [vmem:[#allocation34_spill] sm:$0xff] }
 0x2d5   : > { %4561 = vmatprep.subr.bf16.mxu0 %v5841_v20  ;;  %4593 = vmatprep.subr.bf16.mxu1 %v5845_v25 }
 0x2d6   : > { %v6271_v55 = vsel %vm1430_vm3, %v1424_v21, %v6161_v34  ;;  %v1438_v47 = vsel %vm1430_vm3, %v1424_v21, 0.0  ;;  %v7065_v34 = vld [vmem:[#allocation18_spill] sm:$0xff]  ;;  %v7082_v21 = vld [vmem:[#allocation35_spill] sm:$0xff] }
 0x2d7   : > { %4114 = vst [vmem:[%s5837_s30 + $0xc] sm:$0x3] %v1438_v47  ;;  %1708 = vmatmul.mubr.f32.vlgmr.msra.gmra.mrb[10].mxu0 %v6271_v55  ;;  %1779 = vmatmul.mubr.f32.vlgmr.msra.gmra.mrb[10].mxu1 %v6271_v55  ;;  %v7083_v47 = vld [vmem:[#allocation36_spill] sm:$0xff] }
 0x2d8   : > { %4563 = vmatpush1.bf16.msra.mxu0 %v5847_v26  ;;  %4595 = vmatpush1.bf16.msra.mxu1 %v5850_v31 }
 0x2d9   : > { %4565 = vmatprep.subr.bf16.mxu0 %v5854_v35  ;;  %4597 = vmatprep.subr.bf16.mxu1 %v5856_v36 }
 0x2da   : > { %1922 = vmatprep.mubr.f32.mxu0 %v7033_v3  ;;  %1993 = vmatprep.mubr.f32.mxu1 %v7033_v3 }
 0x2dc   : > { %4567 = vmatpush1.bf16.msra.mxu0 %v5859_v40  ;;  %4599 = vmatpush1.bf16.msra.mxu1 %v5863_v44 }
 0x2dd   : > { %4569 = vmatprep.subr.bf16.mxu0 %v7065_v34  ;;  %4601 = vmatprep.subr.bf16.mxu1 %v7066_v54 }
 0x2e0   : > { %4571 = vmatpush1.bf16.msra.mxu0 %v7067_v53  ;;  %4603 = vmatpush1.bf16.msra.mxu1 %v7068_v57 }
 0x2e1   : > { %4573 = vmatprep.subr.bf16.mxu0 %v7069_v33  ;;  %4605 = vmatprep.subr.bf16.mxu1 %v7070_v18 }
 0x2e4   : > { %4575 = vmatpush1.bf16.msra.mxu0 %v7071_v52  ;;  %4607 = vmatpush1.bf16.msra.mxu1 %v7072_v49 }
 0x2e5   : > { %4577 = vmatprep.subr.bf16.mxu0 %v7073_v38  ;;  %4609 = vmatprep.subr.bf16.mxu1 %v7074_v7  ;;  %v7084_v7 = vld [vmem:[#allocation37_spill] sm:$0xff]  ;;  %v7089_v38 = vld [vmem:[#allocation42_spill] sm:$0xff] }
 0x2e8   : > { %4579 = vmatpush1.bf16.msra.mxu0 %v7075_v6  ;;  %4611 = vmatpush1.bf16.msra.mxu1 %v7076_v5  ;;  %v7085_v6 = vld [vmem:[#allocation38_spill] sm:$0xff]  ;;  %v7086_v5 = vld [vmem:[#allocation39_spill] sm:$0xff] }
 0x2e9   : > { %4581 = vmatprep.subr.bf16.mxu0 %v7077_v17  ;;  %4613 = vmatprep.subr.bf16.mxu1 %v7078_v62  ;;  %v7087_v17 = vld [vmem:[#allocation40_spill] sm:$0xff]  ;;  %v7088_v62 = vld [vmem:[#allocation41_spill] sm:$0xff] }
 0x2ec   : > { %4583 = vmatpush1.bf16.msra.mxu0 %v7079_v11  ;;  %4615 = vmatpush1.bf16.msra.mxu1 %v7080_v58  ;;  %v7090_v11 = vld [vmem:[#allocation43_spill] sm:$0xff] }
 0x2ed   : > { %4585 = vmatprep.subr.bf16.mxu0 %v7081_v27  ;;  %4617 = vmatprep.subr.bf16.mxu1 %v7082_v21  ;;  %v6315_v21 = vld [vmem:[%s5807_s9 + $0x8] sm:$0xff]  }
 0x2ee   : > { %7091 = vst [vmem:[#allocation44_spill] sm:$0xff] %v6315_v21 }
 0x2f0   : > { %4587 = vmatpush1.bf16.msra.mxu0 %v7083_v47  ;;  %4619 = vmatpush1.bf16.msra.mxu1 %v7084_v7 }
 0x2f1   : > { %4589 = vmatprep.subr.bf16.mxu0 %v7085_v6  ;;  %4621 = vmatprep.subr.bf16.mxu1 %v7086_v5  ;;  %v1443_v5 = vunpack.c.l.bf16 %v6315_v21  ;;  %v1840_v21 = vstv %s1839_s29 }
 0x2f2   : > { %vm1841_vm4 = vcmp.lt.s32.totalorder %v1840_v21, %v6098_v4 }
 0x2f4   : > { %4591 = vmatpush1.bf16.msra.mxu0 %v7087_v17  ;;  %4623 = vmatpush1.bf16.msra.mxu1 %v7088_v62 }
 0x2f5   : > { %4625 = vmatprep.subr.bf16.mxu0 %v7089_v38  ;;  %4657 = vmatprep.subr.bf16.mxu1 %v7090_v11 }
 0x38a   : > { %v1510_v58 = vpop.f32.mrb[8].mxu0  ;;  %v1581_v27 = vpop.f32.mrb[8].mxu1 }
 0x38b   : > { %v1512_v49 = vpop.f32.mrb[9].mxu0  ;;  %v1583_v47 = vpop.f32.mrb[9].mxu1 }
 0x38c   : > { %v1590_v52 = vcombine.low %v1510_v58, %v1512_v49  ;;  %v1591_v7 = vcombine.low %v1581_v27, %v1583_v47 }
 0x38e   : > { %v1598_v6 = vrot.slane %v1590_v52, %v6084_v50  ;;  %v1605_v17 = vrot.slane %v1591_v7, %v6084_v50 }
 0x390   : > { %v1606_v18 = vcombine.low %v1598_v6, %v1605_v17 }
 0x392   : > { %v1608_v62 = vadd.f32 %v1606_v18, %v1443_v5  ;;  %v6321_v5 = vld [vmem:[%s5809_s10 + $0x10] sm:$0xff]  }
 0x394   : > { %v4116_v33 = vmul.f32 -1.442695, %v1608_v62  ;;  %v1616_v38 = vrot.slane %v1608_v62, 2  ;;  %v1627_v57 = vrot.slane %v1608_v62, 6  ;;  %v1624_v34 = vrot.slane %v1608_v62, 4 }
 0x396   : > { %5332 = vpow2.f32 %v4116_v33  ;;  %v4117_v11 = vmul.f32 -1.442695, %v1616_v38  ;;  %v4118_v53 = vmul.f32 -1.442695, %v1627_v57 }
 0x398   : > { %5334 = vpow2.f32 %v4117_v11 }
 0x399   : > { %5336 = vpow2.f32 %v4118_v53  ;;  %v1642_v53 = vunpack.c.h.bf16 %v6321_v5 }
 0x3a0   : > { %v5333_v54 = vpop.eup %5332 }
 0x3a1   : > { %v1612_v49 = vadd.f32 1.0, %v5333_v54 }
 0x3a2   : > { %v5335_v58 = vpop.eup %5334 }
 0x3a3   : > { %5338 = vrcp.f32 %v1612_v49  ;;  %v1621_v52 = vadd.f32 1.0, %v5335_v58  ;;  %v5337_v38 = vpop.eup %5336 }
 0x3a4   : > { %5340 = vtanh.f32 %v1624_v34  ;;  %v1632_v47 = vadd.f32 1.0, %v5337_v38 }
 0x3a5   : > { %5342 = vrcp.f32 %v1621_v52 }
 0x3a6   : > { %5344 = vrcp.f32 %v1632_v47 }
 0x3aa   : > { %v1709_v7 = vpop.f32.mrb[10].mxu0  ;;  %v1780_v18 = vpop.f32.mrb[10].mxu1 }
 0x3ab   : > { %v1711_v6 = vpop.f32.mrb[11].mxu0  ;;  %v1782_v33 = vpop.f32.mrb[11].mxu1 }
 0x3ac   : > { %v1789_v17 = vcombine.low %v1709_v7, %v1711_v6  ;;  %v1790_v11 = vcombine.low %v1780_v18, %v1782_v33 }
 0x3ad   : > { %v5339_v57 = vpop.eup %5338 }
 0x3ae   : > { %v5341_v27 = vpop.eup %5340  ;;  %v1797_v54 = vrot.slane %v1789_v17, %v6084_v50  ;;  %v1804_v62 = vrot.slane %v1790_v11, %v6084_v50 }
 0x3af   : > { %v5343_v34 = vpop.eup %5342  ;;  %v1636_v52 = vmul.f32 %v5341_v27, %v5339_v57 }
 0x3b0   : > { %v1805_v49 = vcombine.low %v1797_v54, %v1804_v62  ;;  %v1635_v58 = vmul.f32 %v5343_v34, %v6216_v12  ;;  %v5345_v17 = vpop.eup %5344 }
 0x3b2   : > { %v1807_v44 = vadd.f32 %v1805_v49, %v1642_v53  ;;  %v1637_v40 = vadd.f32 %v1636_v52, %v1635_v58 }
 0x3b4   : > { %v4120_v7 = vmul.f32 -1.442695, %v1807_v44  ;;  %v1815_v18 = vrot.slane %v1807_v44, 2  ;;  %5346 = vtanh.f32 %v1637_v40  ;;  %v6332_v6 = vsel %vm1841_vm4, %v1637_v40, %v6216_v12 }
 0x3b5   : > { %v1826_v38 = vrot.slane %v1807_v44, 6  ;;  %v1823_v54 = vrot.slane %v1807_v44, 4 }
 0x3b6   : > { %5348 = vpow2.f32 %v4120_v7  ;;  %v4121_v33 = vmul.f32 -1.442695, %v1815_v18  ;;  %v1843_v18 = vstv %s1842_s23 }
 0x3b7   : > { %v4122_v11 = vmul.f32 -1.442695, %v1826_v38  ;;  %vm1844_vm5 = vcmp.lt.s32.totalorder %v1843_v18, %v6098_v4  ;;  %v7106_v18 = vld [vmem:[#allocation30_spill] sm:$0xff] }
 0x3b8   : > { %5350 = vpow2.f32 %v4121_v33 }
 0x3b9   : > { %5352 = vpow2.f32 %v4122_v11 }
 0x3be   : > { %v5347_v57 = vpop.eup %5346 }
 0x3bf   : > { %v1639_v53 = vmul.f32 %v5347_v57, %v5345_v17 }
 0x3c0   : > { %v5349_v27 = vpop.eup %5348 }
 0x3c1   : > { %v1811_v62 = vadd.f32 1.0, %v5349_v27  ;;  %v6337_v47 = vsel %vm1841_vm4, %v1639_v53, %v6221_v45  ;;  %v1849_v40 = vsel %vm1841_vm4, %v1639_v53, 0.0  ;;  %v7094_v53 = vld [vmem:[#allocation18_spill] sm:$0xff] }
 0x3c2   : > { %v5351_v34 = vpop.eup %5350  ;;  %4123 = vst [vmem:[%s5832_s20 + $0x4] sm:$0x3] %v1849_v40  ;;  %1923 = vmatmul.mubr.f32.vlgmr.msra.gmra.mrb[12].mxu0 %v6337_v47  ;;  %1994 = vmatmul.mubr.f32.vlgmr.msra.gmra.mrb[12].mxu1 %v6337_v47  ;;  %v7097_v40 = vld [vmem:[#allocation21_spill] sm:$0xff] }
 0x3c3   : > { %5354 = vrcp.f32 %v1811_v62  ;;  %v1820_v12 = vadd.f32 1.0, %v5351_v34  ;;  %4627 = vmatpush1.bf16.msra.mxu0 %v5944_v29  ;;  %4659 = vmatpush1.bf16.msra.mxu1 %v5948_v30  ;;  %v5353_v44 = vpop.eup %5352  ;;  %v7095_v62 = vld [vmem:[#allocation19_spill] sm:$0xff]  ;;  %v7096_v34 = vld [vmem:[#allocation20_spill] sm:$0xff] }
 0x3c4   : > { %5356 = vtanh.f32 %v1823_v54  ;;  %4629 = vmatprep.subr.bf16.mxu0 %v5950_v32  ;;  %4661 = vmatprep.subr.bf16.mxu1 %v5953_v42  ;;  %v1831_v58 = vadd.f32 1.0, %v5353_v44  ;;  %v7093_v54 = vld [vmem:[#allocation17_spill] sm:$0xff]  ;;  %v7099_v44 = vld [vmem:[#allocation23_spill] sm:$0xff] }
 0x3c5   : > { %5358 = vrcp.f32 %v1820_v12  ;;  %2121 = vmatprep.mubr.f32.mxu0 %v7033_v3  ;;  %2192 = vmatprep.mubr.f32.mxu1 %v7033_v3  ;;  %v7098_v12 = vld [vmem:[#allocation22_spill] sm:$0xff] }
 0x3c6   : > { %5360 = vrcp.f32 %v1831_v58  ;;  %v7103_v58 = vld [vmem:[#allocation27_spill] sm:$0xff] }
 0x3c7   : > { %4631 = vmatpush1.bf16.msra.mxu0 %v5958_v56  ;;  %4663 = vmatpush1.bf16.msra.mxu1 %v5962_v59 }
 0x3c8   : > { %4633 = vmatprep.subr.bf16.mxu0 %v5964_v60  ;;  %4665 = vmatprep.subr.bf16.mxu1 %v5967_v2 }
 0x3cb   : > { %4635 = vmatpush1.bf16.msra.mxu0 %v7037_v28  ;;  %4667 = vmatpush1.bf16.msra.mxu1 %v7038_v9 }
 0x3cc   : > { %4637 = vmatprep.subr.bf16.mxu0 %v7063_v23  ;;  %4669 = vmatprep.subr.bf16.mxu1 %v7064_v43 }
 0x3cd   : > { %v5355_v45 = vpop.eup %5354 }
 0x3ce   : > { %v5357_v21 = vpop.eup %5356 }
 0x3cf   : > { %v5359_v49 = vpop.eup %5358  ;;  %4639 = vmatpush1.bf16.msra.mxu0 %v7041_v0  ;;  %4671 = vmatpush1.bf16.msra.mxu1 %v7042_v37  ;;  %v1835_v7 = vmul.f32 %v5357_v21, %v5355_v45  ;;  %v7100_v45 = vld [vmem:[#allocation24_spill] sm:$0xff]  ;;  %v7101_v21 = vld [vmem:[#allocation25_spill] sm:$0xff] }
 0x3d0   : > { %v1834_v52 = vmul.f32 %v5359_v49, %v6254_v48  ;;  %4641 = vmatprep.subr.bf16.mxu0 %v7043_v61  ;;  %4673 = vmatprep.subr.bf16.mxu1 %v7044_v19  ;;  %v5361_v17 = vpop.eup %5360  ;;  %v7102_v49 = vld [vmem:[#allocation26_spill] sm:$0xff] }
 0x3d2   : > { %v1836_v33 = vadd.f32 %v1835_v7, %v1834_v52  ;;  %v7104_v52 = vld [vmem:[#allocation28_spill] sm:$0xff]  ;;  %v7105_v7 = vld [vmem:[#allocation29_spill] sm:$0xff] }
 0x3d3   : > { %4643 = vmatpush1.bf16.msra.mxu0 %v7045_v51  ;;  %4675 = vmatpush1.bf16.msra.mxu1 %v7046_v14 }
 0x3d4   : > { %5362 = vtanh.f32 %v1836_v33  ;;  %v6370_v38 = vsel %vm1844_vm5, %v1836_v33, %v6254_v48  ;;  %4645 = vmatprep.subr.bf16.mxu0 %v6005_v46  ;;  %4677 = vmatprep.subr.bf16.mxu1 %v7047_v8  ;;  %v7107_v33 = vld [vmem:[#allocation31_spill] sm:$0xff] }
 0x3d7   : > { %4647 = vmatpush1.bf16.msra.mxu0 %v6011_v1  ;;  %4679 = vmatpush1.bf16.msra.mxu1 %v6015_v24 }
 0x3d8   : > { %4649 = vmatprep.subr.bf16.mxu0 %v6017_v16  ;;  %4681 = vmatprep.subr.bf16.mxu1 %v6020_v63 }
 0x3db   : > { %4651 = vmatpush1.bf16.msra.mxu0 %v6023_v39  ;;  %4683 = vmatpush1.bf16.msra.mxu1 %v6027_v22 }
 0x3dc   : > { %4653 = vmatprep.subr.bf16.mxu0 %v6029_v41  ;;  %4685 = vmatprep.subr.bf16.mxu1 %v6032_v10 }
 0x3de   : > { %v5363_v48 = vpop.eup %5362 }
 0x3df   : > { %v1838_v11 = vmul.f32 %v5363_v48, %v5361_v17  ;;  %4655 = vmatpush1.bf16.msra.mxu0 %v6035_v13  ;;  %4687 = vmatpush1.bf16.msra.mxu1 %v6039_v15  ;;  %v7108_v17 = vld [vmem:[#allocation32_spill] sm:$0xff]  ;;  %v7109_v48 = vld [vmem:[#allocation33_spill] sm:$0xff] }
 0x3e0   : > { %4689 = vmatprep.subr.bf16.mxu0 %v5841_v20  ;;  %4721 = vmatprep.subr.bf16.mxu1 %v5845_v25 }
 0x3e1   : > { %v6387_v57 = vsel %vm1844_vm5, %v1838_v11, %v6271_v55  ;;  %v1852_v27 = vsel %vm1844_vm5, %v1838_v11, 0.0  ;;  %v7092_v55 = vld [vmem:[#allocation16_spill] sm:$0xff]  ;;  %v7110_v11 = vld [vmem:[#allocation34_spill] sm:$0xff] }
 0x3e2   : > { %4124 = vst [vmem:[%s5837_s30 + $0xa] sm:$0x3] %v1852_v27  ;;  %2122 = vmatmul.mubr.f32.vlgmr.msra.gmra.mrb[14].mxu0 %v6387_v57  ;;  %2193 = vmatmul.mubr.f32.vlgmr.msra.gmra.mrb[14].mxu1 %v6387_v57  ;;  %v7111_v27 = vld [vmem:[#allocation35_spill] sm:$0xff] }
 0x3e3   : > { %4691 = vmatpush1.bf16.msra.mxu0 %v5847_v26  ;;  %4723 = vmatpush1.bf16.msra.mxu1 %v5850_v31 }
 0x3e4   : > { %4693 = vmatprep.subr.bf16.mxu0 %v5854_v35  ;;  %4725 = vmatprep.subr.bf16.mxu1 %v5856_v36 }
 0x3e5   : > { %2336 = vmatprep.mubr.f32.mxu0 %v7033_v3  ;;  %2407 = vmatprep.mubr.f32.mxu1 %v7033_v3 }
 0x3e7   : > { %4695 = vmatpush1.bf16.msra.mxu0 %v7092_v55  ;;  %4727 = vmatpush1.bf16.msra.mxu1 %v7093_v54 }
 0x3e8   : > { %4697 = vmatprep.subr.bf16.mxu0 %v7094_v53  ;;  %4729 = vmatprep.subr.bf16.mxu1 %v7095_v62 }
 0x3eb   : > { %4699 = vmatpush1.bf16.msra.mxu0 %v7096_v34  ;;  %4731 = vmatpush1.bf16.msra.mxu1 %v7097_v40 }
 0x3ec   : > { %4701 = vmatprep.subr.bf16.mxu0 %v7098_v12  ;;  %4733 = vmatprep.subr.bf16.mxu1 %v7099_v44  ;;  %v7120_v12 = vld [vmem:[#allocation44_spill] sm:$0xff] }
 0x3ef   : > { %4703 = vmatpush1.bf16.msra.mxu0 %v7100_v45  ;;  %4735 = vmatpush1.bf16.msra.mxu1 %v7101_v21  ;;  %v7112_v21 = vld [vmem:[#allocation36_spill] sm:$0xff] }
 0x3f0   : > { %4705 = vmatprep.subr.bf16.mxu0 %v7102_v49  ;;  %4737 = vmatprep.subr.bf16.mxu1 %v7103_v58  ;;  %v7113_v49 = vld [vmem:[#allocation37_spill] sm:$0xff]  ;;  %v7114_v58 = vld [vmem:[#allocation38_spill] sm:$0xff] }
 0x3f3   : > { %4707 = vmatpush1.bf16.msra.mxu0 %v7104_v52  ;;  %4739 = vmatpush1.bf16.msra.mxu1 %v7105_v7  ;;  %v7115_v52 = vld [vmem:[#allocation39_spill] sm:$0xff]  ;;  %v7116_v7 = vld [vmem:[#allocation40_spill] sm:$0xff] }
 0x3f4   : > { %4709 = vmatprep.subr.bf16.mxu0 %v7106_v18  ;;  %4741 = vmatprep.subr.bf16.mxu1 %v7107_v33  ;;  %v7117_v18 = vld [vmem:[#allocation41_spill] sm:$0xff]  ;;  %v7118_v33 = vld [vmem:[#allocation42_spill] sm:$0xff] }
 0x3f7   : > { %4711 = vmatpush1.bf16.msra.mxu0 %v7108_v17  ;;  %4743 = vmatpush1.bf16.msra.mxu1 %v7109_v48  ;;  %v7119_v17 = vld [vmem:[#allocation43_spill] sm:$0xff] }
 0x3f8   : > { %4713 = vmatprep.subr.bf16.mxu0 %v7110_v11  ;;  %4745 = vmatprep.subr.bf16.mxu1 %v7111_v27 }
 0x3fb   : > { %4715 = vmatpush1.bf16.msra.mxu0 %v7112_v21  ;;  %4747 = vmatpush1.bf16.msra.mxu1 %v7113_v49 }
 0x3fc   : > { %4717 = vmatprep.subr.bf16.mxu0 %v7114_v58  ;;  %4749 = vmatprep.subr.bf16.mxu1 %v7115_v52  ;;  %v1857_v58 = vunpack.c.h.bf16 %v7120_v12 }
 0x3ff   : > { %4719 = vmatpush1.bf16.msra.mxu0 %v7116_v7  ;;  %4751 = vmatpush1.bf16.msra.mxu1 %v7117_v18 }
 0x400   : > { %4753 = vmatprep.subr.bf16.mxu0 %v7118_v33  ;;  %4785 = vmatprep.subr.bf16.mxu1 %v7119_v17 }
 0x495   : > { %v1924_v48 = vpop.f32.mrb[12].mxu0  ;;  %v1995_v11 = vpop.f32.mrb[12].mxu1 }
 0x496   : > { %v1926_v45 = vpop.f32.mrb[13].mxu0  ;;  %v1997_v27 = vpop.f32.mrb[13].mxu1 }
 0x497   : > { %v2004_v44 = vcombine.low %v1924_v48, %v1926_v45  ;;  %v2005_v21 = vcombine.low %v1995_v11, %v1997_v27  ;;  %v2254_v27 = vstv %s2253_s11 }
 0x498   : > { %vm2255_vm6 = vcmp.lt.s32.totalorder %v2254_v27, %v6098_v4 }
 0x499   : > { %v2012_v49 = vrot.slane %v2004_v44, %v6084_v50  ;;  %v2019_v52 = vrot.slane %v2005_v21, %v6084_v50 }
 0x49b   : > { %v2020_v40 = vcombine.low %v2012_v49, %v2019_v52 }
 0x49d   : > { %v2022_v7 = vadd.f32 %v2020_v40, %v1857_v58 }
 0x49f   : > { %v4126_v34 = vmul.f32 -1.442695, %v2022_v7  ;;  %v2030_v18 = vrot.slane %v2022_v7, 2  ;;  %v2041_v17 = vrot.slane %v2022_v7, 6  ;;  %v2038_v54 = vrot.slane %v2022_v7, 4 }
 0x4a1   : > { %5364 = vpow2.f32 %v4126_v34  ;;  %v4127_v33 = vmul.f32 -1.442695, %v2030_v18  ;;  %v4128_v62 = vmul.f32 -1.442695, %v2041_v17 }
 0x4a3   : > { %5366 = vpow2.f32 %v4127_v33 }
 0x4a4   : > { %5368 = vpow2.f32 %v4128_v62 }
 0x4ab   : > { %v5365_v53 = vpop.eup %5364 }
 0x4ac   : > { %v2026_v55 = vadd.f32 1.0, %v5365_v53  ;;  %v2056_v53 = vunpack.c.l.bf16 %v6321_v5 }
 0x4ad   : > { %v5367_v45 = vpop.eup %5366 }
 0x4ae   : > { %5370 = vrcp.f32 %v2026_v55  ;;  %v2035_v44 = vadd.f32 1.0, %v5367_v45  ;;  %v5369_v58 = vpop.eup %5368 }
 0x4af   : > { %5372 = vtanh.f32 %v2038_v54  ;;  %v2046_v7 = vadd.f32 1.0, %v5369_v58 }
 0x4b0   : > { %5374 = vrcp.f32 %v2035_v44 }
 0x4b1   : > { %5376 = vrcp.f32 %v2046_v7 }
 0x4b5   : > { %v2123_v12 = vpop.f32.mrb[14].mxu0  ;;  %v2194_v21 = vpop.f32.mrb[14].mxu1 }
 0x4b6   : > { %v2125_v40 = vpop.f32.mrb[15].mxu0  ;;  %v2196_v49 = vpop.f32.mrb[15].mxu1 }
 0x4b7   : > { %v2203_v34 = vcombine.low %v2123_v12, %v2125_v40  ;;  %v2204_v52 = vcombine.low %v2194_v21, %v2196_v49 }
 0x4b8   : > { %v5371_v18 = vpop.eup %5370 }
 0x4b9   : > { %v5373_v33 = vpop.eup %5372  ;;  %v2211_v17 = vrot.slane %v2203_v34, %v6084_v50  ;;  %v2218_v62 = vrot.slane %v2204_v52, %v6084_v50 }
 0x4ba   : > { %v5375_v55 = vpop.eup %5374  ;;  %v2050_v11 = vmul.f32 %v5373_v33, %v5371_v18 }
 0x4bb   : > { %v2219_v54 = vcombine.low %v2211_v17, %v2218_v62  ;;  %v2049_v48 = vmul.f32 %v5375_v55, %v6332_v6  ;;  %v5377_v58 = vpop.eup %5376 }
 0x4bd   : > { %v2221_v45 = vadd.f32 %v2219_v54, %v2056_v53  ;;  %v2051_v44 = vadd.f32 %v2050_v11, %v2049_v48 }
 0x4bf   : > { %v4130_v12 = vmul.f32 -1.442695, %v2221_v45  ;;  %v2229_v21 = vrot.slane %v2221_v45, 2  ;;  %5378 = vtanh.f32 %v2051_v44  ;;  %v6442_v5 = vsel %vm2255_vm6, %v2051_v44, %v6332_v6 }
 0x4c0   : > { %v2240_v49 = vrot.slane %v2221_v45, 6  ;;  %v2237_v33 = vrot.slane %v2221_v45, 4 }
 0x4c1   : > { %5380 = vpow2.f32 %v4130_v12  ;;  %v4131_v40 = vmul.f32 -1.442695, %v2229_v21  ;;  %v2257_v12 = vstv %s2256_s15 }
 0x4c2   : > { %v4132_v34 = vmul.f32 -1.442695, %v2240_v49  ;;  %vm2258_vm7 = vcmp.lt.s32.totalorder %v2257_v12, %v6098_v4  ;;  %v7136_v12 = vld [vmem:[#allocation31_spill] sm:$0xff] }
 0x4c3   : > { %5382 = vpow2.f32 %v4131_v40 }
 0x4c4   : > { %5384 = vpow2.f32 %v4132_v34 }
 0x4c9   : > { %v5379_v52 = vpop.eup %5378 }
 0x4ca   : > { %v2053_v17 = vmul.f32 %v5379_v52, %v5377_v58 }
 0x4cb   : > { %v5381_v18 = vpop.eup %5380 }
 0x4cc   : > { %v2225_v53 = vadd.f32 1.0, %v5381_v18  ;;  %v6447_v55 = vsel %vm2255_vm6, %v2053_v17, %v6337_v47  ;;  %v2263_v6 = vsel %vm2255_vm6, %v2053_v17, 0.0  ;;  %v7122_v18 = vld [vmem:[#allocation17_spill] sm:$0xff]  ;;  %v7124_v17 = vld [vmem:[#allocation19_spill] sm:$0xff] }
 0x4cd   : > { %v5383_v62 = vpop.eup %5382  ;;  %4133 = vst [vmem:[%s5832_s20 + $0x6] sm:$0x3] %v2263_v6  ;;  %2337 = vmatmul.mubr.f32.vlgmr.msra.gmra.mrb[16].mxu0 %v6447_v55  ;;  %2408 = vmatmul.mubr.f32.vlgmr.msra.gmra.mrb[16].mxu1 %v6447_v55  ;;  %v7127_v6 = vld [vmem:[#allocation22_spill] sm:$0xff] }
 0x4ce   : > { %5386 = vrcp.f32 %v2225_v53  ;;  %v2234_v7 = vadd.f32 1.0, %v5383_v62  ;;  %4755 = vmatpush1.bf16.msra.mxu0 %v5944_v29  ;;  %4787 = vmatpush1.bf16.msra.mxu1 %v5948_v30  ;;  %v5385_v47 = vpop.eup %5384  ;;  %v7125_v53 = vld [vmem:[#allocation20_spill] sm:$0xff]  ;;  %v7126_v62 = vld [vmem:[#allocation21_spill] sm:$0xff] }
 0x4cf   : > { %5388 = vtanh.f32 %v2237_v33  ;;  %4757 = vmatprep.subr.bf16.mxu0 %v5950_v32  ;;  %4789 = vmatprep.subr.bf16.mxu1 %v5953_v42  ;;  %v2245_v27 = vadd.f32 1.0, %v5385_v47  ;;  %v7123_v33 = vld [vmem:[#allocation18_spill] sm:$0xff]  ;;  %v7129_v47 = vld [vmem:[#allocation24_spill] sm:$0xff] }
 0x4d0   : > { %5390 = vrcp.f32 %v2234_v7  ;;  %2535 = vmatprep.mubr.f32.mxu0 %v7033_v3  ;;  %2606 = vmatprep.mubr.f32.mxu1 %v7033_v3  ;;  %v7128_v7 = vld [vmem:[#allocation23_spill] sm:$0xff] }
 0x4d1   : > { %5392 = vrcp.f32 %v2245_v27  ;;  %v7133_v27 = vld [vmem:[#allocation28_spill] sm:$0xff] }
 0x4d2   : > { %4759 = vmatpush1.bf16.msra.mxu0 %v5958_v56  ;;  %4791 = vmatpush1.bf16.msra.mxu1 %v5962_v59 }
 0x4d3   : > { %4761 = vmatprep.subr.bf16.mxu0 %v5964_v60  ;;  %4793 = vmatprep.subr.bf16.mxu1 %v5967_v2 }
 0x4d6   : > { %4763 = vmatpush1.bf16.msra.mxu0 %v7037_v28  ;;  %4795 = vmatpush1.bf16.msra.mxu1 %v7038_v9 }
 0x4d7   : > { %4765 = vmatprep.subr.bf16.mxu0 %v7063_v23  ;;  %4797 = vmatprep.subr.bf16.mxu1 %v7064_v43 }
 0x4d8   : > { %v5387_v54 = vpop.eup %5386 }
 0x4d9   : > { %v5389_v48 = vpop.eup %5388 }
 0x4da   : > { %v5391_v11 = vpop.eup %5390  ;;  %4767 = vmatpush1.bf16.msra.mxu0 %v7041_v0  ;;  %4799 = vmatpush1.bf16.msra.mxu1 %v7042_v37  ;;  %v2249_v44 = vmul.f32 %v5389_v48, %v5387_v54  ;;  %v7130_v54 = vld [vmem:[#allocation25_spill] sm:$0xff]  ;;  %v7131_v48 = vld [vmem:[#allocation26_spill] sm:$0xff] }
 0x4db   : > { %v2248_v45 = vmul.f32 %v5391_v11, %v6370_v38  ;;  %4769 = vmatprep.subr.bf16.mxu0 %v7043_v61  ;;  %4801 = vmatprep.subr.bf16.mxu1 %v7044_v19  ;;  %v5393_v49 = vpop.eup %5392  ;;  %v7132_v11 = vld [vmem:[#allocation27_spill] sm:$0xff] }
 0x4dd   : > { %v2250_v21 = vadd.f32 %v2249_v44, %v2248_v45  ;;  %v7134_v45 = vld [vmem:[#allocation29_spill] sm:$0xff]  ;;  %v7135_v44 = vld [vmem:[#allocation30_spill] sm:$0xff] }
 0x4de   : > { %4771 = vmatpush1.bf16.msra.mxu0 %v7045_v51  ;;  %4803 = vmatpush1.bf16.msra.mxu1 %v7046_v14 }
 0x4df   : > { %5394 = vtanh.f32 %v2250_v21  ;;  %v6480_v40 = vsel %vm2258_vm7, %v2250_v21, %v6370_v38  ;;  %4773 = vmatprep.subr.bf16.mxu0 %v6005_v46  ;;  %4805 = vmatprep.subr.bf16.mxu1 %v7047_v8  ;;  %v7137_v21 = vld [vmem:[#allocation32_spill] sm:$0xff] }
 0x4e2   : > { %4775 = vmatpush1.bf16.msra.mxu0 %v6011_v1  ;;  %4807 = vmatpush1.bf16.msra.mxu1 %v6015_v24 }
 0x4e3   : > { %4777 = vmatprep.subr.bf16.mxu0 %v6017_v16  ;;  %4809 = vmatprep.subr.bf16.mxu1 %v6020_v63 }
 0x4e6   : > { %4779 = vmatpush1.bf16.msra.mxu0 %v6023_v39  ;;  %4811 = vmatpush1.bf16.msra.mxu1 %v6027_v22 }
 0x4e7   : > { %4781 = vmatprep.subr.bf16.mxu0 %v6029_v41  ;;  %4813 = vmatprep.subr.bf16.mxu1 %v6032_v10 }
 0x4e9   : > { %v5395_v38 = vpop.eup %5394 }
 0x4ea   : > { %v2252_v58 = vmul.f32 %v5395_v38, %v5393_v49  ;;  %4783 = vmatpush1.bf16.msra.mxu0 %v6035_v13  ;;  %4815 = vmatpush1.bf16.msra.mxu1 %v6039_v15  ;;  %v7138_v49 = vld [vmem:[#allocation33_spill] sm:$0xff]  ;;  %v7139_v38 = vld [vmem:[#allocation34_spill] sm:$0xff] }
 0x4eb   : > { %4817 = vmatprep.subr.bf16.mxu0 %v5841_v20  ;;  %4849 = vmatprep.subr.bf16.mxu1 %v5845_v25 }
 0x4ec   : > { %v6497_v34 = vsel %vm2258_vm7, %v2252_v58, %v6387_v57  ;;  %v2266_v52 = vsel %vm2258_vm7, %v2252_v58, 0.0  ;;  %v7121_v57 = vld [vmem:[#allocation16_spill] sm:$0xff]  ;;  %v7140_v58 = vld [vmem:[#allocation35_spill] sm:$0xff] }
 0x4ed   : > { %4134 = vst [vmem:[%s5837_s30 + $0x8] sm:$0x3] %v2266_v52  ;;  %2536 = vmatmul.mubr.f32.vlgmr.msra.gmra.mrb[18].mxu0 %v6497_v34  ;;  %2607 = vmatmul.mubr.f32.vlgmr.msra.gmra.mrb[18].mxu1 %v6497_v34  ;;  %v7141_v52 = vld [vmem:[#allocation36_spill] sm:$0xff] }
 0x4ee   : > { %4819 = vmatpush1.bf16.msra.mxu0 %v5847_v26  ;;  %4851 = vmatpush1.bf16.msra.mxu1 %v5850_v31 }
 0x4ef   : > { %4821 = vmatprep.subr.bf16.mxu0 %v5854_v35  ;;  %4853 = vmatprep.subr.bf16.mxu1 %v5856_v36 }
 0x4f0   : > { %2750 = vmatprep.mubr.f32.mxu0 %v7033_v3  ;;  %2821 = vmatprep.mubr.f32.mxu1 %v7033_v3 }
 0x4f2   : > { %4823 = vmatpush1.bf16.msra.mxu0 %v7121_v57  ;;  %4855 = vmatpush1.bf16.msra.mxu1 %v7122_v18 }
 0x4f3   : > { %4825 = vmatprep.subr.bf16.mxu0 %v7123_v33  ;;  %4857 = vmatprep.subr.bf16.mxu1 %v7124_v17 }
 0x4f6   : > { %4827 = vmatpush1.bf16.msra.mxu0 %v7125_v53  ;;  %4859 = vmatpush1.bf16.msra.mxu1 %v7126_v62 }
 0x4f7   : > { %4829 = vmatprep.subr.bf16.mxu0 %v7127_v6  ;;  %4861 = vmatprep.subr.bf16.mxu1 %v7128_v7 }
 0x4fa   : > { %4831 = vmatpush1.bf16.msra.mxu0 %v7129_v47  ;;  %4863 = vmatpush1.bf16.msra.mxu1 %v7130_v54 }
 0x4fb   : > { %4833 = vmatprep.subr.bf16.mxu0 %v7131_v48  ;;  %4865 = vmatprep.subr.bf16.mxu1 %v7132_v11  ;;  %v7142_v11 = vld [vmem:[#allocation37_spill] sm:$0xff]  ;;  %v7147_v48 = vld [vmem:[#allocation42_spill] sm:$0xff] }
 0x4fe   : > { %4835 = vmatpush1.bf16.msra.mxu0 %v7133_v27  ;;  %4867 = vmatpush1.bf16.msra.mxu1 %v7134_v45  ;;  %v7143_v27 = vld [vmem:[#allocation38_spill] sm:$0xff]  ;;  %v7144_v45 = vld [vmem:[#allocation39_spill] sm:$0xff] }
 0x4ff   : > { %4837 = vmatprep.subr.bf16.mxu0 %v7135_v44  ;;  %4869 = vmatprep.subr.bf16.mxu1 %v7136_v12  ;;  %v7145_v44 = vld [vmem:[#allocation40_spill] sm:$0xff]  ;;  %v7146_v12 = vld [vmem:[#allocation41_spill] sm:$0xff] }
 0x502   : > { %4839 = vmatpush1.bf16.msra.mxu0 %v7137_v21  ;;  %4871 = vmatpush1.bf16.msra.mxu1 %v7138_v49  ;;  %v7148_v21 = vld [vmem:[#allocation43_spill] sm:$0xff] }
 0x503   : > { %4841 = vmatprep.subr.bf16.mxu0 %v7139_v38  ;;  %4873 = vmatprep.subr.bf16.mxu1 %v7140_v58  ;;  %v6541_v58 = vld [vmem:[%s5807_s9 + $0x10] sm:$0xff]  }
 0x504   : > { %7149 = vst [vmem:[#allocation45_spill] sm:$0xff] %v6541_v58 }
 0x506   : > { %4843 = vmatpush1.bf16.msra.mxu0 %v7141_v52  ;;  %4875 = vmatpush1.bf16.msra.mxu1 %v7142_v11 }
 0x507   : > { %4845 = vmatprep.subr.bf16.mxu0 %v7143_v27  ;;  %4877 = vmatprep.subr.bf16.mxu1 %v7144_v45  ;;  %v2271_v45 = vunpack.c.l.bf16 %v6541_v58  ;;  %v2668_v58 = vstv %s2667_s17 }
 0x508   : > { %vm2669_vm8 = vcmp.lt.s32.totalorder %v2668_v58, %v6098_v4 }
 0x50a   : > { %4847 = vmatpush1.bf16.msra.mxu0 %v7145_v44  ;;  %4879 = vmatpush1.bf16.msra.mxu1 %v7146_v12 }
 0x50b   : > { %4881 = vmatprep.subr.bf16.mxu0 %v7147_v48  ;;  %4913 = vmatprep.subr.bf16.mxu1 %v7148_v21 }
 0x5a0   : > { %v2338_v49 = vpop.f32.mrb[16].mxu0  ;;  %v2409_v38 = vpop.f32.mrb[16].mxu1 }
 0x5a1   : > { %v2340_v54 = vpop.f32.mrb[17].mxu0  ;;  %v2411_v52 = vpop.f32.mrb[17].mxu1 }
 0x5a2   : > { %v2418_v47 = vcombine.low %v2338_v49, %v2340_v54  ;;  %v2419_v11 = vcombine.low %v2409_v38, %v2411_v52 }
 0x5a4   : > { %v2426_v27 = vrot.slane %v2418_v47, %v6084_v50  ;;  %v2433_v44 = vrot.slane %v2419_v11, %v6084_v50 }
 0x5a6   : > { %v2434_v7 = vcombine.low %v2426_v27, %v2433_v44 }
 0x5a8   : > { %v2436_v12 = vadd.f32 %v2434_v7, %v2271_v45  ;;  %v6547_v45 = vld [vmem:[%s5809_s10 + $0x8] sm:$0xff]  }
 0x5aa   : > { %v4136_v6 = vmul.f32 -1.442695, %v2436_v12  ;;  %v2444_v48 = vrot.slane %v2436_v12, 2  ;;  %v2455_v62 = vrot.slane %v2436_v12, 6  ;;  %v2452_v33 = vrot.slane %v2436_v12, 4 }
 0x5ac   : > { %5396 = vpow2.f32 %v4136_v6  ;;  %v4137_v21 = vmul.f32 -1.442695, %v2444_v48  ;;  %v4138_v53 = vmul.f32 -1.442695, %v2455_v62 }
 0x5ae   : > { %5398 = vpow2.f32 %v4137_v21 }
 0x5af   : > { %5400 = vpow2.f32 %v4138_v53  ;;  %v2470_v53 = vunpack.c.h.bf16 %v6547_v45 }
 0x5b6   : > { %v5397_v17 = vpop.eup %5396 }
 0x5b7   : > { %v2440_v54 = vadd.f32 1.0, %v5397_v17 }
 0x5b8   : > { %v5399_v49 = vpop.eup %5398 }
 0x5b9   : > { %5402 = vrcp.f32 %v2440_v54  ;;  %v2449_v47 = vadd.f32 1.0, %v5399_v49  ;;  %v5401_v48 = vpop.eup %5400 }
 0x5ba   : > { %5404 = vtanh.f32 %v2452_v33  ;;  %v2460_v52 = vadd.f32 1.0, %v5401_v48 }
 0x5bb   : > { %5406 = vrcp.f32 %v2449_v47 }
 0x5bc   : > { %5408 = vrcp.f32 %v2460_v52 }
 0x5c0   : > { %v2537_v11 = vpop.f32.mrb[18].mxu0  ;;  %v2608_v7 = vpop.f32.mrb[18].mxu1 }
 0x5c1   : > { %v2539_v27 = vpop.f32.mrb[19].mxu0  ;;  %v2610_v6 = vpop.f32.mrb[19].mxu1 }
 0x5c2   : > { %v2617_v44 = vcombine.low %v2537_v11, %v2539_v27  ;;  %v2618_v21 = vcombine.low %v2608_v7, %v2610_v6 }
 0x5c3   : > { %v5403_v62 = vpop.eup %5402 }
 0x5c4   : > { %v5405_v38 = vpop.eup %5404  ;;  %v2625_v17 = vrot.slane %v2617_v44, %v6084_v50  ;;  %v2632_v12 = vrot.slane %v2618_v21, %v6084_v50 }
 0x5c5   : > { %v5407_v33 = vpop.eup %5406  ;;  %v2464_v47 = vmul.f32 %v5405_v38, %v5403_v62 }
 0x5c6   : > { %v2633_v54 = vcombine.low %v2625_v17, %v2632_v12  ;;  %v2463_v49 = vmul.f32 %v5407_v33, %v6442_v5  ;;  %v5409_v44 = vpop.eup %5408 }
 0x5c8   : > { %v2635_v18 = vadd.f32 %v2633_v54, %v2470_v53  ;;  %v2465_v57 = vadd.f32 %v2464_v47, %v2463_v49 }
 0x5ca   : > { %v4140_v11 = vmul.f32 -1.442695, %v2635_v18  ;;  %v2643_v7 = vrot.slane %v2635_v18, 2  ;;  %5410 = vtanh.f32 %v2465_v57  ;;  %v6558_v27 = vsel %vm2669_vm8, %v2465_v57, %v6442_v5 }
 0x5cb   : > { %v2654_v48 = vrot.slane %v2635_v18, 6  ;;  %v2651_v17 = vrot.slane %v2635_v18, 4 }
 0x5cc   : > { %5412 = vpow2.f32 %v4140_v11  ;;  %v4141_v6 = vmul.f32 -1.442695, %v2643_v7  ;;  %v2671_v7 = vstv %s2670_s8 }
 0x5cd   : > { %v4142_v21 = vmul.f32 -1.442695, %v2654_v48  ;;  %vm2672_vm9 = vcmp.lt.s32.totalorder %v2671_v7, %v6098_v4  ;;  %v7164_v7 = vld [vmem:[#allocation30_spill] sm:$0xff] }
 0x5ce   : > { %5414 = vpow2.f32 %v4141_v6 }
 0x5cf   : > { %5416 = vpow2.f32 %v4142_v21 }
 0x5d4   : > { %v5411_v62 = vpop.eup %5410 }
 0x5d5   : > { %v2467_v53 = vmul.f32 %v5411_v62, %v5409_v44 }
 0x5d6   : > { %v5413_v38 = vpop.eup %5412 }
 0x5d7   : > { %v2639_v12 = vadd.f32 1.0, %v5413_v38  ;;  %v6563_v52 = vsel %vm2669_vm8, %v2467_v53, %v6447_v55  ;;  %v2677_v5 = vsel %vm2669_vm8, %v2467_v53, 0.0  ;;  %v7152_v53 = vld [vmem:[#allocation18_spill] sm:$0xff] }
 0x5d8   : > { %v5415_v33 = vpop.eup %5414  ;;  %4143 = vst [vmem:[%s5832_s20 + $0x8] sm:$0x3] %v2677_v5  ;;  %2751 = vmatmul.mubr.f32.vlgmr.msra.gmra.mrb[20].mxu0 %v6563_v52  ;;  %2822 = vmatmul.mubr.f32.vlgmr.msra.gmra.mrb[20].mxu1 %v6563_v52  ;;  %v7155_v5 = vld [vmem:[#allocation21_spill] sm:$0xff] }
 0x5d9   : > { %5418 = vrcp.f32 %v2639_v12  ;;  %v2648_v57 = vadd.f32 1.0, %v5415_v33  ;;  %4883 = vmatpush1.bf16.msra.mxu0 %v5944_v29  ;;  %4915 = vmatpush1.bf16.msra.mxu1 %v5948_v30  ;;  %v5417_v55 = vpop.eup %5416  ;;  %v7153_v12 = vld [vmem:[#allocation19_spill] sm:$0xff]  ;;  %v7154_v33 = vld [vmem:[#allocation20_spill] sm:$0xff] }
 0x5da   : > { %5420 = vtanh.f32 %v2651_v17  ;;  %4885 = vmatprep.subr.bf16.mxu0 %v5950_v32  ;;  %4917 = vmatprep.subr.bf16.mxu1 %v5953_v42  ;;  %v2659_v49 = vadd.f32 1.0, %v5417_v55  ;;  %v7151_v17 = vld [vmem:[#allocation17_spill] sm:$0xff]  ;;  %v7157_v55 = vld [vmem:[#allocation23_spill] sm:$0xff] }
 0x5db   : > { %5422 = vrcp.f32 %v2648_v57  ;;  %2949 = vmatprep.mubr.f32.mxu0 %v7033_v3  ;;  %3020 = vmatprep.mubr.f32.mxu1 %v7033_v3  ;;  %v7156_v57 = vld [vmem:[#allocation22_spill] sm:$0xff] }
 0x5dc   : > { %5424 = vrcp.f32 %v2659_v49  ;;  %v7161_v49 = vld [vmem:[#allocation27_spill] sm:$0xff] }
 0x5dd   : > { %4887 = vmatpush1.bf16.msra.mxu0 %v5958_v56  ;;  %4919 = vmatpush1.bf16.msra.mxu1 %v5962_v59 }
 0x5de   : > { %4889 = vmatprep.subr.bf16.mxu0 %v5964_v60  ;;  %4921 = vmatprep.subr.bf16.mxu1 %v5967_v2 }
 0x5e1   : > { %4891 = vmatpush1.bf16.msra.mxu0 %v7037_v28  ;;  %4923 = vmatpush1.bf16.msra.mxu1 %v7038_v9 }
 0x5e2   : > { %4893 = vmatprep.subr.bf16.mxu0 %v7063_v23  ;;  %4925 = vmatprep.subr.bf16.mxu1 %v7064_v43 }
 0x5e3   : > { %v5419_v18 = vpop.eup %5418 }
 0x5e4   : > { %v5421_v58 = vpop.eup %5420 }
 0x5e5   : > { %v5423_v54 = vpop.eup %5422  ;;  %4895 = vmatpush1.bf16.msra.mxu0 %v7041_v0  ;;  %4927 = vmatpush1.bf16.msra.mxu1 %v7042_v37  ;;  %v2663_v11 = vmul.f32 %v5421_v58, %v5419_v18  ;;  %v7158_v18 = vld [vmem:[#allocation24_spill] sm:$0xff]  ;;  %v7159_v58 = vld [vmem:[#allocation25_spill] sm:$0xff] }
 0x5e6   : > { %v2662_v47 = vmul.f32 %v5423_v54, %v6480_v40  ;;  %4897 = vmatprep.subr.bf16.mxu0 %v7043_v61  ;;  %4929 = vmatprep.subr.bf16.mxu1 %v7044_v19  ;;  %v5425_v44 = vpop.eup %5424  ;;  %v7160_v54 = vld [vmem:[#allocation26_spill] sm:$0xff] }
 0x5e8   : > { %v2664_v6 = vadd.f32 %v2663_v11, %v2662_v47  ;;  %v7162_v47 = vld [vmem:[#allocation28_spill] sm:$0xff]  ;;  %v7163_v11 = vld [vmem:[#allocation29_spill] sm:$0xff] }
 0x5e9   : > { %4899 = vmatpush1.bf16.msra.mxu0 %v7045_v51  ;;  %4931 = vmatpush1.bf16.msra.mxu1 %v7046_v14 }
 0x5ea   : > { %5426 = vtanh.f32 %v2664_v6  ;;  %v6596_v48 = vsel %vm2672_vm9, %v2664_v6, %v6480_v40  ;;  %4901 = vmatprep.subr.bf16.mxu0 %v6005_v46  ;;  %4933 = vmatprep.subr.bf16.mxu1 %v7047_v8  ;;  %v7165_v6 = vld [vmem:[#allocation31_spill] sm:$0xff] }
 0x5ed   : > { %4903 = vmatpush1.bf16.msra.mxu0 %v6011_v1  ;;  %4935 = vmatpush1.bf16.msra.mxu1 %v6015_v24 }
 0x5ee   : > { %4905 = vmatprep.subr.bf16.mxu0 %v6017_v16  ;;  %4937 = vmatprep.subr.bf16.mxu1 %v6020_v63 }
 0x5f1   : > { %4907 = vmatpush1.bf16.msra.mxu0 %v6023_v39  ;;  %4939 = vmatpush1.bf16.msra.mxu1 %v6027_v22 }
 0x5f2   : > { %4909 = vmatprep.subr.bf16.mxu0 %v6029_v41  ;;  %4941 = vmatprep.subr.bf16.mxu1 %v6032_v10 }
 0x5f4   : > { %v5427_v40 = vpop.eup %5426 }
 0x5f5   : > { %v2666_v21 = vmul.f32 %v5427_v40, %v5425_v44  ;;  %4911 = vmatpush1.bf16.msra.mxu0 %v6035_v13  ;;  %4943 = vmatpush1.bf16.msra.mxu1 %v6039_v15  ;;  %v7166_v44 = vld [vmem:[#allocation32_spill] sm:$0xff]  ;;  %v7167_v40 = vld [vmem:[#allocation33_spill] sm:$0xff] }
 0x5f6   : > { %4945 = vmatprep.subr.bf16.mxu0 %v5841_v20  ;;  %4977 = vmatprep.subr.bf16.mxu1 %v5845_v25 }
 0x5f7   : > { %v6613_v62 = vsel %vm2672_vm9, %v2666_v21, %v6497_v34  ;;  %v2680_v38 = vsel %vm2672_vm9, %v2666_v21, 0.0  ;;  %v7150_v34 = vld [vmem:[#allocation16_spill] sm:$0xff]  ;;  %v7168_v21 = vld [vmem:[#allocation34_spill] sm:$0xff] }
 0x5f8   : > { %4144 = vst [vmem:[%s5837_s30 + $0x6] sm:$0x3] %v2680_v38  ;;  %2950 = vmatmul.mubr.f32.vlgmr.msra.gmra.mrb[22].mxu0 %v6613_v62  ;;  %3021 = vmatmul.mubr.f32.vlgmr.msra.gmra.mrb[22].mxu1 %v6613_v62  ;;  %v7169_v38 = vld [vmem:[#allocation35_spill] sm:$0xff] }
 0x5f9   : > { %4947 = vmatpush1.bf16.msra.mxu0 %v5847_v26  ;;  %4979 = vmatpush1.bf16.msra.mxu1 %v5850_v31 }
 0x5fa   : > { %4949 = vmatprep.subr.bf16.mxu0 %v5854_v35  ;;  %4981 = vmatprep.subr.bf16.mxu1 %v5856_v36 }
 0x5fb   : > { %3164 = vmatprep.mubr.f32.mxu0 %v7033_v3  ;;  %3235 = vmatprep.mubr.f32.mxu1 %v7033_v3 }
 0x5fd   : > { %4951 = vmatpush1.bf16.msra.mxu0 %v7150_v34  ;;  %4983 = vmatpush1.bf16.msra.mxu1 %v7151_v17 }
 0x5fe   : > { %4953 = vmatprep.subr.bf16.mxu0 %v7152_v53  ;;  %4985 = vmatprep.subr.bf16.mxu1 %v7153_v12 }
 0x601   : > { %4955 = vmatpush1.bf16.msra.mxu0 %v7154_v33  ;;  %4987 = vmatpush1.bf16.msra.mxu1 %v7155_v5 }
 0x602   : > { %4957 = vmatprep.subr.bf16.mxu0 %v7156_v57  ;;  %4989 = vmatprep.subr.bf16.mxu1 %v7157_v55  ;;  %v7178_v57 = vld [vmem:[#allocation45_spill] sm:$0xff] }
 0x605   : > { %4959 = vmatpush1.bf16.msra.mxu0 %v7158_v18  ;;  %4991 = vmatpush1.bf16.msra.mxu1 %v7159_v58  ;;  %v7170_v58 = vld [vmem:[#allocation36_spill] sm:$0xff] }
 0x606   : > { %4961 = vmatprep.subr.bf16.mxu0 %v7160_v54  ;;  %4993 = vmatprep.subr.bf16.mxu1 %v7161_v49  ;;  %v7171_v54 = vld [vmem:[#allocation37_spill] sm:$0xff]  ;;  %v7172_v49 = vld [vmem:[#allocation38_spill] sm:$0xff] }
 0x609   : > { %4963 = vmatpush1.bf16.msra.mxu0 %v7162_v47  ;;  %4995 = vmatpush1.bf16.msra.mxu1 %v7163_v11  ;;  %v7173_v47 = vld [vmem:[#allocation39_spill] sm:$0xff]  ;;  %v7174_v11 = vld [vmem:[#allocation40_spill] sm:$0xff] }
 0x60a   : > { %4965 = vmatprep.subr.bf16.mxu0 %v7164_v7  ;;  %4997 = vmatprep.subr.bf16.mxu1 %v7165_v6  ;;  %v7175_v7 = vld [vmem:[#allocation41_spill] sm:$0xff]  ;;  %v7176_v6 = vld [vmem:[#allocation42_spill] sm:$0xff] }
 0x60d   : > { %4967 = vmatpush1.bf16.msra.mxu0 %v7166_v44  ;;  %4999 = vmatpush1.bf16.msra.mxu1 %v7167_v40  ;;  %v7177_v44 = vld [vmem:[#allocation43_spill] sm:$0xff] }
 0x60e   : > { %4969 = vmatprep.subr.bf16.mxu0 %v7168_v21  ;;  %5001 = vmatprep.subr.bf16.mxu1 %v7169_v38 }
 0x611   : > { %4971 = vmatpush1.bf16.msra.mxu0 %v7170_v58  ;;  %5003 = vmatpush1.bf16.msra.mxu1 %v7171_v54 }
 0x612   : > { %4973 = vmatprep.subr.bf16.mxu0 %v7172_v49  ;;  %5005 = vmatprep.subr.bf16.mxu1 %v7173_v47  ;;  %v2685_v49 = vunpack.c.h.bf16 %v7178_v57 }
 0x615   : > { %4975 = vmatpush1.bf16.msra.mxu0 %v7174_v11  ;;  %5007 = vmatpush1.bf16.msra.mxu1 %v7175_v7 }
 0x616   : > { %5009 = vmatprep.subr.bf16.mxu0 %v7176_v6  ;;  %5041 = vmatprep.subr.bf16.mxu1 %v7177_v44 }
 0x6ab   : > { %v2752_v40 = vpop.f32.mrb[20].mxu0  ;;  %v2823_v21 = vpop.f32.mrb[20].mxu1 }
 0x6ac   : > { %v2754_v18 = vpop.f32.mrb[21].mxu0  ;;  %v2825_v38 = vpop.f32.mrb[21].mxu1 }
 0x6ad   : > { %v2832_v55 = vcombine.low %v2752_v40, %v2754_v18  ;;  %v2833_v58 = vcombine.low %v2823_v21, %v2825_v38  ;;  %v3082_v38 = vstv %s3081_s19 }
 0x6ae   : > { %vm3083_vm10 = vcmp.lt.s32.totalorder %v3082_v38, %v6098_v4 }
 0x6af   : > { %v2840_v54 = vrot.slane %v2832_v55, %v6084_v50  ;;  %v2847_v47 = vrot.slane %v2833_v58, %v6084_v50 }
 0x6b1   : > { %v2848_v5 = vcombine.low %v2840_v54, %v2847_v47 }
 0x6b3   : > { %v2850_v11 = vadd.f32 %v2848_v5, %v2685_v49 }
 0x6b5   : > { %v4146_v33 = vmul.f32 -1.442695, %v2850_v11  ;;  %v2858_v7 = vrot.slane %v2850_v11, 2  ;;  %v2869_v44 = vrot.slane %v2850_v11, 6  ;;  %v2866_v17 = vrot.slane %v2850_v11, 4 }
 0x6b7   : > { %5428 = vpow2.f32 %v4146_v33  ;;  %v4147_v6 = vmul.f32 -1.442695, %v2858_v7  ;;  %v4148_v12 = vmul.f32 -1.442695, %v2869_v44 }
 0x6b9   : > { %5430 = vpow2.f32 %v4147_v6 }
 0x6ba   : > { %5432 = vpow2.f32 %v4148_v12 }
 0x6c1   : > { %v5429_v53 = vpop.eup %5428 }
 0x6c2   : > { %v2854_v34 = vadd.f32 1.0, %v5429_v53  ;;  %v2884_v53 = vunpack.c.l.bf16 %v6547_v45 }
 0x6c3   : > { %v5431_v18 = vpop.eup %5430 }
 0x6c4   : > { %5434 = vrcp.f32 %v2854_v34  ;;  %v2863_v55 = vadd.f32 1.0, %v5431_v18  ;;  %v5433_v49 = vpop.eup %5432 }
 0x6c5   : > { %5436 = vtanh.f32 %v2866_v17  ;;  %v2874_v11 = vadd.f32 1.0, %v5433_v49 }
 0x6c6   : > { %5438 = vrcp.f32 %v2863_v55 }
 0x6c7   : > { %5440 = vrcp.f32 %v2874_v11 }
 0x6cb   : > { %v2951_v57 = vpop.f32.mrb[22].mxu0  ;;  %v3022_v58 = vpop.f32.mrb[22].mxu1 }
 0x6cc   : > { %v2953_v5 = vpop.f32.mrb[23].mxu0  ;;  %v3024_v54 = vpop.f32.mrb[23].mxu1 }
 0x6cd   : > { %v3031_v33 = vcombine.low %v2951_v57, %v2953_v5  ;;  %v3032_v47 = vcombine.low %v3022_v58, %v3024_v54 }
 0x6ce   : > { %v5435_v7 = vpop.eup %5434 }
 0x6cf   : > { %v5437_v6 = vpop.eup %5436  ;;  %v3039_v44 = vrot.slane %v3031_v33, %v6084_v50  ;;  %v3046_v12 = vrot.slane %v3032_v47, %v6084_v50 }
 0x6d0   : > { %v5439_v34 = vpop.eup %5438  ;;  %v2878_v21 = vmul.f32 %v5437_v6, %v5435_v7 }
 0x6d1   : > { %v3047_v17 = vcombine.low %v3039_v44, %v3046_v12  ;;  %v2877_v40 = vmul.f32 %v5439_v34, %v6558_v27  ;;  %v5441_v49 = vpop.eup %5440 }
 0x6d3   : > { %v3049_v18 = vadd.f32 %v3047_v17, %v2884_v53  ;;  %v2879_v55 = vadd.f32 %v2878_v21, %v2877_v40 }
 0x6d5   : > { %v4150_v57 = vmul.f32 -1.442695, %v3049_v18  ;;  %v3057_v58 = vrot.slane %v3049_v18, 2  ;;  %5442 = vtanh.f32 %v2879_v55  ;;  %v6668_v45 = vsel %vm3083_vm10, %v2879_v55, %v6558_v27 }
 0x6d6   : > { %v3068_v54 = vrot.slane %v3049_v18, 6  ;;  %v3065_v6 = vrot.slane %v3049_v18, 4 }
 0x6d7   : > { %5444 = vpow2.f32 %v4150_v57  ;;  %v4151_v5 = vmul.f32 -1.442695, %v3057_v58  ;;  %v3085_v57 = vstv %s3084_s28 }
 0x6d8   : > { %v4152_v33 = vmul.f32 -1.442695, %v3068_v54  ;;  %vm3086_vm11 = vcmp.lt.s32.totalorder %v3085_v57, %v6098_v4  ;;  %v7200_v57 = vld [vmem:[#allocation37_spill] sm:$0xff] }
 0x6d9   : > { %5446 = vpow2.f32 %v4151_v5 }
 0x6da   : > { %5448 = vpow2.f32 %v4152_v33 }
 0x6df   : > { %v5443_v47 = vpop.eup %5442 }
 0x6e0   : > { %v2881_v44 = vmul.f32 %v5443_v47, %v5441_v49 }
 0x6e1   : > { %v5445_v7 = vpop.eup %5444 }
 0x6e2   : > { %v3053_v53 = vadd.f32 1.0, %v5445_v7  ;;  %v6673_v34 = vsel %vm3083_vm10, %v2881_v44, %v6563_v52  ;;  %v3091_v27 = vsel %vm3083_vm10, %v2881_v44, 0.0  ;;  %v7182_v7 = vld [vmem:[#allocation19_spill] sm:$0xff]  ;;  %v7188_v44 = vld [vmem:[#allocation25_spill] sm:$0xff] }
 0x6e3   : > { %v5447_v12 = vpop.eup %5446  ;;  %4153 = vst [vmem:[%s5832_s20 + $0xa] sm:$0x3] %v3091_v27  ;;  %3165 = vmatmul.mubr.f32.vlgmr.msra.gmra.mrb[24].mxu0 %v6673_v34  ;;  %3236 = vmatmul.mubr.f32.vlgmr.msra.gmra.mrb[24].mxu1 %v6673_v34  ;;  %v7191_v27 = vld [vmem:[#allocation28_spill] sm:$0xff] }
 0x6e4   : > { %5450 = vrcp.f32 %v3053_v53  ;;  %v3062_v11 = vadd.f32 1.0, %v5447_v12  ;;  %5011 = vmatpush1.bf16.msra.mxu0 %v5944_v29  ;;  %5043 = vmatpush1.bf16.msra.mxu1 %v5948_v30  ;;  %v5449_v52 = vpop.eup %5448  ;;  %v7189_v53 = vld [vmem:[#allocation26_spill] sm:$0xff]  ;;  %v7190_v12 = vld [vmem:[#allocation27_spill] sm:$0xff] }
 0x6e5   : > { %5452 = vtanh.f32 %v3065_v6  ;;  %5013 = vmatprep.subr.bf16.mxu0 %v5950_v32  ;;  %5045 = vmatprep.subr.bf16.mxu1 %v5953_v42  ;;  %v3073_v38 = vadd.f32 1.0, %v5449_v52  ;;  %v7183_v6 = vld [vmem:[#allocation20_spill] sm:$0xff]  ;;  %v7193_v52 = vld [vmem:[#allocation30_spill] sm:$0xff] }
 0x6e6   : > { %5454 = vrcp.f32 %v3062_v11  ;;  %3363 = vmatprep.mubr.f32.mxu0 %v7033_v3  ;;  %3434 = vmatprep.mubr.f32.mxu1 %v7033_v3  ;;  %v7192_v11 = vld [vmem:[#allocation29_spill] sm:$0xff] }
 0x6e7   : > { %5456 = vrcp.f32 %v3073_v38  ;;  %v7197_v38 = vld [vmem:[#allocation34_spill] sm:$0xff] }
 0x6e8   : > { %5015 = vmatpush1.bf16.msra.mxu0 %v5958_v56  ;;  %5047 = vmatpush1.bf16.msra.mxu1 %v5962_v59 }
 0x6e9   : > { %5017 = vmatprep.subr.bf16.mxu0 %v5964_v60  ;;  %5049 = vmatprep.subr.bf16.mxu1 %v5967_v2 }
 0x6ec   : > { %5019 = vmatpush1.bf16.msra.mxu0 %v7037_v28  ;;  %5051 = vmatpush1.bf16.msra.mxu1 %v7038_v9 }
 0x6ed   : > { %5021 = vmatprep.subr.bf16.mxu0 %v7063_v23  ;;  %5053 = vmatprep.subr.bf16.mxu1 %v7064_v43 }
 0x6ee   : > { %v5451_v17 = vpop.eup %5450 }
 0x6ef   : > { %v5453_v40 = vpop.eup %5452 }
 0x6f0   : > { %v5455_v21 = vpop.eup %5454  ;;  %5023 = vmatpush1.bf16.msra.mxu0 %v7041_v0  ;;  %5055 = vmatpush1.bf16.msra.mxu1 %v7042_v37  ;;  %v3077_v55 = vmul.f32 %v5453_v40, %v5451_v17  ;;  %v7194_v17 = vld [vmem:[#allocation31_spill] sm:$0xff]  ;;  %v7195_v40 = vld [vmem:[#allocation32_spill] sm:$0xff] }
 0x6f1   : > { %v3076_v18 = vmul.f32 %v5455_v21, %v6596_v48  ;;  %5025 = vmatprep.subr.bf16.mxu0 %v7043_v61  ;;  %5057 = vmatprep.subr.bf16.mxu1 %v7044_v19  ;;  %v5457_v54 = vpop.eup %5456  ;;  %v7196_v21 = vld [vmem:[#allocation33_spill] sm:$0xff] }
 0x6f3   : > { %v3078_v58 = vadd.f32 %v3077_v55, %v3076_v18  ;;  %v7198_v18 = vld [vmem:[#allocation35_spill] sm:$0xff]  ;;  %v7199_v55 = vld [vmem:[#allocation36_spill] sm:$0xff] }
 0x6f4   : > { %5027 = vmatpush1.bf16.msra.mxu0 %v7045_v51  ;;  %5059 = vmatpush1.bf16.msra.mxu1 %v7046_v14 }
 0x6f5   : > { %5458 = vtanh.f32 %v3078_v58  ;;  %v6706_v5 = vsel %vm3086_vm11, %v3078_v58, %v6596_v48  ;;  %5029 = vmatprep.subr.bf16.mxu0 %v6005_v46  ;;  %5061 = vmatprep.subr.bf16.mxu1 %v7047_v8  ;;  %v7201_v58 = vld [vmem:[#allocation38_spill] sm:$0xff] }
 0x6f8   : > { %5031 = vmatpush1.bf16.msra.mxu0 %v6011_v1  ;;  %5063 = vmatpush1.bf16.msra.mxu1 %v6015_v24 }
 0x6f9   : > { %5033 = vmatprep.subr.bf16.mxu0 %v6017_v16  ;;  %5065 = vmatprep.subr.bf16.mxu1 %v6020_v63 }
 0x6fc   : > { %5035 = vmatpush1.bf16.msra.mxu0 %v6023_v39  ;;  %5067 = vmatpush1.bf16.msra.mxu1 %v6027_v22 }
 0x6fd   : > { %5037 = vmatprep.subr.bf16.mxu0 %v6029_v41  ;;  %5069 = vmatprep.subr.bf16.mxu1 %v6032_v10 }
 0x6ff   : > { %v5459_v48 = vpop.eup %5458 }
 0x700   : > { %v3080_v49 = vmul.f32 %v5459_v48, %v5457_v54  ;;  %5039 = vmatpush1.bf16.msra.mxu0 %v6035_v13  ;;  %5071 = vmatpush1.bf16.msra.mxu1 %v6039_v15  ;;  %v7202_v54 = vld [vmem:[#allocation39_spill] sm:$0xff]  ;;  %v7203_v48 = vld [vmem:[#allocation40_spill] sm:$0xff] }
 0x701   : > { %5073 = vmatprep.subr.bf16.mxu0 %v5841_v20  ;;  %5105 = vmatprep.subr.bf16.mxu1 %v5845_v25  ;;  %v7179_v20 = vld [vmem:[#allocation16_spill] sm:$0xff]  ;;  %v7180_v25 = vld [vmem:[#allocation17_spill] sm:$0xff] }
 0x702   : > { %v6723_v33 = vsel %vm3086_vm11, %v3080_v49, %v6613_v62  ;;  %v3094_v47 = vsel %vm3086_vm11, %v3080_v49, 0.0  ;;  %v7181_v62 = vld [vmem:[#allocation18_spill] sm:$0xff]  ;;  %v7204_v49 = vld [vmem:[#allocation41_spill] sm:$0xff] }
 0x703   : > { %4154 = vst [vmem:[%s5837_s30 + $0x4] sm:$0x3] %v3094_v47  ;;  %3364 = vmatmul.mubr.f32.vlgmr.msra.gmra.mrb[26].mxu0 %v6723_v33  ;;  %3435 = vmatmul.mubr.f32.vlgmr.msra.gmra.mrb[26].mxu1 %v6723_v33  ;;  %v7205_v47 = vld [vmem:[#allocation42_spill] sm:$0xff] }
 0x704   : > { %5075 = vmatpush1.bf16.msra.mxu0 %v5847_v26  ;;  %5107 = vmatpush1.bf16.msra.mxu1 %v5850_v31  ;;  %v7184_v26 = vld [vmem:[#allocation21_spill] sm:$0xff]  ;;  %v7185_v31 = vld [vmem:[#allocation22_spill] sm:$0xff] }
 0x705   : > { %5077 = vmatprep.subr.bf16.mxu0 %v5854_v35  ;;  %5109 = vmatprep.subr.bf16.mxu1 %v5856_v36  ;;  %v7186_v35 = vld [vmem:[#allocation23_spill] sm:$0xff]  ;;  %v7187_v36 = vld [vmem:[#allocation24_spill] sm:$0xff] }
 0x706   : > { %3578 = vmatprep.mubr.f32.mxu0 %v7033_v3  ;;  %3649 = vmatprep.mubr.f32.mxu1 %v7033_v3 }
 0x708   : > { %5079 = vmatpush1.bf16.msra.mxu0 %v7179_v20  ;;  %5111 = vmatpush1.bf16.msra.mxu1 %v7180_v25  ;;  %v7206_v20 = vld [vmem:[#allocation43_spill] sm:$0xff] }
 0x709   : > { %5081 = vmatprep.subr.bf16.mxu0 %v7181_v62  ;;  %5113 = vmatprep.subr.bf16.mxu1 %v7182_v7 }
 0x70c   : > { %5083 = vmatpush1.bf16.msra.mxu0 %v7183_v6  ;;  %5115 = vmatpush1.bf16.msra.mxu1 %v7184_v26  ;;  %v6767_v6 = vld [vmem:[%s5807_s9 + $0x18] sm:$0xff]   ;;  %s3495_s9 = sadd.s32 6, %s5820_s21 }
 0x70d   : > { %5085 = vmatprep.subr.bf16.mxu0 %v7185_v31  ;;  %5117 = vmatprep.subr.bf16.mxu1 %v7186_v35 }
 0x710   : > { %5087 = vmatpush1.bf16.msra.mxu0 %v7187_v36  ;;  %5119 = vmatpush1.bf16.msra.mxu1 %v7188_v44  ;;  %v3099_v44 = vunpack.c.l.bf16 %v6767_v6 }
 0x711   : > { %5089 = vmatprep.subr.bf16.mxu0 %v7189_v53  ;;  %5121 = vmatprep.subr.bf16.mxu1 %v7190_v12 }
 0x714   : > { %5091 = vmatpush1.bf16.msra.mxu0 %v7191_v27  ;;  %5123 = vmatpush1.bf16.msra.mxu1 %v7192_v11 }
 0x715   : > { %5093 = vmatprep.subr.bf16.mxu0 %v7193_v52  ;;  %5125 = vmatprep.subr.bf16.mxu1 %v7194_v17 }
 0x718   : > { %5095 = vmatpush1.bf16.msra.mxu0 %v7195_v40  ;;  %5127 = vmatpush1.bf16.msra.mxu1 %v7196_v21 }
 0x719   : > { %5097 = vmatprep.subr.bf16.mxu0 %v7197_v38  ;;  %5129 = vmatprep.subr.bf16.mxu1 %v7198_v18 }
 0x71c   : > { %5099 = vmatpush1.bf16.msra.mxu0 %v7199_v55  ;;  %5131 = vmatpush1.bf16.msra.mxu1 %v7200_v57 }
 0x71d   : > { %5101 = vmatprep.subr.bf16.mxu0 %v7201_v58  ;;  %5133 = vmatprep.subr.bf16.mxu1 %v7202_v54 }
 0x720   : > { %5103 = vmatpush1.bf16.msra.mxu0 %v7203_v48  ;;  %5135 = vmatpush1.bf16.msra.mxu1 %v7204_v49 }
 0x721   : > { %5137 = vmatprep.subr.bf16.mxu0 %v7205_v47  ;;  %5169 = vmatprep.subr.bf16.mxu1 %v7206_v20  ;;  %v6773_v47 = vld [vmem:[%s5809_s10] sm:$0xff]   ;;  %s3498_s10 = sadd.s32 1, %s5824_s14 }
 0x7b6   : > { %v3166_v25 = vpop.f32.mrb[24].mxu0  ;;  %v3237_v62 = vpop.f32.mrb[24].mxu1 }
 0x7b7   : > { %v3168_v7 = vpop.f32.mrb[25].mxu0  ;;  %v3239_v26 = vpop.f32.mrb[25].mxu1 }
 0x7b8   : > { %v3246_v31 = vcombine.low %v3166_v25, %v3168_v7  ;;  %v3247_v35 = vcombine.low %v3237_v62, %v3239_v26 }
 0x7ba   : > { %v3254_v36 = vrot.slane %v3246_v31, %v6084_v50  ;;  %v3261_v53 = vrot.slane %v3247_v35, %v6084_v50 }
 0x7bc   : > { %v3262_v12 = vcombine.low %v3254_v36, %v3261_v53  ;;  %v3298_v36 = vunpack.c.h.bf16 %v6773_v47 }
 0x7be   : > { %v3264_v27 = vadd.f32 %v3262_v12, %v3099_v44 }
 0x7c0   : > { %v4156_v11 = vmul.f32 -1.442695, %v3264_v27  ;;  %v3272_v52 = vrot.slane %v3264_v27, 2  ;;  %v3283_v40 = vrot.slane %v3264_v27, 6  ;;  %v3280_v18 = vrot.slane %v3264_v27, 4 }
 0x7c2   : > { %5460 = vpow2.f32 %v4156_v11  ;;  %v4157_v17 = vmul.f32 -1.442695, %v3272_v52  ;;  %v4158_v21 = vmul.f32 -1.442695, %v3283_v40 }
 0x7c4   : > { %5462 = vpow2.f32 %v4157_v17  ;;  %v3496_v17 = vstv %s3495_s9 }
 0x7c5   : > { %5464 = vpow2.f32 %v4158_v21  ;;  %vm3497_vm12 = vcmp.lt.s32.totalorder %v3496_v17, %v6098_v4 }
 0x7cc   : > { %v5461_v38 = vpop.eup %5460 }
 0x7cd   : > { %v3268_v55 = vadd.f32 1.0, %v5461_v38 }
 0x7ce   : > { %v5463_v57 = vpop.eup %5462 }
 0x7cf   : > { %5466 = vrcp.f32 %v3268_v55  ;;  %v3277_v58 = vadd.f32 1.0, %v5463_v57  ;;  %v5465_v25 = vpop.eup %5464 }
 0x7d0   : > { %5468 = vtanh.f32 %v3280_v18  ;;  %v3288_v12 = vadd.f32 1.0, %v5465_v25 }
 0x7d1   : > { %5470 = vrcp.f32 %v3277_v58 }
 0x7d2   : > { %5472 = vrcp.f32 %v3288_v12 }
 0x7d6   : > { %v3365_v54 = vpop.f32.mrb[26].mxu0  ;;  %v3436_v48 = vpop.f32.mrb[26].mxu1 }
 0x7d7   : > { %v3367_v49 = vpop.f32.mrb[27].mxu0  ;;  %v3438_v20 = vpop.f32.mrb[27].mxu1 }
 0x7d8   : > { %v3445_v62 = vcombine.low %v3365_v54, %v3367_v49  ;;  %v3446_v7 = vcombine.low %v3436_v48, %v3438_v20 }
 0x7d9   : > { %v5467_v26 = vpop.eup %5466 }
 0x7da   : > { %v5469_v31 = vpop.eup %5468  ;;  %v3453_v35 = vrot.slane %v3445_v62, %v6084_v50  ;;  %v3460_v44 = vrot.slane %v3446_v7, %v6084_v50 }
 0x7db   : > { %v5471_v53 = vpop.eup %5470  ;;  %v3292_v52 = vmul.f32 %v5469_v31, %v5467_v26 }
 0x7dc   : > { %v3461_v27 = vcombine.low %v3453_v35, %v3460_v44  ;;  %v3291_v11 = vmul.f32 %v5471_v53, %v6668_v45  ;;  %v5473_v54 = vpop.eup %5472 }
 0x7de   : > { %v3463_v40 = vadd.f32 %v3461_v27, %v3298_v36  ;;  %v3293_v21 = vadd.f32 %v3292_v52, %v3291_v11 }
 0x7e0   : > { %v4160_v38 = vmul.f32 -1.442695, %v3463_v40  ;;  %v3471_v18 = vrot.slane %v3463_v40, 2  ;;  %5474 = vtanh.f32 %v3293_v21  ;;  %v6784_v55 = vsel %vm3497_vm12, %v3293_v21, %v6668_v45 }
 0x7e1   : > { %v3482_v58 = vrot.slane %v3463_v40, 6  ;;  %v3479_v25 = vrot.slane %v3463_v40, 4 }
 0x7e2   : > { %5476 = vpow2.f32 %v4160_v38  ;;  %v4161_v57 = vmul.f32 -1.442695, %v3471_v18  ;;  %v3711_v18 = vunpack.c.l.bf16 %v6773_v47 }
 0x7e3   : > { %v4162_v48 = vmul.f32 -1.442695, %v3482_v58 }
 0x7e4   : > { %5478 = vpow2.f32 %v4161_v57 }
 0x7e5   : > { %5480 = vpow2.f32 %v4162_v48 }
 0x7ea   : > { %v5475_v49 = vpop.eup %5474 }
 0x7eb   : > { %v3295_v62 = vmul.f32 %v5475_v49, %v5473_v54 }
 0x7ec   : > { %v5477_v20 = vpop.eup %5476 }
 0x7ed   : > { %v3467_v7 = vadd.f32 1.0, %v5477_v20  ;;  %v6789_v31 = vsel %vm3497_vm12, %v3295_v62, %v6673_v34  ;;  %v3505_v45 = vsel %vm3497_vm12, %v3295_v62, 0.0  ;;  %v3909_v20 = vstv %s3908_s18 }
 0x7ee   : > { %v5479_v26 = vpop.eup %5478  ;;  %4163 = vst [vmem:[%s5832_s20 + $0xc] sm:$0x3] %v3505_v45  ;;  %3579 = vmatmul.mubr.f32.vlgmr.msra.gmra.mrb[28].mxu0 %v6789_v31  ;;  %3650 = vmatmul.mubr.f32.vlgmr.msra.gmra.mrb[28].mxu1 %v6789_v31  ;;  %vm3910_vm14 = vcmp.lt.s32.totalorder %v3909_v20, %v6098_v4 }
 0x7ef   : > { %5482 = vrcp.f32 %v3467_v7  ;;  %v3476_v35 = vadd.f32 1.0, %v5479_v26  ;;  %5139 = vmatpush1.bf16.msra.mxu0 %v5944_v29  ;;  %5171 = vmatpush1.bf16.msra.mxu1 %v5948_v30  ;;  %v5481_v29 = vpop.eup %5480 }
 0x7f0   : > { %5484 = vtanh.f32 %v3479_v25  ;;  %5141 = vmatprep.subr.bf16.mxu0 %v5950_v32  ;;  %5173 = vmatprep.subr.bf16.mxu1 %v5953_v42 }
 0x7f1   : > { %5486 = vrcp.f32 %v3476_v35  ;;  %3776 = vmatprep.mubr.f32.mxu0 %v7033_v3  ;;  %3847 = vmatprep.mubr.f32.mxu1 %v7033_v3 }
 0x7f3   : > { %5143 = vmatpush1.bf16.msra.mxu0 %v5958_v56  ;;  %5175 = vmatpush1.bf16.msra.mxu1 %v5962_v59  ;;  %v3487_v56 = vadd.f32 1.0, %v5481_v29 }
 0x7f4   : > { %5145 = vmatprep.subr.bf16.mxu0 %v5964_v60  ;;  %5177 = vmatprep.subr.bf16.mxu1 %v5967_v2  ;;  %v3499_v2 = vstv %s3498_s10 }
 0x7f5   : > { %5488 = vrcp.f32 %v3487_v56  ;;  %vm3500_vm13 = vcmp.lt.s32.totalorder %v3499_v2, %v6098_v4 }
 0x7f7   : > { %5147 = vmatpush1.bf16.msra.mxu0 %v7037_v28  ;;  %5179 = vmatpush1.bf16.msra.mxu1 %v7038_v9 }
 0x7f8   : > { %5149 = vmatprep.subr.bf16.mxu0 %v7063_v23  ;;  %5181 = vmatprep.subr.bf16.mxu1 %v7064_v43 }
 0x7f9   : > { %v5483_v30 = vpop.eup %5482 }
 0x7fa   : > { %v5485_v32 = vpop.eup %5484 }
 0x7fb   : > { %v5487_v42 = vpop.eup %5486  ;;  %5151 = vmatpush1.bf16.msra.mxu0 %v7041_v0  ;;  %5183 = vmatpush1.bf16.msra.mxu1 %v7042_v37  ;;  %v3491_v60 = vmul.f32 %v5485_v32, %v5483_v30 }
 0x7fc   : > { %v3490_v59 = vmul.f32 %v5487_v42, %v6706_v5  ;;  %5153 = vmatprep.subr.bf16.mxu0 %v7043_v61  ;;  %5185 = vmatprep.subr.bf16.mxu1 %v7044_v19 }
 0x7fe   : > { %v3492_v3 = vadd.f32 %v3491_v60, %v3490_v59 }
 0x7ff   : > { %5155 = vmatpush1.bf16.msra.mxu0 %v7045_v51  ;;  %5187 = vmatpush1.bf16.msra.mxu1 %v7046_v14  ;;  %v5489_v9 = vpop.eup %5488 }
 0x800   : > { %5490 = vtanh.f32 %v3492_v3  ;;  %v6822_v28 = vsel %vm3500_vm13, %v3492_v3, %v6706_v5  ;;  %5157 = vmatprep.subr.bf16.mxu0 %v6005_v46  ;;  %5189 = vmatprep.subr.bf16.mxu1 %v7047_v8 }
 0x803   : > { %5159 = vmatpush1.bf16.msra.mxu0 %v6011_v1  ;;  %5191 = vmatpush1.bf16.msra.mxu1 %v6015_v24 }
 0x804   : > { %5161 = vmatprep.subr.bf16.mxu0 %v6017_v16  ;;  %5193 = vmatprep.subr.bf16.mxu1 %v6020_v63 }
 0x807   : > { %5163 = vmatpush1.bf16.msra.mxu0 %v6023_v39  ;;  %5195 = vmatpush1.bf16.msra.mxu1 %v6027_v22 }
 0x808   : > { %5165 = vmatprep.subr.bf16.mxu0 %v6029_v41  ;;  %5197 = vmatprep.subr.bf16.mxu1 %v6032_v10 }
 0x80a   : > { %v5491_v46 = vpop.eup %5490 }
 0x80b   : > { %v3494_v14 = vmul.f32 %v5491_v46, %v5489_v9  ;;  %5167 = vmatpush1.bf16.msra.mxu0 %v6035_v13  ;;  %5199 = vmatpush1.bf16.msra.mxu1 %v6039_v15  ;;  %v3513_v15 = vunpack.c.h.bf16 %v6767_v6 }
 0x80d   : > { %v6839_v1 = vsel %vm3500_vm13, %v3494_v14, %v6723_v33  ;;  %v3508_v39 = vsel %vm3500_vm13, %v3494_v14, 0.0 }
 0x80e   : > { %4164 = vst [vmem:[%s5837_s30 + $0x2] sm:$0x3] %v3508_v39  ;;  %3777 = vmatmul.mubr.f32.vlgmr.msra.gmra.mrb[30].mxu0 %v6839_v1  ;;  %3848 = vmatmul.mubr.f32.vlgmr.msra.gmra.mrb[30].mxu1 %v6839_v1 }
 0x8c1   : > { %v3580_v24 = vpop.f32.mrb[28].mxu0  ;;  %v3651_v16 = vpop.f32.mrb[28].mxu1 }
 0x8c2   : > { %v3582_v63 = vpop.f32.mrb[29].mxu0  ;;  %v3653_v22 = vpop.f32.mrb[29].mxu1 }
 0x8c3   : > { %v3660_v41 = vcombine.low %v3580_v24, %v3582_v63  ;;  %v3661_v10 = vcombine.low %v3651_v16, %v3653_v22  ;;  %v3911_v22 = vstv %s5824_s14 }
 0x8c4   : > { %vm3912_vm15 = vcmp.lt.s32.totalorder %v3911_v22, %v6098_v4 }
 0x8c5   : > { %v3668_v13 = vrot.slane %v3660_v41, %v6084_v50  ;;  %v3675_v51 = vrot.slane %v3661_v10, %v6084_v50 }
 0x8c7   : > { %v3676_v0 = vcombine.low %v3668_v13, %v3675_v51 }
 0x8c9   : > { %v3678_v37 = vadd.f32 %v3676_v0, %v3513_v15 }
 0x8cb   : > { %v4166_v61 = vmul.f32 -1.442695, %v3678_v37  ;;  %v3686_v19 = vrot.slane %v3678_v37, 2  ;;  %v3697_v23 = vrot.slane %v3678_v37, 6  ;;  %v3694_v5 = vrot.slane %v3678_v37, 4 }
 0x8cd   : > { %5492 = vpow2.f32 %v4166_v61  ;;  %v4167_v8 = vmul.f32 -1.442695, %v3686_v19  ;;  %v4168_v43 = vmul.f32 -1.442695, %v3697_v23 }
 0x8cf   : > { %5494 = vpow2.f32 %v4167_v8 }
 0x8d0   : > { %5496 = vpow2.f32 %v4168_v43 }
 0x8d7   : > { %v5493_v34 = vpop.eup %5492 }
 0x8d8   : > { %v3682_v33 = vadd.f32 1.0, %v5493_v34 }
 0x8d9   : > { %v5495_v36 = vpop.eup %5494 }
 0x8da   : > { %5498 = vrcp.f32 %v3682_v33  ;;  %v3691_v44 = vadd.f32 1.0, %v5495_v36  ;;  %v5497_v11 = vpop.eup %5496 }
 0x8db   : > { %5500 = vtanh.f32 %v3694_v5  ;;  %v3702_v54 = vadd.f32 1.0, %v5497_v11 }
 0x8dc   : > { %5502 = vrcp.f32 %v3691_v44 }
 0x8dd   : > { %5504 = vrcp.f32 %v3702_v54 }
 0x8e1   : > { %v3778_v6 = vpop.f32.mrb[30].mxu0  ;;  %v3849_v53 = vpop.f32.mrb[30].mxu1 }
 0x8e2   : > { %v3780_v12 = vpop.f32.mrb[31].mxu0  ;;  %v3851_v27 = vpop.f32.mrb[31].mxu1 }
 0x8e3   : > { %v3858_v52 = vcombine.low %v3778_v6, %v3780_v12  ;;  %v3859_v17 = vcombine.low %v3849_v53, %v3851_v27 }
 0x8e4   : > { %v5499_v40 = vpop.eup %5498 }
 0x8e5   : > { %v5501_v21 = vpop.eup %5500  ;;  %v3866_v38 = vrot.slane %v3858_v52, %v6084_v50  ;;  %v3873_v57 = vrot.slane %v3859_v17, %v6084_v50 }
 0x8e6   : > { %v5503_v58 = vpop.eup %5502  ;;  %v3706_v49 = vmul.f32 %v5501_v21, %v5499_v40 }
 0x8e7   : > { %v3705_v48 = vmul.f32 %v5503_v58, %v6784_v55  ;;  %v3874_v25 = vcombine.low %v3866_v38, %v3873_v57  ;;  %v5505_v29 = vpop.eup %5504 }
 0x8e9   : > { %v3707_v62 = vadd.f32 %v3706_v49, %v3705_v48  ;;  %v3876_v7 = vadd.f32 %v3874_v25, %v3711_v18 }
 0x8eb   : > { %5506 = vtanh.f32 %v3707_v62  ;;  %v3914_v26 = vsel %vm3910_vm14, %v3707_v62, %v6784_v55  ;;  %v4169_v47 = vmul.f32 -1.442695, %v3876_v7  ;;  %v3884_v45 = vrot.slane %v3876_v7, 2 }
 0x8ec   : > { %3923 = vst [vmem:[#allocation3] sm:$0x3] %v3914_v26  ;;  %v3895_v35 = vrot.slane %v3876_v7, 6  ;;  %v3892_v59 = vrot.slane %v3876_v7, 4 }
 0x8ed   : > { %5508 = vpow2.f32 %v4169_v47  ;;  %v4170_v50 = vmul.f32 -1.442695, %v3884_v45 }
 0x8ee   : > { %v4171_v32 = vmul.f32 -1.442695, %v3895_v35 }
 0x8ef   : > { %5510 = vpow2.f32 %v4170_v50 }
 0x8f0   : > { %5512 = vpow2.f32 %v4171_v32 }
 0x8f5   : > { %v5507_v30 = vpop.eup %5506 }
 0x8f6   : > { %v3709_v42 = vmul.f32 %v5507_v30, %v5505_v29 }
 0x8f7   : > { %v5509_v56 = vpop.eup %5508 }
 0x8f8   : > { %v3913_v60 = vsel %vm3910_vm14, %v3709_v42, %v6789_v31  ;;  %v3917_v55 = vsel %vm3910_vm14, %v3709_v42, 0.0  ;;  %v3880_v2 = vadd.f32 1.0, %v5509_v56 }
 0x8f9   : > { %v5511_v3 = vpop.eup %5510  ;;  %4172 = vst [vmem:[%s5832_s20 + $0xe] sm:$0x3] %v3917_v55  ;;  %3922 = vst [vmem:[#allocation2] sm:$0x3] %v3913_v60 }
 0x8fa   : > { %5514 = vrcp.f32 %v3880_v2  ;;  %v3889_v9 = vadd.f32 1.0, %v5511_v3  ;;  %v5513_v46 = vpop.eup %5512 }
 0x8fb   : > { %5516 = vtanh.f32 %v3892_v59  ;;  %v3900_v16 = vadd.f32 1.0, %v5513_v46 }
 0x8fc   : > { %5518 = vrcp.f32 %v3889_v9 }
 0x8fd   : > { %5520 = vrcp.f32 %v3900_v16 }
 0x904   : > { %v5515_v14 = vpop.eup %5514 }
 0x905   : > { %v5517_v39 = vpop.eup %5516 }
 0x906   : > { %v5519_v24 = vpop.eup %5518  ;;  %v3904_v63 = vmul.f32 %v5517_v39, %v5515_v14 }
 0x907   : > { %v3903_v31 = vmul.f32 %v5519_v24, %v6822_v28  ;;  %v5521_v13 = vpop.eup %5520 }
 0x909   : > { %v3905_v41 = vadd.f32 %v3904_v63, %v3903_v31 }
 0x90b   : > { %5522 = vtanh.f32 %v3905_v41  ;;  %v3916_v10 = vsel %vm3912_vm15, %v3905_v41, %v6822_v28 }
 0x90c   : > { %3925 = vst [vmem:[#allocation5] sm:$0x3] %v3916_v10 }
 0x915   : > { %v5523_v15 = vpop.eup %5522 }
 0x916   : > { %v3907_v51 = vmul.f32 %v5523_v15, %v5521_v13 }
 0x918   : > { %v3915_v0 = vsel %vm3912_vm15, %v3907_v51, %v6839_v1  ;;  %v3920_v37 = vsel %vm3912_vm15, %v3907_v51, 0.0 }
 0x919   : > { %3921 = vst [vmem:[%s5837_s30] sm:$0x3] %v3920_v37  ;;  %3924 = vst [vmem:[#allocation4] sm:$0x3] %v3915_v0 }
 0x91a PF: > { %s7207_s14 = sld [smem:[#allocation15_spill]]  ;;  %s7208_s20 = sld [smem:[#allocation14_spill]] }
 0x91b   : > { %p16_p6 = scmp.ge.s32.totalorder %s5700_s27, 4   ;;  %s7209_s21 = smov %s5614_s22 }
 0x91c   : > { %s7211_s23 = smov %s5622_s24  ;;  %s7213_s25 = smov %s5700_s27 }
 0x91d   :  { %18 = sbr.rel (!%p16_p6) target bundleno = 4 (0x4), region = 218 }
 0x920   : > { %s7210_s22 = smov %s7207_s14  ;;  %s7212_s24 = smov %s7208_s20 }
 0x924   :  { %3968 = vsyncpa [#allocation9], 1 }
 0x925   :  { %3970 = vsyncpa [#allocation9 + $0x1], 1 }
 0x926   :  { %3971 = vsyncpa [#allocation11], 1 }

</bundles_post_ra>
